<compile_context>
chip_gen: v6e
topology: v6e:2x2x1
jax: 0.10.0
libtpu: 0.0.40
codegen_flags: <defaults>
</compile_context>

<pallas_src>
import jax
import jax.numpy as jnp
from jax import lax
from jax.experimental import pallas as pl
from jax.experimental.pallas import tpu as pltpu


# ----------------------------------------------------------------------------
# Fused kernel: multi-layer GRU (skewed) + transpose + Linear(seq, seq)
# ----------------------------------------------------------------------------
def _make_fused_kernel(num_layers, seq_len, batch, hidden, input_size):
    assert hidden == 1, "GRU_REG forward only type-checks with hidden_size == 1"

    # Static row offsets of each layer's block inside the packed parameter
    # array.  Layer block rows: [wihT (in_dim), whhT (hidden), bih (1), bhh (1)].
    offs = []
    o = 0
    for l in range(num_layers):
        ind = input_size if l == 0 else hidden
        offs.append((o, ind))
        o += ind + hidden + 2

    def _sig(v):
        # sigmoid as a single EUP tanh push on the serial chain
        return 0.5 * (jnp.tanh(0.5 * v) + 1.0)

    def kernel(x_ref, gp_ref, rp_ref, out_ref):
        gp = gp_ref[...]          # (total_rows, 3)   packed GRU params
        rp = rp_ref[...]          # (S+1, S)          rows 0..S-1 = w_regT, row S = b_reg
        x2d = x_ref[...]          # (S*B, I)          row = s*B + b

        # ---- hoisted (batch,1)-broadcast recurrence weights (off the h-chain) ----
        whh, bhh, wih, bih = [], [], [], []
        for l, (o_l, ind) in enumerate(offs):
            whh_row = o_l + ind
            bih_row = whh_row + hidden
            bhh_row = bih_row + 1
            whh.append([jnp.broadcast_to(gp[whh_row:whh_row + 1, g:g + 1], (batch, 1))
                        for g in range(3)])
            bhh.append([jnp.broadcast_to(gp[bhh_row:bhh_row + 1, g:g + 1], (batch, 1))
                        for g in range(3)])
            if l > 0:  # layers >= 1 have a scalar (1x1) input weight per gate
                wih.append([jnp.broadcast_to(gp[o_l:o_l + 1, g:g + 1], (batch, 1))
                            for g in range(3)])
                bih.append([jnp.broadcast_to(gp[bih_row:bih_row + 1, g:g + 1], (batch, 1))
                            for g in range(3)])
            else:
                wih.append(None)
                bih.append(None)

        # ---- layer-0 input projection: h-independent, computed once, off-chain ----
        o0, in0 = offs[0]
        wihT0 = gp[o0:o0 + in0, :]                               # (I, 3)
        bih0 = gp[o0 + in0 + hidden:o0 + in0 + hidden + 1, :]    # (1, 3)
        gi0_all = x2d[:, 0:1] * wihT0[0:1, :] + bih0             # (S*B, 3)
        for k in range(1, in0):
            gi0_all = gi0_all + x2d[:, k:k + 1] * wihT0[k:k + 1, :]
        gi0 = [gi0_all[:, g:g + 1] for g in range(3)]            # three (S*B, 1) columns

        # ---- output accumulator: start from the Linear bias ----
        out = jnp.broadcast_to(rp[seq_len:seq_len + 1, :], (batch, seq_len))

        # ---- skewed (software-pipelined), fully-unrolled recurrence ----
        # Combined step t runs layer l's own timestep s = t - l; layer l reads
        # layer l-1's hidden state as it was at the START of the combined step.
        h = [jnp.zeros((batch, hidden), jnp.float32) for _ in range(num_layers)]
        for t in range(seq_len + num_layers - 1):
            prev = list(h)
            for l in range(num_layers):
                s = t - l
                if not (0 <= s < seq_len):
                    continue
                if l == 0:
                    gir = gi0[0][s * batch:(s + 1) * batch, :]
                    giz = gi0[1][s * batch:(s + 1) * batch, :]
                    gin = gi0[2][s * batch:(s + 1) * batch, :]
                else:
                    xin = prev[l - 1]                 # layer l-1 output at step s
                    gir = xin * wih[l][0] + bih[l][0]
                    giz = xin * wih[l][1] + bih[l][1]
                    gin = xin * wih[l][2] + bih[l][2]
                hl = h[l]
                # per-gate (B,1) math only: no lane packing/extraction on the chain
                ghr = hl * whh[l][0] + bhh[l][0]
                ghz = hl * whh[l][1] + bhh[l][1]
                ghn = hl * whh[l][2] + bhh[l][2]
                r = _sig(gir + ghr)
                z = _sig(giz + ghz)
                n = jnp.tanh(gin + r * ghn)
                hl = (1.0 - z) * n + z * hl
                h[l] = hl
                if l == num_layers - 1:
                    # fused transpose + Linear: out[b,:] += h_last(s)[b] * w_regT[s,:]
                    out = out + hl * rp[s:s + 1, :]

        out_ref[...] = out        # single lane store of the (B, S) result

    return kernel


def gru_reg_forward(x, gru_p, reg_p, *, num_layers, hidden_size):
    """x: (S, B, I).  gru_p: packed GRU params.  reg_p: packed Linear params."""
    S, B, I = x.shape
    x2d = x.reshape(S * B, I)     # layout plumbing only (row = s*B + b)

    kernel = _make_fused_kernel(num_layers, S, B, hidden_size, I)
    # TODO(synk): if batch ever grows, add a leading "parallel" grid axis over
    # batch tiles so v7x's second TensorCore is used; at B=2 a single program
    # is cheapest.
    return pl.pallas_call(
        kernel,
        out_shape=jax.ShapeDtypeStruct((B, S), jnp.float32),
        in_specs=[pl.BlockSpec(memory_space=pltpu.MemorySpace.VMEM)] * 3,
        out_specs=pl.BlockSpec(memory_space=pltpu.MemorySpace.VMEM),
    )(x2d, gru_p, reg_p)


# ----------------------------------------------------------------------------
# Deterministic synthetic parameter init (xavier_normal weights, zero biases),
# pre-transposed and packed once here so the forward is a pure pallas_call.
# ----------------------------------------------------------------------------
def xavier_normal(key, shape):
    fan_out, fan_in = shape
    std = (2.0 / (fan_in + fan_out)) ** 0.5
    return std * jax.random.normal(key, shape, dtype=jnp.float32)


def init_params(key, input_size, hidden_size, num_layers, seq_len):
    layers = []
    rows = []
    for l in range(num_layers):
        in_dim = input_size if l == 0 else hidden_size
        key, k1, k2 = jax.random.split(key, 3)
        w_ih = xavier_normal(k1, (3 * hidden_size, in_dim))
        w_hh = xavier_normal(k2, (3 * hidden_size, hidden_size))
        wihT = w_ih.T                                          # (in_dim, 3H)
        whhT = w_hh.T                                          # (H, 3H)
        bih = jnp.zeros((1, 3 * hidden_size), jnp.float32)
        bhh = jnp.zeros((1, 3 * hidden_size), jnp.float32)
        layers.append((wihT, whhT, bih, bhh))
        rows += [wihT, whhT, bih, bhh]
    key, k3 = jax.random.split(key)
    w_reg = xavier_normal(k3, (seq_len, seq_len))
    w_regT = w_reg.T                                           # (S, S)
    b_reg = jnp.zeros((1, seq_len), jnp.float32)               # (1, S)

    gru_p = jnp.concatenate(rows, axis=0)                      # (sum(in+H+2), 3H)
    reg_p = jnp.concatenate([w_regT, b_reg], axis=0)           # (S+1, S)
    return {"layers": layers, "w_regT": w_regT, "b_reg": b_reg,
            "gru_p": gru_p, "reg_p": reg_p}


# ----------------------------------------------------------------------------
# Pure-JAX reference (same math as torch.nn.GRU, gate order r, z, n)
# ----------------------------------------------------------------------------
def reference_forward(x, params):
    S, B, _ = x.shape
    layers = params["layers"]
    H = layers[0][1].shape[0]
    h_all = x
    for (wihT, whhT, bih, bhh) in layers:
        def cell(h, xt, wihT=wihT, whhT=whhT, bih=bih, bhh=bhh):
            gi = jnp.dot(xt, wihT, precision=lax.Precision.HIGHEST) + bih
            gh = jnp.dot(h, whhT, precision=lax.Precision.HIGHEST) + bhh
            r = jax.nn.sigmoid(gi[:, :H] + gh[:, :H])
            z = jax.nn.sigmoid(gi[:, H:2 * H] + gh[:, H:2 * H])
            n = jnp.tanh(gi[:, 2 * H:] + r * gh[:, 2 * H:])
            h_new = (1.0 - z) * n + z * h
            return h_new, h_new
        _, h_all = lax.scan(cell, jnp.zeros((B, H), jnp.float32), h_all)
    feat = jnp.transpose(h_all, (1, 0, 2)).reshape(B, S * H)
    return (jnp.dot(feat, params["w_regT"], precision=lax.Precision.HIGHEST)
            + params["b_reg"])


if __name__ == "__main__":
    # Shapes implied by the module: hidden_size must be 1 for the forward
    # (reshape to (B, S*H) then Linear(seq_len, seq_len)) to be valid.
    input_size, hidden_size, num_layers = 4, 1, 2
    seq_len, batch = 16, 2

    key = jax.random.PRNGKey(0)
    key, kx = jax.random.split(key)
    x = jax.random.normal(kx, (seq_len, batch, input_size), dtype=jnp.float32)

    params = init_params(key, input_size, hidden_size, num_layers, seq_len)

    fwd = jax.jit(gru_reg_forward, static_argnames=("num_layers", "hidden_size"))
    y = fwd(x, params["gru_p"], params["reg_p"],
            num_layers=num_layers, hidden_size=hidden_size)
    y = jax.block_until_ready(y)

    y_ref = reference_forward(x, params)
    assert y.shape == (batch, seq_len), y.shape
    max_err = float(jnp.max(jnp.abs(y - y_ref)))
    # tanh-based sigmoid differs from jax.nn.sigmoid by a few ULP; 1e-4 is
    # still ~100x tighter than the previous 1e-2 tolerance.
    assert jnp.allclose(y, y_ref, atol=1e-4, rtol=1e-4), max_err
    print("KERNEL_OK")
</pallas_src>

<mosaic_0001>
module attributes {stable_mosaic.version = 11 : i64} {
  func.func @kernel(%arg0: memref<32x4xf32, #tpu.memory_space<vmem>>, %arg1: memref<11x3xf32, #tpu.memory_space<vmem>>, %arg2: memref<17x16xf32, #tpu.memory_space<vmem>>, %arg3: memref<2x16xf32, #tpu.memory_space<vmem>>) attributes {dimension_semantics = [], scalar_prefetch = 0 : i64, scratch_operands = 0 : i64, tpu.core_type = #tpu.core_type<tc>} {
    %c0 = arith.constant 0 : index
    %c0_0 = arith.constant 0 : index
    %0 = vector.load %arg1[%c0, %c0_0] : memref<11x3xf32, #tpu.memory_space<vmem>>, vector<11x3xf32>
    %c0_1 = arith.constant 0 : index
    %c0_2 = arith.constant 0 : index
    %1 = vector.load %arg2[%c0_1, %c0_2] : memref<17x16xf32, #tpu.memory_space<vmem>>, vector<17x16xf32>
    %c0_3 = arith.constant 0 : index
    %c0_4 = arith.constant 0 : index
    %2 = vector.load %arg0[%c0_3, %c0_4] : memref<32x4xf32, #tpu.memory_space<vmem>>, vector<32x4xf32>
    %3 = vector.extract_strided_slice %0 {offsets = [4, 0], sizes = [1, 1], strides = [1, 1]} : vector<11x3xf32> to vector<1x1xf32>
    %4 = vector.shape_cast %3 : vector<1x1xf32> to vector<1x1xf32>
    %5 = vector.broadcast %4 : vector<1x1xf32> to vector<2x1xf32>
    %6 = vector.extract_strided_slice %0 {offsets = [4, 1], sizes = [1, 1], strides = [1, 1]} : vector<11x3xf32> to vector<1x1xf32>
    %7 = vector.shape_cast %6 : vector<1x1xf32> to vector<1x1xf32>
    %8 = vector.broadcast %7 : vector<1x1xf32> to vector<2x1xf32>
    %9 = vector.extract_strided_slice %0 {offsets = [4, 2], sizes = [1, 1], strides = [1, 1]} : vector<11x3xf32> to vector<1x1xf32>
    %10 = vector.shape_cast %9 : vector<1x1xf32> to vector<1x1xf32>
    %11 = vector.broadcast %10 : vector<1x1xf32> to vector<2x1xf32>
    %12 = vector.extract_strided_slice %0 {offsets = [6, 0], sizes = [1, 1], strides = [1, 1]} : vector<11x3xf32> to vector<1x1xf32>
    %13 = vector.shape_cast %12 : vector<1x1xf32> to vector<1x1xf32>
    %14 = vector.broadcast %13 : vector<1x1xf32> to vector<2x1xf32>
    %15 = vector.extract_strided_slice %0 {offsets = [6, 1], sizes = [1, 1], strides = [1, 1]} : vector<11x3xf32> to vector<1x1xf32>
    %16 = vector.shape_cast %15 : vector<1x1xf32> to vector<1x1xf32>
    %17 = vector.broadcast %16 : vector<1x1xf32> to vector<2x1xf32>
    %18 = vector.extract_strided_slice %0 {offsets = [6, 2], sizes = [1, 1], strides = [1, 1]} : vector<11x3xf32> to vector<1x1xf32>
    %19 = vector.shape_cast %18 : vector<1x1xf32> to vector<1x1xf32>
    %20 = vector.broadcast %19 : vector<1x1xf32> to vector<2x1xf32>
    %21 = vector.extract_strided_slice %0 {offsets = [8, 0], sizes = [1, 1], strides = [1, 1]} : vector<11x3xf32> to vector<1x1xf32>
    %22 = vector.shape_cast %21 : vector<1x1xf32> to vector<1x1xf32>
    %23 = vector.broadcast %22 : vector<1x1xf32> to vector<2x1xf32>
    %24 = vector.extract_strided_slice %0 {offsets = [8, 1], sizes = [1, 1], strides = [1, 1]} : vector<11x3xf32> to vector<1x1xf32>
    %25 = vector.shape_cast %24 : vector<1x1xf32> to vector<1x1xf32>
    %26 = vector.broadcast %25 : vector<1x1xf32> to vector<2x1xf32>
    %27 = vector.extract_strided_slice %0 {offsets = [8, 2], sizes = [1, 1], strides = [1, 1]} : vector<11x3xf32> to vector<1x1xf32>
    %28 = vector.shape_cast %27 : vector<1x1xf32> to vector<1x1xf32>
    %29 = vector.broadcast %28 : vector<1x1xf32> to vector<2x1xf32>
    %30 = vector.extract_strided_slice %0 {offsets = [10, 0], sizes = [1, 1], strides = [1, 1]} : vector<11x3xf32> to vector<1x1xf32>
    %31 = vector.shape_cast %30 : vector<1x1xf32> to vector<1x1xf32>
    %32 = vector.broadcast %31 : vector<1x1xf32> to vector<2x1xf32>
    %33 = vector.extract_strided_slice %0 {offsets = [10, 1], sizes = [1, 1], strides = [1, 1]} : vector<11x3xf32> to vector<1x1xf32>
    %34 = vector.shape_cast %33 : vector<1x1xf32> to vector<1x1xf32>
    %35 = vector.broadcast %34 : vector<1x1xf32> to vector<2x1xf32>
    %36 = vector.extract_strided_slice %0 {offsets = [10, 2], sizes = [1, 1], strides = [1, 1]} : vector<11x3xf32> to vector<1x1xf32>
    %37 = vector.shape_cast %36 : vector<1x1xf32> to vector<1x1xf32>
    %38 = vector.broadcast %37 : vector<1x1xf32> to vector<2x1xf32>
    %39 = vector.extract_strided_slice %0 {offsets = [7, 0], sizes = [1, 1], strides = [1, 1]} : vector<11x3xf32> to vector<1x1xf32>
    %40 = vector.shape_cast %39 : vector<1x1xf32> to vector<1x1xf32>
    %41 = vector.broadcast %40 : vector<1x1xf32> to vector<2x1xf32>
    %42 = vector.extract_strided_slice %0 {offsets = [7, 1], sizes = [1, 1], strides = [1, 1]} : vector<11x3xf32> to vector<1x1xf32>
    %43 = vector.shape_cast %42 : vector<1x1xf32> to vector<1x1xf32>
    %44 = vector.broadcast %43 : vector<1x1xf32> to vector<2x1xf32>
    %45 = vector.extract_strided_slice %0 {offsets = [7, 2], sizes = [1, 1], strides = [1, 1]} : vector<11x3xf32> to vector<1x1xf32>
    %46 = vector.shape_cast %45 : vector<1x1xf32> to vector<1x1xf32>
    %47 = vector.broadcast %46 : vector<1x1xf32> to vector<2x1xf32>
    %48 = vector.extract_strided_slice %0 {offsets = [9, 0], sizes = [1, 1], strides = [1, 1]} : vector<11x3xf32> to vector<1x1xf32>
    %49 = vector.shape_cast %48 : vector<1x1xf32> to vector<1x1xf32>
    %50 = vector.broadcast %49 : vector<1x1xf32> to vector<2x1xf32>
    %51 = vector.extract_strided_slice %0 {offsets = [9, 1], sizes = [1, 1], strides = [1, 1]} : vector<11x3xf32> to vector<1x1xf32>
    %52 = vector.shape_cast %51 : vector<1x1xf32> to vector<1x1xf32>
    %53 = vector.broadcast %52 : vector<1x1xf32> to vector<2x1xf32>
    %54 = vector.extract_strided_slice %0 {offsets = [9, 2], sizes = [1, 1], strides = [1, 1]} : vector<11x3xf32> to vector<1x1xf32>
    %55 = vector.shape_cast %54 : vector<1x1xf32> to vector<1x1xf32>
    %56 = vector.broadcast %55 : vector<1x1xf32> to vector<2x1xf32>
    %57 = vector.extract_strided_slice %0 {offsets = [0, 0], sizes = [4, 3], strides = [1, 1]} : vector<11x3xf32> to vector<4x3xf32>
    %58 = vector.extract_strided_slice %0 {offsets = [5, 0], sizes = [1, 3], strides = [1, 1]} : vector<11x3xf32> to vector<1x3xf32>
    %59 = vector.extract_strided_slice %2 {offsets = [0, 0], sizes = [32, 1], strides = [1, 1]} : vector<32x4xf32> to vector<32x1xf32>
    %60 = vector.extract_strided_slice %57 {offsets = [0, 0], sizes = [1, 3], strides = [1, 1]} : vector<4x3xf32> to vector<1x3xf32>
    %61 = vector.broadcast %59 : vector<32x1xf32> to vector<32x3xf32>
    %62 = vector.broadcast %60 : vector<1x3xf32> to vector<32x3xf32>
    %63 = arith.mulf %61, %62 : vector<32x3xf32>
    %64 = vector.broadcast %58 : vector<1x3xf32> to vector<32x3xf32>
    %65 = arith.addf %63, %64 : vector<32x3xf32>
    %66 = vector.extract_strided_slice %2 {offsets = [0, 1], sizes = [32, 1], strides = [1, 1]} : vector<32x4xf32> to vector<32x1xf32>
    %67 = vector.extract_strided_slice %57 {offsets = [1, 0], sizes = [1, 3], strides = [1, 1]} : vector<4x3xf32> to vector<1x3xf32>
    %68 = vector.broadcast %66 : vector<32x1xf32> to vector<32x3xf32>
    %69 = vector.broadcast %67 : vector<1x3xf32> to vector<32x3xf32>
    %70 = arith.mulf %68, %69 : vector<32x3xf32>
    %71 = arith.addf %65, %70 : vector<32x3xf32>
    %72 = vector.extract_strided_slice %2 {offsets = [0, 2], sizes = [32, 1], strides = [1, 1]} : vector<32x4xf32> to vector<32x1xf32>
    %73 = vector.extract_strided_slice %57 {offsets = [2, 0], sizes = [1, 3], strides = [1, 1]} : vector<4x3xf32> to vector<1x3xf32>
    %74 = vector.broadcast %72 : vector<32x1xf32> to vector<32x3xf32>
    %75 = vector.broadcast %73 : vector<1x3xf32> to vector<32x3xf32>
    %76 = arith.mulf %74, %75 : vector<32x3xf32>
    %77 = arith.addf %71, %76 : vector<32x3xf32>
    %78 = vector.extract_strided_slice %2 {offsets = [0, 3], sizes = [32, 1], strides = [1, 1]} : vector<32x4xf32> to vector<32x1xf32>
    %79 = vector.extract_strided_slice %57 {offsets = [3, 0], sizes = [1, 3], strides = [1, 1]} : vector<4x3xf32> to vector<1x3xf32>
    %80 = vector.broadcast %78 : vector<32x1xf32> to vector<32x3xf32>
    %81 = vector.broadcast %79 : vector<1x3xf32> to vector<32x3xf32>
    %82 = arith.mulf %80, %81 : vector<32x3xf32>
    %83 = arith.addf %77, %82 : vector<32x3xf32>
    %84 = vector.extract_strided_slice %83 {offsets = [0, 0], sizes = [32, 1], strides = [1, 1]} : vector<32x3xf32> to vector<32x1xf32>
    %85 = vector.extract_strided_slice %83 {offsets = [0, 1], sizes = [32, 1], strides = [1, 1]} : vector<32x3xf32> to vector<32x1xf32>
    %86 = vector.extract_strided_slice %83 {offsets = [0, 2], sizes = [32, 1], strides = [1, 1]} : vector<32x3xf32> to vector<32x1xf32>
    %87 = vector.extract_strided_slice %1 {offsets = [16, 0], sizes = [1, 16], strides = [1, 1]} : vector<17x16xf32> to vector<1x16xf32>
    %88 = vector.shape_cast %87 : vector<1x16xf32> to vector<1x16xf32>
    %89 = vector.broadcast %88 : vector<1x16xf32> to vector<2x16xf32>
    %cst = arith.constant 0.000000e+00 : f32
    %90 = vector.broadcast %cst : f32 to vector<2x1xf32>
    %cst_5 = arith.constant 0.000000e+00 : f32
    %91 = vector.broadcast %cst_5 : f32 to vector<2x1xf32>
    %92 = vector.extract_strided_slice %84 {offsets = [0, 0], sizes = [2, 1], strides = [1, 1]} : vector<32x1xf32> to vector<2x1xf32>
    %93 = vector.extract_strided_slice %85 {offsets = [0, 0], sizes = [2, 1], strides = [1, 1]} : vector<32x1xf32> to vector<2x1xf32>
    %94 = vector.extract_strided_slice %86 {offsets = [0, 0], sizes = [2, 1], strides = [1, 1]} : vector<32x1xf32> to vector<2x1xf32>
    %95 = arith.mulf %90, %5 : vector<2x1xf32>
    %96 = arith.addf %95, %14 : vector<2x1xf32>
    %97 = arith.mulf %90, %8 : vector<2x1xf32>
    %98 = arith.addf %97, %17 : vector<2x1xf32>
    %99 = arith.mulf %90, %11 : vector<2x1xf32>
    %100 = arith.addf %99, %20 : vector<2x1xf32>
    %101 = arith.addf %92, %96 : vector<2x1xf32>
    %cst_6 = arith.constant 5.000000e-01 : f32
    %102 = vector.broadcast %cst_6 : f32 to vector<2x1xf32>
    %103 = arith.mulf %102, %101 : vector<2x1xf32>
    %104 = math.tanh %103 : vector<2x1xf32>
    %cst_7 = arith.constant 1.000000e+00 : f32
    %105 = vector.broadcast %cst_7 : f32 to vector<2x1xf32>
    %106 = arith.addf %104, %105 : vector<2x1xf32>
    %cst_8 = arith.constant 5.000000e-01 : f32
    %107 = vector.broadcast %cst_8 : f32 to vector<2x1xf32>
    %108 = arith.mulf %107, %106 : vector<2x1xf32>
    %109 = arith.addf %93, %98 : vector<2x1xf32>
    %cst_9 = arith.constant 5.000000e-01 : f32
    %110 = vector.broadcast %cst_9 : f32 to vector<2x1xf32>
    %111 = arith.mulf %110, %109 : vector<2x1xf32>
    %112 = math.tanh %111 : vector<2x1xf32>
    %cst_10 = arith.constant 1.000000e+00 : f32
    %113 = vector.broadcast %cst_10 : f32 to vector<2x1xf32>
    %114 = arith.addf %112, %113 : vector<2x1xf32>
    %cst_11 = arith.constant 5.000000e-01 : f32
    %115 = vector.broadcast %cst_11 : f32 to vector<2x1xf32>
    %116 = arith.mulf %115, %114 : vector<2x1xf32>
    %117 = arith.mulf %108, %100 : vector<2x1xf32>
    %118 = arith.addf %94, %117 : vector<2x1xf32>
    %119 = math.tanh %118 : vector<2x1xf32>
    %cst_12 = arith.constant 1.000000e+00 : f32
    %120 = vector.broadcast %cst_12 : f32 to vector<2x1xf32>
    %121 = arith.subf %120, %116 : vector<2x1xf32>
    %122 = arith.mulf %121, %119 : vector<2x1xf32>
    %123 = arith.mulf %116, %90 : vector<2x1xf32>
    %124 = arith.addf %122, %123 : vector<2x1xf32>
    %125 = vector.extract_strided_slice %84 {offsets = [2, 0], sizes = [2, 1], strides = [1, 1]} : vector<32x1xf32> to vector<2x1xf32>
    %126 = vector.extract_strided_slice %85 {offsets = [2, 0], sizes = [2, 1], strides = [1, 1]} : vector<32x1xf32> to vector<2x1xf32>
    %127 = vector.extract_strided_slice %86 {offsets = [2, 0], sizes = [2, 1], strides = [1, 1]} : vector<32x1xf32> to vector<2x1xf32>
    %128 = arith.mulf %124, %5 : vector<2x1xf32>
    %129 = arith.addf %128, %14 : vector<2x1xf32>
    %130 = arith.mulf %124, %8 : vector<2x1xf32>
    %131 = arith.addf %130, %17 : vector<2x1xf32>
    %132 = arith.mulf %124, %11 : vector<2x1xf32>
    %133 = arith.addf %132, %20 : vector<2x1xf32>
    %134 = arith.addf %125, %129 : vector<2x1xf32>
    %cst_13 = arith.constant 5.000000e-01 : f32
    %135 = vector.broadcast %cst_13 : f32 to vector<2x1xf32>
    %136 = arith.mulf %135, %134 : vector<2x1xf32>
    %137 = math.tanh %136 : vector<2x1xf32>
    %cst_14 = arith.constant 1.000000e+00 : f32
    %138 = vector.broadcast %cst_14 : f32 to vector<2x1xf32>
    %139 = arith.addf %137, %138 : vector<2x1xf32>
    %cst_15 = arith.constant 5.000000e-01 : f32
    %140 = vector.broadcast %cst_15 : f32 to vector<2x1xf32>
    %141 = arith.mulf %140, %139 : vector<2x1xf32>
    %142 = arith.addf %126, %131 : vector<2x1xf32>
    %cst_16 = arith.constant 5.000000e-01 : f32
    %143 = vector.broadcast %cst_16 : f32 to vector<2x1xf32>
    %144 = arith.mulf %143, %142 : vector<2x1xf32>
    %145 = math.tanh %144 : vector<2x1xf32>
    %cst_17 = arith.constant 1.000000e+00 : f32
    %146 = vector.broadcast %cst_17 : f32 to vector<2x1xf32>
    %147 = arith.addf %145, %146 : vector<2x1xf32>
    %cst_18 = arith.constant 5.000000e-01 : f32
    %148 = vector.broadcast %cst_18 : f32 to vector<2x1xf32>
    %149 = arith.mulf %148, %147 : vector<2x1xf32>
    %150 = arith.mulf %141, %133 : vector<2x1xf32>
    %151 = arith.addf %127, %150 : vector<2x1xf32>
    %152 = math.tanh %151 : vector<2x1xf32>
    %cst_19 = arith.constant 1.000000e+00 : f32
    %153 = vector.broadcast %cst_19 : f32 to vector<2x1xf32>
    %154 = arith.subf %153, %149 : vector<2x1xf32>
    %155 = arith.mulf %154, %152 : vector<2x1xf32>
    %156 = arith.mulf %149, %124 : vector<2x1xf32>
    %157 = arith.addf %155, %156 : vector<2x1xf32>
    %158 = arith.mulf %124, %41 : vector<2x1xf32>
    %159 = arith.addf %158, %50 : vector<2x1xf32>
    %160 = arith.mulf %124, %44 : vector<2x1xf32>
    %161 = arith.addf %160, %53 : vector<2x1xf32>
    %162 = arith.mulf %124, %47 : vector<2x1xf32>
    %163 = arith.addf %162, %56 : vector<2x1xf32>
    %164 = arith.mulf %91, %23 : vector<2x1xf32>
    %165 = arith.addf %164, %32 : vector<2x1xf32>
    %166 = arith.mulf %91, %26 : vector<2x1xf32>
    %167 = arith.addf %166, %35 : vector<2x1xf32>
    %168 = arith.mulf %91, %29 : vector<2x1xf32>
    %169 = arith.addf %168, %38 : vector<2x1xf32>
    %170 = arith.addf %159, %165 : vector<2x1xf32>
    %cst_20 = arith.constant 5.000000e-01 : f32
    %171 = vector.broadcast %cst_20 : f32 to vector<2x1xf32>
    %172 = arith.mulf %171, %170 : vector<2x1xf32>
    %173 = math.tanh %172 : vector<2x1xf32>
    %cst_21 = arith.constant 1.000000e+00 : f32
    %174 = vector.broadcast %cst_21 : f32 to vector<2x1xf32>
    %175 = arith.addf %173, %174 : vector<2x1xf32>
    %cst_22 = arith.constant 5.000000e-01 : f32
    %176 = vector.broadcast %cst_22 : f32 to vector<2x1xf32>
    %177 = arith.mulf %176, %175 : vector<2x1xf32>
    %178 = arith.addf %161, %167 : vector<2x1xf32>
    %cst_23 = arith.constant 5.000000e-01 : f32
    %179 = vector.broadcast %cst_23 : f32 to vector<2x1xf32>
    %180 = arith.mulf %179, %178 : vector<2x1xf32>
    %181 = math.tanh %180 : vector<2x1xf32>
    %cst_24 = arith.constant 1.000000e+00 : f32
    %182 = vector.broadcast %cst_24 : f32 to vector<2x1xf32>
    %183 = arith.addf %181, %182 : vector<2x1xf32>
    %cst_25 = arith.constant 5.000000e-01 : f32
    %184 = vector.broadcast %cst_25 : f32 to vector<2x1xf32>
    %185 = arith.mulf %184, %183 : vector<2x1xf32>
    %186 = arith.mulf %177, %169 : vector<2x1xf32>
    %187 = arith.addf %163, %186 : vector<2x1xf32>
    %188 = math.tanh %187 : vector<2x1xf32>
    %cst_26 = arith.constant 1.000000e+00 : f32
    %189 = vector.broadcast %cst_26 : f32 to vector<2x1xf32>
    %190 = arith.subf %189, %185 : vector<2x1xf32>
    %191 = arith.mulf %190, %188 : vector<2x1xf32>
    %192 = arith.mulf %185, %91 : vector<2x1xf32>
    %193 = arith.addf %191, %192 : vector<2x1xf32>
    %194 = vector.extract_strided_slice %1 {offsets = [0, 0], sizes = [1, 16], strides = [1, 1]} : vector<17x16xf32> to vector<1x16xf32>
    %195 = vector.broadcast %193 : vector<2x1xf32> to vector<2x16xf32>
    %196 = vector.broadcast %194 : vector<1x16xf32> to vector<2x16xf32>
    %197 = arith.mulf %195, %196 : vector<2x16xf32>
    %198 = arith.addf %89, %197 : vector<2x16xf32>
    %199 = vector.extract_strided_slice %84 {offsets = [4, 0], sizes = [2, 1], strides = [1, 1]} : vector<32x1xf32> to vector<2x1xf32>
    %200 = vector.extract_strided_slice %85 {offsets = [4, 0], sizes = [2, 1], strides = [1, 1]} : vector<32x1xf32> to vector<2x1xf32>
    %201 = vector.extract_strided_slice %86 {offsets = [4, 0], sizes = [2, 1], strides = [1, 1]} : vector<32x1xf32> to vector<2x1xf32>
    %202 = arith.mulf %157, %5 : vector<2x1xf32>
    %203 = arith.addf %202, %14 : vector<2x1xf32>
    %204 = arith.mulf %157, %8 : vector<2x1xf32>
    %205 = arith.addf %204, %17 : vector<2x1xf32>
    %206 = arith.mulf %157, %11 : vector<2x1xf32>
    %207 = arith.addf %206, %20 : vector<2x1xf32>
    %208 = arith.addf %199, %203 : vector<2x1xf32>
    %cst_27 = arith.constant 5.000000e-01 : f32
    %209 = vector.broadcast %cst_27 : f32 to vector<2x1xf32>
    %210 = arith.mulf %209, %208 : vector<2x1xf32>
    %211 = math.tanh %210 : vector<2x1xf32>
    %cst_28 = arith.constant 1.000000e+00 : f32
    %212 = vector.broadcast %cst_28 : f32 to vector<2x1xf32>
    %213 = arith.addf %211, %212 : vector<2x1xf32>
    %cst_29 = arith.constant 5.000000e-01 : f32
    %214 = vector.broadcast %cst_29 : f32 to vector<2x1xf32>
    %215 = arith.mulf %214, %213 : vector<2x1xf32>
    %216 = arith.addf %200, %205 : vector<2x1xf32>
    %cst_30 = arith.constant 5.000000e-01 : f32
    %217 = vector.broadcast %cst_30 : f32 to vector<2x1xf32>
    %218 = arith.mulf %217, %216 : vector<2x1xf32>
    %219 = math.tanh %218 : vector<2x1xf32>
    %cst_31 = arith.constant 1.000000e+00 : f32
    %220 = vector.broadcast %cst_31 : f32 to vector<2x1xf32>
    %221 = arith.addf %219, %220 : vector<2x1xf32>
    %cst_32 = arith.constant 5.000000e-01 : f32
    %222 = vector.broadcast %cst_32 : f32 to vector<2x1xf32>
    %223 = arith.mulf %222, %221 : vector<2x1xf32>
    %224 = arith.mulf %215, %207 : vector<2x1xf32>
    %225 = arith.addf %201, %224 : vector<2x1xf32>
    %226 = math.tanh %225 : vector<2x1xf32>
    %cst_33 = arith.constant 1.000000e+00 : f32
    %227 = vector.broadcast %cst_33 : f32 to vector<2x1xf32>
    %228 = arith.subf %227, %223 : vector<2x1xf32>
    %229 = arith.mulf %228, %226 : vector<2x1xf32>
    %230 = arith.mulf %223, %157 : vector<2x1xf32>
    %231 = arith.addf %229, %230 : vector<2x1xf32>
    %232 = arith.mulf %157, %41 : vector<2x1xf32>
    %233 = arith.addf %232, %50 : vector<2x1xf32>
    %234 = arith.mulf %157, %44 : vector<2x1xf32>
    %235 = arith.addf %234, %53 : vector<2x1xf32>
    %236 = arith.mulf %157, %47 : vector<2x1xf32>
    %237 = arith.addf %236, %56 : vector<2x1xf32>
    %238 = arith.mulf %193, %23 : vector<2x1xf32>
    %239 = arith.addf %238, %32 : vector<2x1xf32>
    %240 = arith.mulf %193, %26 : vector<2x1xf32>
    %241 = arith.addf %240, %35 : vector<2x1xf32>
    %242 = arith.mulf %193, %29 : vector<2x1xf32>
    %243 = arith.addf %242, %38 : vector<2x1xf32>
    %244 = arith.addf %233, %239 : vector<2x1xf32>
    %cst_34 = arith.constant 5.000000e-01 : f32
    %245 = vector.broadcast %cst_34 : f32 to vector<2x1xf32>
    %246 = arith.mulf %245, %244 : vector<2x1xf32>
    %247 = math.tanh %246 : vector<2x1xf32>
    %cst_35 = arith.constant 1.000000e+00 : f32
    %248 = vector.broadcast %cst_35 : f32 to vector<2x1xf32>
    %249 = arith.addf %247, %248 : vector<2x1xf32>
    %cst_36 = arith.constant 5.000000e-01 : f32
    %250 = vector.broadcast %cst_36 : f32 to vector<2x1xf32>
    %251 = arith.mulf %250, %249 : vector<2x1xf32>
    %252 = arith.addf %235, %241 : vector<2x1xf32>
    %cst_37 = arith.constant 5.000000e-01 : f32
    %253 = vector.broadcast %cst_37 : f32 to vector<2x1xf32>
    %254 = arith.mulf %253, %252 : vector<2x1xf32>
    %255 = math.tanh %254 : vector<2x1xf32>
    %cst_38 = arith.constant 1.000000e+00 : f32
    %256 = vector.broadcast %cst_38 : f32 to vector<2x1xf32>
    %257 = arith.addf %255, %256 : vector<2x1xf32>
    %cst_39 = arith.constant 5.000000e-01 : f32
    %258 = vector.broadcast %cst_39 : f32 to vector<2x1xf32>
    %259 = arith.mulf %258, %257 : vector<2x1xf32>
    %260 = arith.mulf %251, %243 : vector<2x1xf32>
    %261 = arith.addf %237, %260 : vector<2x1xf32>
    %262 = math.tanh %261 : vector<2x1xf32>
    %cst_40 = arith.constant 1.000000e+00 : f32
    %263 = vector.broadcast %cst_40 : f32 to vector<2x1xf32>
    %264 = arith.subf %263, %259 : vector<2x1xf32>
    %265 = arith.mulf %264, %262 : vector<2x1xf32>
    %266 = arith.mulf %259, %193 : vector<2x1xf32>
    %267 = arith.addf %265, %266 : vector<2x1xf32>
    %268 = vector.extract_strided_slice %1 {offsets = [1, 0], sizes = [1, 16], strides = [1, 1]} : vector<17x16xf32> to vector<1x16xf32>
    %269 = vector.broadcast %267 : vector<2x1xf32> to vector<2x16xf32>
    %270 = vector.broadcast %268 : vector<1x16xf32> to vector<2x16xf32>
    %271 = arith.mulf %269, %270 : vector<2x16xf32>
    %272 = arith.addf %198, %271 : vector<2x16xf32>
    %273 = vector.extract_strided_slice %84 {offsets = [6, 0], sizes = [2, 1], strides = [1, 1]} : vector<32x1xf32> to vector<2x1xf32>
    %274 = vector.extract_strided_slice %85 {offsets = [6, 0], sizes = [2, 1], strides = [1, 1]} : vector<32x1xf32> to vector<2x1xf32>
    %275 = vector.extract_strided_slice %86 {offsets = [6, 0], sizes = [2, 1], strides = [1, 1]} : vector<32x1xf32> to vector<2x1xf32>
    %276 = arith.mulf %231, %5 : vector<2x1xf32>
    %277 = arith.addf %276, %14 : vector<2x1xf32>
    %278 = arith.mulf %231, %8 : vector<2x1xf32>
    %279 = arith.addf %278, %17 : vector<2x1xf32>
    %280 = arith.mulf %231, %11 : vector<2x1xf32>
    %281 = arith.addf %280, %20 : vector<2x1xf32>
    %282 = arith.addf %273, %277 : vector<2x1xf32>
    %cst_41 = arith.constant 5.000000e-01 : f32
    %283 = vector.broadcast %cst_41 : f32 to vector<2x1xf32>
    %284 = arith.mulf %283, %282 : vector<2x1xf32>
    %285 = math.tanh %284 : vector<2x1xf32>
    %cst_42 = arith.constant 1.000000e+00 : f32
    %286 = vector.broadcast %cst_42 : f32 to vector<2x1xf32>
    %287 = arith.addf %285, %286 : vector<2x1xf32>
    %cst_43 = arith.constant 5.000000e-01 : f32
    %288 = vector.broadcast %cst_43 : f32 to vector<2x1xf32>
    %289 = arith.mulf %288, %287 : vector<2x1xf32>
    %290 = arith.addf %274, %279 : vector<2x1xf32>
    %cst_44 = arith.constant 5.000000e-01 : f32
    %291 = vector.broadcast %cst_44 : f32 to vector<2x1xf32>
    %292 = arith.mulf %291, %290 : vector<2x1xf32>
    %293 = math.tanh %292 : vector<2x1xf32>
    %cst_45 = arith.constant 1.000000e+00 : f32
    %294 = vector.broadcast %cst_45 : f32 to vector<2x1xf32>
    %295 = arith.addf %293, %294 : vector<2x1xf32>
    %cst_46 = arith.constant 5.000000e-01 : f32
    %296 = vector.broadcast %cst_46 : f32 to vector<2x1xf32>
    %297 = arith.mulf %296, %295 : vector<2x1xf32>
    %298 = arith.mulf %289, %281 : vector<2x1xf32>
    %299 = arith.addf %275, %298 : vector<2x1xf32>
    %300 = math.tanh %299 : vector<2x1xf32>
    %cst_47 = arith.constant 1.000000e+00 : f32
    %301 = vector.broadcast %cst_47 : f32 to vector<2x1xf32>
    %302 = arith.subf %301, %297 : vector<2x1xf32>
    %303 = arith.mulf %302, %300 : vector<2x1xf32>
    %304 = arith.mulf %297, %231 : vector<2x1xf32>
    %305 = arith.addf %303, %304 : vector<2x1xf32>
    %306 = arith.mulf %231, %41 : vector<2x1xf32>
    %307 = arith.addf %306, %50 : vector<2x1xf32>
    %308 = arith.mulf %231, %44 : vector<2x1xf32>
    %309 = arith.addf %308, %53 : vector<2x1xf32>
    %310 = arith.mulf %231, %47 : vector<2x1xf32>
    %311 = arith.addf %310, %56 : vector<2x1xf32>
    %312 = arith.mulf %267, %23 : vector<2x1xf32>
    %313 = arith.addf %312, %32 : vector<2x1xf32>
    %314 = arith.mulf %267, %26 : vector<2x1xf32>
    %315 = arith.addf %314, %35 : vector<2x1xf32>
    %316 = arith.mulf %267, %29 : vector<2x1xf32>
    %317 = arith.addf %316, %38 : vector<2x1xf32>
    %318 = arith.addf %307, %313 : vector<2x1xf32>
    %cst_48 = arith.constant 5.000000e-01 : f32
    %319 = vector.broadcast %cst_48 : f32 to vector<2x1xf32>
    %320 = arith.mulf %319, %318 : vector<2x1xf32>
    %321 = math.tanh %320 : vector<2x1xf32>
    %cst_49 = arith.constant 1.000000e+00 : f32
    %322 = vector.broadcast %cst_49 : f32 to vector<2x1xf32>
    %323 = arith.addf %321, %322 : vector<2x1xf32>
    %cst_50 = arith.constant 5.000000e-01 : f32
    %324 = vector.broadcast %cst_50 : f32 to vector<2x1xf32>
    %325 = arith.mulf %324, %323 : vector<2x1xf32>
    %326 = arith.addf %309, %315 : vector<2x1xf32>
    %cst_51 = arith.constant 5.000000e-01 : f32
    %327 = vector.broadcast %cst_51 : f32 to vector<2x1xf32>
    %328 = arith.mulf %327, %326 : vector<2x1xf32>
    %329 = math.tanh %328 : vector<2x1xf32>
    %cst_52 = arith.constant 1.000000e+00 : f32
    %330 = vector.broadcast %cst_52 : f32 to vector<2x1xf32>
    %331 = arith.addf %329, %330 : vector<2x1xf32>
    %cst_53 = arith.constant 5.000000e-01 : f32
    %332 = vector.broadcast %cst_53 : f32 to vector<2x1xf32>
    %333 = arith.mulf %332, %331 : vector<2x1xf32>
    %334 = arith.mulf %325, %317 : vector<2x1xf32>
    %335 = arith.addf %311, %334 : vector<2x1xf32>
    %336 = math.tanh %335 : vector<2x1xf32>
    %cst_54 = arith.constant 1.000000e+00 : f32
    %337 = vector.broadcast %cst_54 : f32 to vector<2x1xf32>
    %338 = arith.subf %337, %333 : vector<2x1xf32>
    %339 = arith.mulf %338, %336 : vector<2x1xf32>
    %340 = arith.mulf %333, %267 : vector<2x1xf32>
    %341 = arith.addf %339, %340 : vector<2x1xf32>
    %342 = vector.extract_strided_slice %1 {offsets = [2, 0], sizes = [1, 16], strides = [1, 1]} : vector<17x16xf32> to vector<1x16xf32>
    %343 = vector.broadcast %341 : vector<2x1xf32> to vector<2x16xf32>
    %344 = vector.broadcast %342 : vector<1x16xf32> to vector<2x16xf32>
    %345 = arith.mulf %343, %344 : vector<2x16xf32>
    %346 = arith.addf %272, %345 : vector<2x16xf32>
    %347 = vector.extract_strided_slice %84 {offsets = [8, 0], sizes = [2, 1], strides = [1, 1]} : vector<32x1xf32> to vector<2x1xf32>
    %348 = vector.extract_strided_slice %85 {offsets = [8, 0], sizes = [2, 1], strides = [1, 1]} : vector<32x1xf32> to vector<2x1xf32>
    %349 = vector.extract_strided_slice %86 {offsets = [8, 0], sizes = [2, 1], strides = [1, 1]} : vector<32x1xf32> to vector<2x1xf32>
    %350 = arith.mulf %305, %5 : vector<2x1xf32>
    %351 = arith.addf %350, %14 : vector<2x1xf32>
    %352 = arith.mulf %305, %8 : vector<2x1xf32>
    %353 = arith.addf %352, %17 : vector<2x1xf32>
    %354 = arith.mulf %305, %11 : vector<2x1xf32>
    %355 = arith.addf %354, %20 : vector<2x1xf32>
    %356 = arith.addf %347, %351 : vector<2x1xf32>
    %cst_55 = arith.constant 5.000000e-01 : f32
    %357 = vector.broadcast %cst_55 : f32 to vector<2x1xf32>
    %358 = arith.mulf %357, %356 : vector<2x1xf32>
    %359 = math.tanh %358 : vector<2x1xf32>
    %cst_56 = arith.constant 1.000000e+00 : f32
    %360 = vector.broadcast %cst_56 : f32 to vector<2x1xf32>
    %361 = arith.addf %359, %360 : vector<2x1xf32>
    %cst_57 = arith.constant 5.000000e-01 : f32
    %362 = vector.broadcast %cst_57 : f32 to vector<2x1xf32>
    %363 = arith.mulf %362, %361 : vector<2x1xf32>
    %364 = arith.addf %348, %353 : vector<2x1xf32>
    %cst_58 = arith.constant 5.000000e-01 : f32
    %365 = vector.broadcast %cst_58 : f32 to vector<2x1xf32>
    %366 = arith.mulf %365, %364 : vector<2x1xf32>
    %367 = math.tanh %366 : vector<2x1xf32>
    %cst_59 = arith.constant 1.000000e+00 : f32
    %368 = vector.broadcast %cst_59 : f32 to vector<2x1xf32>
    %369 = arith.addf %367, %368 : vector<2x1xf32>
    %cst_60 = arith.constant 5.000000e-01 : f32
    %370 = vector.broadcast %cst_60 : f32 to vector<2x1xf32>
    %371 = arith.mulf %370, %369 : vector<2x1xf32>
    %372 = arith.mulf %363, %355 : vector<2x1xf32>
    %373 = arith.addf %349, %372 : vector<2x1xf32>
    %374 = math.tanh %373 : vector<2x1xf32>
    %cst_61 = arith.constant 1.000000e+00 : f32
    %375 = vector.broadcast %cst_61 : f32 to vector<2x1xf32>
    %376 = arith.subf %375, %371 : vector<2x1xf32>
    %377 = arith.mulf %376, %374 : vector<2x1xf32>
    %378 = arith.mulf %371, %305 : vector<2x1xf32>
    %379 = arith.addf %377, %378 : vector<2x1xf32>
    %380 = arith.mulf %305, %41 : vector<2x1xf32>
    %381 = arith.addf %380, %50 : vector<2x1xf32>
    %382 = arith.mulf %305, %44 : vector<2x1xf32>
    %383 = arith.addf %382, %53 : vector<2x1xf32>
    %384 = arith.mulf %305, %47 : vector<2x1xf32>
    %385 = arith.addf %384, %56 : vector<2x1xf32>
    %386 = arith.mulf %341, %23 : vector<2x1xf32>
    %387 = arith.addf %386, %32 : vector<2x1xf32>
    %388 = arith.mulf %341, %26 : vector<2x1xf32>
    %389 = arith.addf %388, %35 : vector<2x1xf32>
    %390 = arith.mulf %341, %29 : vector<2x1xf32>
    %391 = arith.addf %390, %38 : vector<2x1xf32>
    %392 = arith.addf %381, %387 : vector<2x1xf32>
    %cst_62 = arith.constant 5.000000e-01 : f32
    %393 = vector.broadcast %cst_62 : f32 to vector<2x1xf32>
    %394 = arith.mulf %393, %392 : vector<2x1xf32>
    %395 = math.tanh %394 : vector<2x1xf32>
    %cst_63 = arith.constant 1.000000e+00 : f32
    %396 = vector.broadcast %cst_63 : f32 to vector<2x1xf32>
    %397 = arith.addf %395, %396 : vector<2x1xf32>
    %cst_64 = arith.constant 5.000000e-01 : f32
    %398 = vector.broadcast %cst_64 : f32 to vector<2x1xf32>
    %399 = arith.mulf %398, %397 : vector<2x1xf32>
    %400 = arith.addf %383, %389 : vector<2x1xf32>
    %cst_65 = arith.constant 5.000000e-01 : f32
    %401 = vector.broadcast %cst_65 : f32 to vector<2x1xf32>
    %402 = arith.mulf %401, %400 : vector<2x1xf32>
    %403 = math.tanh %402 : vector<2x1xf32>
    %cst_66 = arith.constant 1.000000e+00 : f32
    %404 = vector.broadcast %cst_66 : f32 to vector<2x1xf32>
    %405 = arith.addf %403, %404 : vector<2x1xf32>
    %cst_67 = arith.constant 5.000000e-01 : f32
    %406 = vector.broadcast %cst_67 : f32 to vector<2x1xf32>
    %407 = arith.mulf %406, %405 : vector<2x1xf32>
    %408 = arith.mulf %399, %391 : vector<2x1xf32>
    %409 = arith.addf %385, %408 : vector<2x1xf32>
    %410 = math.tanh %409 : vector<2x1xf32>
    %cst_68 = arith.constant 1.000000e+00 : f32
    %411 = vector.broadcast %cst_68 : f32 to vector<2x1xf32>
    %412 = arith.subf %411, %407 : vector<2x1xf32>
    %413 = arith.mulf %412, %410 : vector<2x1xf32>
    %414 = arith.mulf %407, %341 : vector<2x1xf32>
    %415 = arith.addf %413, %414 : vector<2x1xf32>
    %416 = vector.extract_strided_slice %1 {offsets = [3, 0], sizes = [1, 16], strides = [1, 1]} : vector<17x16xf32> to vector<1x16xf32>
    %417 = vector.broadcast %415 : vector<2x1xf32> to vector<2x16xf32>
    %418 = vector.broadcast %416 : vector<1x16xf32> to vector<2x16xf32>
    %419 = arith.mulf %417, %418 : vector<2x16xf32>
    %420 = arith.addf %346, %419 : vector<2x16xf32>
    %421 = vector.extract_strided_slice %84 {offsets = [10, 0], sizes = [2, 1], strides = [1, 1]} : vector<32x1xf32> to vector<2x1xf32>
    %422 = vector.extract_strided_slice %85 {offsets = [10, 0], sizes = [2, 1], strides = [1, 1]} : vector<32x1xf32> to vector<2x1xf32>
    %423 = vector.extract_strided_slice %86 {offsets = [10, 0], sizes = [2, 1], strides = [1, 1]} : vector<32x1xf32> to vector<2x1xf32>
    %424 = arith.mulf %379, %5 : vector<2x1xf32>
    %425 = arith.addf %424, %14 : vector<2x1xf32>
    %426 = arith.mulf %379, %8 : vector<2x1xf32>
    %427 = arith.addf %426, %17 : vector<2x1xf32>
    %428 = arith.mulf %379, %11 : vector<2x1xf32>
    %429 = arith.addf %428, %20 : vector<2x1xf32>
    %430 = arith.addf %421, %425 : vector<2x1xf32>
    %cst_69 = arith.constant 5.000000e-01 : f32
    %431 = vector.broadcast %cst_69 : f32 to vector<2x1xf32>
    %432 = arith.mulf %431, %430 : vector<2x1xf32>
    %433 = math.tanh %432 : vector<2x1xf32>
    %cst_70 = arith.constant 1.000000e+00 : f32
    %434 = vector.broadcast %cst_70 : f32 to vector<2x1xf32>
    %435 = arith.addf %433, %434 : vector<2x1xf32>
    %cst_71 = arith.constant 5.000000e-01 : f32
    %436 = vector.broadcast %cst_71 : f32 to vector<2x1xf32>
    %437 = arith.mulf %436, %435 : vector<2x1xf32>
    %438 = arith.addf %422, %427 : vector<2x1xf32>
    %cst_72 = arith.constant 5.000000e-01 : f32
    %439 = vector.broadcast %cst_72 : f32 to vector<2x1xf32>
    %440 = arith.mulf %439, %438 : vector<2x1xf32>
    %441 = math.tanh %440 : vector<2x1xf32>
    %cst_73 = arith.constant 1.000000e+00 : f32
    %442 = vector.broadcast %cst_73 : f32 to vector<2x1xf32>
    %443 = arith.addf %441, %442 : vector<2x1xf32>
    %cst_74 = arith.constant 5.000000e-01 : f32
    %444 = vector.broadcast %cst_74 : f32 to vector<2x1xf32>
    %445 = arith.mulf %444, %443 : vector<2x1xf32>
    %446 = arith.mulf %437, %429 : vector<2x1xf32>
    %447 = arith.addf %423, %446 : vector<2x1xf32>
    %448 = math.tanh %447 : vector<2x1xf32>
    %cst_75 = arith.constant 1.000000e+00 : f32
    %449 = vector.broadcast %cst_75 : f32 to vector<2x1xf32>
    %450 = arith.subf %449, %445 : vector<2x1xf32>
    %451 = arith.mulf %450, %448 : vector<2x1xf32>
    %452 = arith.mulf %445, %379 : vector<2x1xf32>
    %453 = arith.addf %451, %452 : vector<2x1xf32>
    %454 = arith.mulf %379, %41 : vector<2x1xf32>
    %455 = arith.addf %454, %50 : vector<2x1xf32>
    %456 = arith.mulf %379, %44 : vector<2x1xf32>
    %457 = arith.addf %456, %53 : vector<2x1xf32>
    %458 = arith.mulf %379, %47 : vector<2x1xf32>
    %459 = arith.addf %458, %56 : vector<2x1xf32>
    %460 = arith.mulf %415, %23 : vector<2x1xf32>
    %461 = arith.addf %460, %32 : vector<2x1xf32>
    %462 = arith.mulf %415, %26 : vector<2x1xf32>
    %463 = arith.addf %462, %35 : vector<2x1xf32>
    %464 = arith.mulf %415, %29 : vector<2x1xf32>
    %465 = arith.addf %464, %38 : vector<2x1xf32>
    %466 = arith.addf %455, %461 : vector<2x1xf32>
    %cst_76 = arith.constant 5.000000e-01 : f32
    %467 = vector.broadcast %cst_76 : f32 to vector<2x1xf32>
    %468 = arith.mulf %467, %466 : vector<2x1xf32>
    %469 = math.tanh %468 : vector<2x1xf32>
    %cst_77 = arith.constant 1.000000e+00 : f32
    %470 = vector.broadcast %cst_77 : f32 to vector<2x1xf32>
    %471 = arith.addf %469, %470 : vector<2x1xf32>
    %cst_78 = arith.constant 5.000000e-01 : f32
    %472 = vector.broadcast %cst_78 : f32 to vector<2x1xf32>
    %473 = arith.mulf %472, %471 : vector<2x1xf32>
    %474 = arith.addf %457, %463 : vector<2x1xf32>
    %cst_79 = arith.constant 5.000000e-01 : f32
    %475 = vector.broadcast %cst_79 : f32 to vector<2x1xf32>
    %476 = arith.mulf %475, %474 : vector<2x1xf32>
    %477 = math.tanh %476 : vector<2x1xf32>
    %cst_80 = arith.constant 1.000000e+00 : f32
    %478 = vector.broadcast %cst_80 : f32 to vector<2x1xf32>
    %479 = arith.addf %477, %478 : vector<2x1xf32>
    %cst_81 = arith.constant 5.000000e-01 : f32
    %480 = vector.broadcast %cst_81 : f32 to vector<2x1xf32>
    %481 = arith.mulf %480, %479 : vector<2x1xf32>
    %482 = arith.mulf %473, %465 : vector<2x1xf32>
    %483 = arith.addf %459, %482 : vector<2x1xf32>
    %484 = math.tanh %483 : vector<2x1xf32>
    %cst_82 = arith.constant 1.000000e+00 : f32
    %485 = vector.broadcast %cst_82 : f32 to vector<2x1xf32>
    %486 = arith.subf %485, %481 : vector<2x1xf32>
    %487 = arith.mulf %486, %484 : vector<2x1xf32>
    %488 = arith.mulf %481, %415 : vector<2x1xf32>
    %489 = arith.addf %487, %488 : vector<2x1xf32>
    %490 = vector.extract_strided_slice %1 {offsets = [4, 0], sizes = [1, 16], strides = [1, 1]} : vector<17x16xf32> to vector<1x16xf32>
    %491 = vector.broadcast %489 : vector<2x1xf32> to vector<2x16xf32>
    %492 = vector.broadcast %490 : vector<1x16xf32> to vector<2x16xf32>
    %493 = arith.mulf %491, %492 : vector<2x16xf32>
    %494 = arith.addf %420, %493 : vector<2x16xf32>
    %495 = vector.extract_strided_slice %84 {offsets = [12, 0], sizes = [2, 1], strides = [1, 1]} : vector<32x1xf32> to vector<2x1xf32>
    %496 = vector.extract_strided_slice %85 {offsets = [12, 0], sizes = [2, 1], strides = [1, 1]} : vector<32x1xf32> to vector<2x1xf32>
    %497 = vector.extract_strided_slice %86 {offsets = [12, 0], sizes = [2, 1], strides = [1, 1]} : vector<32x1xf32> to vector<2x1xf32>
    %498 = arith.mulf %453, %5 : vector<2x1xf32>
    %499 = arith.addf %498, %14 : vector<2x1xf32>
    %500 = arith.mulf %453, %8 : vector<2x1xf32>
    %501 = arith.addf %500, %17 : vector<2x1xf32>
    %502 = arith.mulf %453, %11 : vector<2x1xf32>
    %503 = arith.addf %502, %20 : vector<2x1xf32>
    %504 = arith.addf %495, %499 : vector<2x1xf32>
    %cst_83 = arith.constant 5.000000e-01 : f32
    %505 = vector.broadcast %cst_83 : f32 to vector<2x1xf32>
    %506 = arith.mulf %505, %504 : vector<2x1xf32>
    %507 = math.tanh %506 : vector<2x1xf32>
    %cst_84 = arith.constant 1.000000e+00 : f32
    %508 = vector.broadcast %cst_84 : f32 to vector<2x1xf32>
    %509 = arith.addf %507, %508 : vector<2x1xf32>
    %cst_85 = arith.constant 5.000000e-01 : f32
    %510 = vector.broadcast %cst_85 : f32 to vector<2x1xf32>
    %511 = arith.mulf %510, %509 : vector<2x1xf32>
    %512 = arith.addf %496, %501 : vector<2x1xf32>
    %cst_86 = arith.constant 5.000000e-01 : f32
    %513 = vector.broadcast %cst_86 : f32 to vector<2x1xf32>
    %514 = arith.mulf %513, %512 : vector<2x1xf32>
    %515 = math.tanh %514 : vector<2x1xf32>
    %cst_87 = arith.constant 1.000000e+00 : f32
    %516 = vector.broadcast %cst_87 : f32 to vector<2x1xf32>
    %517 = arith.addf %515, %516 : vector<2x1xf32>
    %cst_88 = arith.constant 5.000000e-01 : f32
    %518 = vector.broadcast %cst_88 : f32 to vector<2x1xf32>
    %519 = arith.mulf %518, %517 : vector<2x1xf32>
    %520 = arith.mulf %511, %503 : vector<2x1xf32>
    %521 = arith.addf %497, %520 : vector<2x1xf32>
    %522 = math.tanh %521 : vector<2x1xf32>
    %cst_89 = arith.constant 1.000000e+00 : f32
    %523 = vector.broadcast %cst_89 : f32 to vector<2x1xf32>
    %524 = arith.subf %523, %519 : vector<2x1xf32>
    %525 = arith.mulf %524, %522 : vector<2x1xf32>
    %526 = arith.mulf %519, %453 : vector<2x1xf32>
    %527 = arith.addf %525, %526 : vector<2x1xf32>
    %528 = arith.mulf %453, %41 : vector<2x1xf32>
    %529 = arith.addf %528, %50 : vector<2x1xf32>
    %530 = arith.mulf %453, %44 : vector<2x1xf32>
    %531 = arith.addf %530, %53 : vector<2x1xf32>
    %532 = arith.mulf %453, %47 : vector<2x1xf32>
    %533 = arith.addf %532, %56 : vector<2x1xf32>
    %534 = arith.mulf %489, %23 : vector<2x1xf32>
    %535 = arith.addf %534, %32 : vector<2x1xf32>
    %536 = arith.mulf %489, %26 : vector<2x1xf32>
    %537 = arith.addf %536, %35 : vector<2x1xf32>
    %538 = arith.mulf %489, %29 : vector<2x1xf32>
    %539 = arith.addf %538, %38 : vector<2x1xf32>
    %540 = arith.addf %529, %535 : vector<2x1xf32>
    %cst_90 = arith.constant 5.000000e-01 : f32
    %541 = vector.broadcast %cst_90 : f32 to vector<2x1xf32>
    %542 = arith.mulf %541, %540 : vector<2x1xf32>
    %543 = math.tanh %542 : vector<2x1xf32>
    %cst_91 = arith.constant 1.000000e+00 : f32
    %544 = vector.broadcast %cst_91 : f32 to vector<2x1xf32>
    %545 = arith.addf %543, %544 : vector<2x1xf32>
    %cst_92 = arith.constant 5.000000e-01 : f32
    %546 = vector.broadcast %cst_92 : f32 to vector<2x1xf32>
    %547 = arith.mulf %546, %545 : vector<2x1xf32>
    %548 = arith.addf %531, %537 : vector<2x1xf32>
    %cst_93 = arith.constant 5.000000e-01 : f32
    %549 = vector.broadcast %cst_93 : f32 to vector<2x1xf32>
    %550 = arith.mulf %549, %548 : vector<2x1xf32>
    %551 = math.tanh %550 : vector<2x1xf32>
    %cst_94 = arith.constant 1.000000e+00 : f32
    %552 = vector.broadcast %cst_94 : f32 to vector<2x1xf32>
    %553 = arith.addf %551, %552 : vector<2x1xf32>
    %cst_95 = arith.constant 5.000000e-01 : f32
    %554 = vector.broadcast %cst_95 : f32 to vector<2x1xf32>
    %555 = arith.mulf %554, %553 : vector<2x1xf32>
    %556 = arith.mulf %547, %539 : vector<2x1xf32>
    %557 = arith.addf %533, %556 : vector<2x1xf32>
    %558 = math.tanh %557 : vector<2x1xf32>
    %cst_96 = arith.constant 1.000000e+00 : f32
    %559 = vector.broadcast %cst_96 : f32 to vector<2x1xf32>
    %560 = arith.subf %559, %555 : vector<2x1xf32>
    %561 = arith.mulf %560, %558 : vector<2x1xf32>
    %562 = arith.mulf %555, %489 : vector<2x1xf32>
    %563 = arith.addf %561, %562 : vector<2x1xf32>
    %564 = vector.extract_strided_slice %1 {offsets = [5, 0], sizes = [1, 16], strides = [1, 1]} : vector<17x16xf32> to vector<1x16xf32>
    %565 = vector.broadcast %563 : vector<2x1xf32> to vector<2x16xf32>
    %566 = vector.broadcast %564 : vector<1x16xf32> to vector<2x16xf32>
    %567 = arith.mulf %565, %566 : vector<2x16xf32>
    %568 = arith.addf %494, %567 : vector<2x16xf32>
    %569 = vector.extract_strided_slice %84 {offsets = [14, 0], sizes = [2, 1], strides = [1, 1]} : vector<32x1xf32> to vector<2x1xf32>
    %570 = vector.extract_strided_slice %85 {offsets = [14, 0], sizes = [2, 1], strides = [1, 1]} : vector<32x1xf32> to vector<2x1xf32>
    %571 = vector.extract_strided_slice %86 {offsets = [14, 0], sizes = [2, 1], strides = [1, 1]} : vector<32x1xf32> to vector<2x1xf32>
    %572 = arith.mulf %527, %5 : vector<2x1xf32>
    %573 = arith.addf %572, %14 : vector<2x1xf32>
    %574 = arith.mulf %527, %8 : vector<2x1xf32>
    %575 = arith.addf %574, %17 : vector<2x1xf32>
    %576 = arith.mulf %527, %11 : vector<2x1xf32>
    %577 = arith.addf %576, %20 : vector<2x1xf32>
    %578 = arith.addf %569, %573 : vector<2x1xf32>
    %cst_97 = arith.constant 5.000000e-01 : f32
    %579 = vector.broadcast %cst_97 : f32 to vector<2x1xf32>
    %580 = arith.mulf %579, %578 : vector<2x1xf32>
    %581 = math.tanh %580 : vector<2x1xf32>
    %cst_98 = arith.constant 1.000000e+00 : f32
    %582 = vector.broadcast %cst_98 : f32 to vector<2x1xf32>
    %583 = arith.addf %581, %582 : vector<2x1xf32>
    %cst_99 = arith.constant 5.000000e-01 : f32
    %584 = vector.broadcast %cst_99 : f32 to vector<2x1xf32>
    %585 = arith.mulf %584, %583 : vector<2x1xf32>
    %586 = arith.addf %570, %575 : vector<2x1xf32>
    %cst_100 = arith.constant 5.000000e-01 : f32
    %587 = vector.broadcast %cst_100 : f32 to vector<2x1xf32>
    %588 = arith.mulf %587, %586 : vector<2x1xf32>
    %589 = math.tanh %588 : vector<2x1xf32>
    %cst_101 = arith.constant 1.000000e+00 : f32
    %590 = vector.broadcast %cst_101 : f32 to vector<2x1xf32>
    %591 = arith.addf %589, %590 : vector<2x1xf32>
    %cst_102 = arith.constant 5.000000e-01 : f32
    %592 = vector.broadcast %cst_102 : f32 to vector<2x1xf32>
    %593 = arith.mulf %592, %591 : vector<2x1xf32>
    %594 = arith.mulf %585, %577 : vector<2x1xf32>
    %595 = arith.addf %571, %594 : vector<2x1xf32>
    %596 = math.tanh %595 : vector<2x1xf32>
    %cst_103 = arith.constant 1.000000e+00 : f32
    %597 = vector.broadcast %cst_103 : f32 to vector<2x1xf32>
    %598 = arith.subf %597, %593 : vector<2x1xf32>
    %599 = arith.mulf %598, %596 : vector<2x1xf32>
    %600 = arith.mulf %593, %527 : vector<2x1xf32>
    %601 = arith.addf %599, %600 : vector<2x1xf32>
    %602 = arith.mulf %527, %41 : vector<2x1xf32>
    %603 = arith.addf %602, %50 : vector<2x1xf32>
    %604 = arith.mulf %527, %44 : vector<2x1xf32>
    %605 = arith.addf %604, %53 : vector<2x1xf32>
    %606 = arith.mulf %527, %47 : vector<2x1xf32>
    %607 = arith.addf %606, %56 : vector<2x1xf32>
    %608 = arith.mulf %563, %23 : vector<2x1xf32>
    %609 = arith.addf %608, %32 : vector<2x1xf32>
    %610 = arith.mulf %563, %26 : vector<2x1xf32>
    %611 = arith.addf %610, %35 : vector<2x1xf32>
    %612 = arith.mulf %563, %29 : vector<2x1xf32>
    %613 = arith.addf %612, %38 : vector<2x1xf32>
    %614 = arith.addf %603, %609 : vector<2x1xf32>
    %cst_104 = arith.constant 5.000000e-01 : f32
    %615 = vector.broadcast %cst_104 : f32 to vector<2x1xf32>
    %616 = arith.mulf %615, %614 : vector<2x1xf32>
    %617 = math.tanh %616 : vector<2x1xf32>
    %cst_105 = arith.constant 1.000000e+00 : f32
    %618 = vector.broadcast %cst_105 : f32 to vector<2x1xf32>
    %619 = arith.addf %617, %618 : vector<2x1xf32>
    %cst_106 = arith.constant 5.000000e-01 : f32
    %620 = vector.broadcast %cst_106 : f32 to vector<2x1xf32>
    %621 = arith.mulf %620, %619 : vector<2x1xf32>
    %622 = arith.addf %605, %611 : vector<2x1xf32>
    %cst_107 = arith.constant 5.000000e-01 : f32
    %623 = vector.broadcast %cst_107 : f32 to vector<2x1xf32>
    %624 = arith.mulf %623, %622 : vector<2x1xf32>
    %625 = math.tanh %624 : vector<2x1xf32>
    %cst_108 = arith.constant 1.000000e+00 : f32
    %626 = vector.broadcast %cst_108 : f32 to vector<2x1xf32>
    %627 = arith.addf %625, %626 : vector<2x1xf32>
    %cst_109 = arith.constant 5.000000e-01 : f32
    %628 = vector.broadcast %cst_109 : f32 to vector<2x1xf32>
    %629 = arith.mulf %628, %627 : vector<2x1xf32>
    %630 = arith.mulf %621, %613 : vector<2x1xf32>
    %631 = arith.addf %607, %630 : vector<2x1xf32>
    %632 = math.tanh %631 : vector<2x1xf32>
    %cst_110 = arith.constant 1.000000e+00 : f32
    %633 = vector.broadcast %cst_110 : f32 to vector<2x1xf32>
    %634 = arith.subf %633, %629 : vector<2x1xf32>
    %635 = arith.mulf %634, %632 : vector<2x1xf32>
    %636 = arith.mulf %629, %563 : vector<2x1xf32>
    %637 = arith.addf %635, %636 : vector<2x1xf32>
    %638 = vector.extract_strided_slice %1 {offsets = [6, 0], sizes = [1, 16], strides = [1, 1]} : vector<17x16xf32> to vector<1x16xf32>
    %639 = vector.broadcast %637 : vector<2x1xf32> to vector<2x16xf32>
    %640 = vector.broadcast %638 : vector<1x16xf32> to vector<2x16xf32>
    %641 = arith.mulf %639, %640 : vector<2x16xf32>
    %642 = arith.addf %568, %641 : vector<2x16xf32>
    %643 = vector.extract_strided_slice %84 {offsets = [16, 0], sizes = [2, 1], strides = [1, 1]} : vector<32x1xf32> to vector<2x1xf32>
    %644 = vector.extract_strided_slice %85 {offsets = [16, 0], sizes = [2, 1], strides = [1, 1]} : vector<32x1xf32> to vector<2x1xf32>
    %645 = vector.extract_strided_slice %86 {offsets = [16, 0], sizes = [2, 1], strides = [1, 1]} : vector<32x1xf32> to vector<2x1xf32>
    %646 = arith.mulf %601, %5 : vector<2x1xf32>
    %647 = arith.addf %646, %14 : vector<2x1xf32>
    %648 = arith.mulf %601, %8 : vector<2x1xf32>
    %649 = arith.addf %648, %17 : vector<2x1xf32>
    %650 = arith.mulf %601, %11 : vector<2x1xf32>
    %651 = arith.addf %650, %20 : vector<2x1xf32>
    %652 = arith.addf %643, %647 : vector<2x1xf32>
    %cst_111 = arith.constant 5.000000e-01 : f32
    %653 = vector.broadcast %cst_111 : f32 to vector<2x1xf32>
    %654 = arith.mulf %653, %652 : vector<2x1xf32>
    %655 = math.tanh %654 : vector<2x1xf32>
    %cst_112 = arith.constant 1.000000e+00 : f32
    %656 = vector.broadcast %cst_112 : f32 to vector<2x1xf32>
    %657 = arith.addf %655, %656 : vector<2x1xf32>
    %cst_113 = arith.constant 5.000000e-01 : f32
    %658 = vector.broadcast %cst_113 : f32 to vector<2x1xf32>
    %659 = arith.mulf %658, %657 : vector<2x1xf32>
    %660 = arith.addf %644, %649 : vector<2x1xf32>
    %cst_114 = arith.constant 5.000000e-01 : f32
    %661 = vector.broadcast %cst_114 : f32 to vector<2x1xf32>
    %662 = arith.mulf %661, %660 : vector<2x1xf32>
    %663 = math.tanh %662 : vector<2x1xf32>
    %cst_115 = arith.constant 1.000000e+00 : f32
    %664 = vector.broadcast %cst_115 : f32 to vector<2x1xf32>
    %665 = arith.addf %663, %664 : vector<2x1xf32>
    %cst_116 = arith.constant 5.000000e-01 : f32
    %666 = vector.broadcast %cst_116 : f32 to vector<2x1xf32>
    %667 = arith.mulf %666, %665 : vector<2x1xf32>
    %668 = arith.mulf %659, %651 : vector<2x1xf32>
    %669 = arith.addf %645, %668 : vector<2x1xf32>
    %670 = math.tanh %669 : vector<2x1xf32>
    %cst_117 = arith.constant 1.000000e+00 : f32
    %671 = vector.broadcast %cst_117 : f32 to vector<2x1xf32>
    %672 = arith.subf %671, %667 : vector<2x1xf32>
    %673 = arith.mulf %672, %670 : vector<2x1xf32>
    %674 = arith.mulf %667, %601 : vector<2x1xf32>
    %675 = arith.addf %673, %674 : vector<2x1xf32>
    %676 = arith.mulf %601, %41 : vector<2x1xf32>
    %677 = arith.addf %676, %50 : vector<2x1xf32>
    %678 = arith.mulf %601, %44 : vector<2x1xf32>
    %679 = arith.addf %678, %53 : vector<2x1xf32>
    %680 = arith.mulf %601, %47 : vector<2x1xf32>
    %681 = arith.addf %680, %56 : vector<2x1xf32>
    %682 = arith.mulf %637, %23 : vector<2x1xf32>
    %683 = arith.addf %682, %32 : vector<2x1xf32>
    %684 = arith.mulf %637, %26 : vector<2x1xf32>
    %685 = arith.addf %684, %35 : vector<2x1xf32>
    %686 = arith.mulf %637, %29 : vector<2x1xf32>
    %687 = arith.addf %686, %38 : vector<2x1xf32>
    %688 = arith.addf %677, %683 : vector<2x1xf32>
    %cst_118 = arith.constant 5.000000e-01 : f32
    %689 = vector.broadcast %cst_118 : f32 to vector<2x1xf32>
    %690 = arith.mulf %689, %688 : vector<2x1xf32>
    %691 = math.tanh %690 : vector<2x1xf32>
    %cst_119 = arith.constant 1.000000e+00 : f32
    %692 = vector.broadcast %cst_119 : f32 to vector<2x1xf32>
    %693 = arith.addf %691, %692 : vector<2x1xf32>
    %cst_120 = arith.constant 5.000000e-01 : f32
    %694 = vector.broadcast %cst_120 : f32 to vector<2x1xf32>
    %695 = arith.mulf %694, %693 : vector<2x1xf32>
    %696 = arith.addf %679, %685 : vector<2x1xf32>
    %cst_121 = arith.constant 5.000000e-01 : f32
    %697 = vector.broadcast %cst_121 : f32 to vector<2x1xf32>
    %698 = arith.mulf %697, %696 : vector<2x1xf32>
    %699 = math.tanh %698 : vector<2x1xf32>
    %cst_122 = arith.constant 1.000000e+00 : f32
    %700 = vector.broadcast %cst_122 : f32 to vector<2x1xf32>
    %701 = arith.addf %699, %700 : vector<2x1xf32>
    %cst_123 = arith.constant 5.000000e-01 : f32
    %702 = vector.broadcast %cst_123 : f32 to vector<2x1xf32>
    %703 = arith.mulf %702, %701 : vector<2x1xf32>
    %704 = arith.mulf %695, %687 : vector<2x1xf32>
    %705 = arith.addf %681, %704 : vector<2x1xf32>
    %706 = math.tanh %705 : vector<2x1xf32>
    %cst_124 = arith.constant 1.000000e+00 : f32
    %707 = vector.broadcast %cst_124 : f32 to vector<2x1xf32>
    %708 = arith.subf %707, %703 : vector<2x1xf32>
    %709 = arith.mulf %708, %706 : vector<2x1xf32>
    %710 = arith.mulf %703, %637 : vector<2x1xf32>
    %711 = arith.addf %709, %710 : vector<2x1xf32>
    %712 = vector.extract_strided_slice %1 {offsets = [7, 0], sizes = [1, 16], strides = [1, 1]} : vector<17x16xf32> to vector<1x16xf32>
    %713 = vector.broadcast %711 : vector<2x1xf32> to vector<2x16xf32>
    %714 = vector.broadcast %712 : vector<1x16xf32> to vector<2x16xf32>
    %715 = arith.mulf %713, %714 : vector<2x16xf32>
    %716 = arith.addf %642, %715 : vector<2x16xf32>
    %717 = vector.extract_strided_slice %84 {offsets = [18, 0], sizes = [2, 1], strides = [1, 1]} : vector<32x1xf32> to vector<2x1xf32>
    %718 = vector.extract_strided_slice %85 {offsets = [18, 0], sizes = [2, 1], strides = [1, 1]} : vector<32x1xf32> to vector<2x1xf32>
    %719 = vector.extract_strided_slice %86 {offsets = [18, 0], sizes = [2, 1], strides = [1, 1]} : vector<32x1xf32> to vector<2x1xf32>
    %720 = arith.mulf %675, %5 : vector<2x1xf32>
    %721 = arith.addf %720, %14 : vector<2x1xf32>
    %722 = arith.mulf %675, %8 : vector<2x1xf32>
    %723 = arith.addf %722, %17 : vector<2x1xf32>
    %724 = arith.mulf %675, %11 : vector<2x1xf32>
    %725 = arith.addf %724, %20 : vector<2x1xf32>
    %726 = arith.addf %717, %721 : vector<2x1xf32>
    %cst_125 = arith.constant 5.000000e-01 : f32
    %727 = vector.broadcast %cst_125 : f32 to vector<2x1xf32>
    %728 = arith.mulf %727, %726 : vector<2x1xf32>
    %729 = math.tanh %728 : vector<2x1xf32>
    %cst_126 = arith.constant 1.000000e+00 : f32
    %730 = vector.broadcast %cst_126 : f32 to vector<2x1xf32>
    %731 = arith.addf %729, %730 : vector<2x1xf32>
    %cst_127 = arith.constant 5.000000e-01 : f32
    %732 = vector.broadcast %cst_127 : f32 to vector<2x1xf32>
    %733 = arith.mulf %732, %731 : vector<2x1xf32>
    %734 = arith.addf %718, %723 : vector<2x1xf32>
    %cst_128 = arith.constant 5.000000e-01 : f32
    %735 = vector.broadcast %cst_128 : f32 to vector<2x1xf32>
    %736 = arith.mulf %735, %734 : vector<2x1xf32>
    %737 = math.tanh %736 : vector<2x1xf32>
    %cst_129 = arith.constant 1.000000e+00 : f32
    %738 = vector.broadcast %cst_129 : f32 to vector<2x1xf32>
    %739 = arith.addf %737, %738 : vector<2x1xf32>
    %cst_130 = arith.constant 5.000000e-01 : f32
    %740 = vector.broadcast %cst_130 : f32 to vector<2x1xf32>
    %741 = arith.mulf %740, %739 : vector<2x1xf32>
    %742 = arith.mulf %733, %725 : vector<2x1xf32>
    %743 = arith.addf %719, %742 : vector<2x1xf32>
    %744 = math.tanh %743 : vector<2x1xf32>
    %cst_131 = arith.constant 1.000000e+00 : f32
    %745 = vector.broadcast %cst_131 : f32 to vector<2x1xf32>
    %746 = arith.subf %745, %741 : vector<2x1xf32>
    %747 = arith.mulf %746, %744 : vector<2x1xf32>
    %748 = arith.mulf %741, %675 : vector<2x1xf32>
    %749 = arith.addf %747, %748 : vector<2x1xf32>
    %750 = arith.mulf %675, %41 : vector<2x1xf32>
    %751 = arith.addf %750, %50 : vector<2x1xf32>
    %752 = arith.mulf %675, %44 : vector<2x1xf32>
    %753 = arith.addf %752, %53 : vector<2x1xf32>
    %754 = arith.mulf %675, %47 : vector<2x1xf32>
    %755 = arith.addf %754, %56 : vector<2x1xf32>
    %756 = arith.mulf %711, %23 : vector<2x1xf32>
    %757 = arith.addf %756, %32 : vector<2x1xf32>
    %758 = arith.mulf %711, %26 : vector<2x1xf32>
    %759 = arith.addf %758, %35 : vector<2x1xf32>
    %760 = arith.mulf %711, %29 : vector<2x1xf32>
    %761 = arith.addf %760, %38 : vector<2x1xf32>
    %762 = arith.addf %751, %757 : vector<2x1xf32>
    %cst_132 = arith.constant 5.000000e-01 : f32
    %763 = vector.broadcast %cst_132 : f32 to vector<2x1xf32>
    %764 = arith.mulf %763, %762 : vector<2x1xf32>
    %765 = math.tanh %764 : vector<2x1xf32>
    %cst_133 = arith.constant 1.000000e+00 : f32
    %766 = vector.broadcast %cst_133 : f32 to vector<2x1xf32>
    %767 = arith.addf %765, %766 : vector<2x1xf32>
    %cst_134 = arith.constant 5.000000e-01 : f32
    %768 = vector.broadcast %cst_134 : f32 to vector<2x1xf32>
    %769 = arith.mulf %768, %767 : vector<2x1xf32>
    %770 = arith.addf %753, %759 : vector<2x1xf32>
    %cst_135 = arith.constant 5.000000e-01 : f32
    %771 = vector.broadcast %cst_135 : f32 to vector<2x1xf32>
    %772 = arith.mulf %771, %770 : vector<2x1xf32>
    %773 = math.tanh %772 : vector<2x1xf32>
    %cst_136 = arith.constant 1.000000e+00 : f32
    %774 = vector.broadcast %cst_136 : f32 to vector<2x1xf32>
    %775 = arith.addf %773, %774 : vector<2x1xf32>
    %cst_137 = arith.constant 5.000000e-01 : f32
    %776 = vector.broadcast %cst_137 : f32 to vector<2x1xf32>
    %777 = arith.mulf %776, %775 : vector<2x1xf32>
    %778 = arith.mulf %769, %761 : vector<2x1xf32>
    %779 = arith.addf %755, %778 : vector<2x1xf32>
    %780 = math.tanh %779 : vector<2x1xf32>
    %cst_138 = arith.constant 1.000000e+00 : f32
    %781 = vector.broadcast %cst_138 : f32 to vector<2x1xf32>
    %782 = arith.subf %781, %777 : vector<2x1xf32>
    %783 = arith.mulf %782, %780 : vector<2x1xf32>
    %784 = arith.mulf %777, %711 : vector<2x1xf32>
    %785 = arith.addf %783, %784 : vector<2x1xf32>
    %786 = vector.extract_strided_slice %1 {offsets = [8, 0], sizes = [1, 16], strides = [1, 1]} : vector<17x16xf32> to vector<1x16xf32>
    %787 = vector.broadcast %785 : vector<2x1xf32> to vector<2x16xf32>
    %788 = vector.broadcast %786 : vector<1x16xf32> to vector<2x16xf32>
    %789 = arith.mulf %787, %788 : vector<2x16xf32>
    %790 = arith.addf %716, %789 : vector<2x16xf32>
    %791 = vector.extract_strided_slice %84 {offsets = [20, 0], sizes = [2, 1], strides = [1, 1]} : vector<32x1xf32> to vector<2x1xf32>
    %792 = vector.extract_strided_slice %85 {offsets = [20, 0], sizes = [2, 1], strides = [1, 1]} : vector<32x1xf32> to vector<2x1xf32>
    %793 = vector.extract_strided_slice %86 {offsets = [20, 0], sizes = [2, 1], strides = [1, 1]} : vector<32x1xf32> to vector<2x1xf32>
    %794 = arith.mulf %749, %5 : vector<2x1xf32>
    %795 = arith.addf %794, %14 : vector<2x1xf32>
    %796 = arith.mulf %749, %8 : vector<2x1xf32>
    %797 = arith.addf %796, %17 : vector<2x1xf32>
    %798 = arith.mulf %749, %11 : vector<2x1xf32>
    %799 = arith.addf %798, %20 : vector<2x1xf32>
    %800 = arith.addf %791, %795 : vector<2x1xf32>
    %cst_139 = arith.constant 5.000000e-01 : f32
    %801 = vector.broadcast %cst_139 : f32 to vector<2x1xf32>
    %802 = arith.mulf %801, %800 : vector<2x1xf32>
    %803 = math.tanh %802 : vector<2x1xf32>
    %cst_140 = arith.constant 1.000000e+00 : f32
    %804 = vector.broadcast %cst_140 : f32 to vector<2x1xf32>
    %805 = arith.addf %803, %804 : vector<2x1xf32>
    %cst_141 = arith.constant 5.000000e-01 : f32
    %806 = vector.broadcast %cst_141 : f32 to vector<2x1xf32>
    %807 = arith.mulf %806, %805 : vector<2x1xf32>
    %808 = arith.addf %792, %797 : vector<2x1xf32>
    %cst_142 = arith.constant 5.000000e-01 : f32
    %809 = vector.broadcast %cst_142 : f32 to vector<2x1xf32>
    %810 = arith.mulf %809, %808 : vector<2x1xf32>
    %811 = math.tanh %810 : vector<2x1xf32>
    %cst_143 = arith.constant 1.000000e+00 : f32
    %812 = vector.broadcast %cst_143 : f32 to vector<2x1xf32>
    %813 = arith.addf %811, %812 : vector<2x1xf32>
    %cst_144 = arith.constant 5.000000e-01 : f32
    %814 = vector.broadcast %cst_144 : f32 to vector<2x1xf32>
    %815 = arith.mulf %814, %813 : vector<2x1xf32>
    %816 = arith.mulf %807, %799 : vector<2x1xf32>
    %817 = arith.addf %793, %816 : vector<2x1xf32>
    %818 = math.tanh %817 : vector<2x1xf32>
    %cst_145 = arith.constant 1.000000e+00 : f32
    %819 = vector.broadcast %cst_145 : f32 to vector<2x1xf32>
    %820 = arith.subf %819, %815 : vector<2x1xf32>
    %821 = arith.mulf %820, %818 : vector<2x1xf32>
    %822 = arith.mulf %815, %749 : vector<2x1xf32>
    %823 = arith.addf %821, %822 : vector<2x1xf32>
    %824 = arith.mulf %749, %41 : vector<2x1xf32>
    %825 = arith.addf %824, %50 : vector<2x1xf32>
    %826 = arith.mulf %749, %44 : vector<2x1xf32>
    %827 = arith.addf %826, %53 : vector<2x1xf32>
    %828 = arith.mulf %749, %47 : vector<2x1xf32>
    %829 = arith.addf %828, %56 : vector<2x1xf32>
    %830 = arith.mulf %785, %23 : vector<2x1xf32>
    %831 = arith.addf %830, %32 : vector<2x1xf32>
    %832 = arith.mulf %785, %26 : vector<2x1xf32>
    %833 = arith.addf %832, %35 : vector<2x1xf32>
    %834 = arith.mulf %785, %29 : vector<2x1xf32>
    %835 = arith.addf %834, %38 : vector<2x1xf32>
    %836 = arith.addf %825, %831 : vector<2x1xf32>
    %cst_146 = arith.constant 5.000000e-01 : f32
    %837 = vector.broadcast %cst_146 : f32 to vector<2x1xf32>
    %838 = arith.mulf %837, %836 : vector<2x1xf32>
    %839 = math.tanh %838 : vector<2x1xf32>
    %cst_147 = arith.constant 1.000000e+00 : f32
    %840 = vector.broadcast %cst_147 : f32 to vector<2x1xf32>
    %841 = arith.addf %839, %840 : vector<2x1xf32>
    %cst_148 = arith.constant 5.000000e-01 : f32
    %842 = vector.broadcast %cst_148 : f32 to vector<2x1xf32>
    %843 = arith.mulf %842, %841 : vector<2x1xf32>
    %844 = arith.addf %827, %833 : vector<2x1xf32>
    %cst_149 = arith.constant 5.000000e-01 : f32
    %845 = vector.broadcast %cst_149 : f32 to vector<2x1xf32>
    %846 = arith.mulf %845, %844 : vector<2x1xf32>
    %847 = math.tanh %846 : vector<2x1xf32>
    %cst_150 = arith.constant 1.000000e+00 : f32
    %848 = vector.broadcast %cst_150 : f32 to vector<2x1xf32>
    %849 = arith.addf %847, %848 : vector<2x1xf32>
    %cst_151 = arith.constant 5.000000e-01 : f32
    %850 = vector.broadcast %cst_151 : f32 to vector<2x1xf32>
    %851 = arith.mulf %850, %849 : vector<2x1xf32>
    %852 = arith.mulf %843, %835 : vector<2x1xf32>
    %853 = arith.addf %829, %852 : vector<2x1xf32>
    %854 = math.tanh %853 : vector<2x1xf32>
    %cst_152 = arith.constant 1.000000e+00 : f32
    %855 = vector.broadcast %cst_152 : f32 to vector<2x1xf32>
    %856 = arith.subf %855, %851 : vector<2x1xf32>
    %857 = arith.mulf %856, %854 : vector<2x1xf32>
    %858 = arith.mulf %851, %785 : vector<2x1xf32>
    %859 = arith.addf %857, %858 : vector<2x1xf32>
    %860 = vector.extract_strided_slice %1 {offsets = [9, 0], sizes = [1, 16], strides = [1, 1]} : vector<17x16xf32> to vector<1x16xf32>
    %861 = vector.broadcast %859 : vector<2x1xf32> to vector<2x16xf32>
    %862 = vector.broadcast %860 : vector<1x16xf32> to vector<2x16xf32>
    %863 = arith.mulf %861, %862 : vector<2x16xf32>
    %864 = arith.addf %790, %863 : vector<2x16xf32>
    %865 = vector.extract_strided_slice %84 {offsets = [22, 0], sizes = [2, 1], strides = [1, 1]} : vector<32x1xf32> to vector<2x1xf32>
    %866 = vector.extract_strided_slice %85 {offsets = [22, 0], sizes = [2, 1], strides = [1, 1]} : vector<32x1xf32> to vector<2x1xf32>
    %867 = vector.extract_strided_slice %86 {offsets = [22, 0], sizes = [2, 1], strides = [1, 1]} : vector<32x1xf32> to vector<2x1xf32>
    %868 = arith.mulf %823, %5 : vector<2x1xf32>
    %869 = arith.addf %868, %14 : vector<2x1xf32>
    %870 = arith.mulf %823, %8 : vector<2x1xf32>
    %871 = arith.addf %870, %17 : vector<2x1xf32>
    %872 = arith.mulf %823, %11 : vector<2x1xf32>
    %873 = arith.addf %872, %20 : vector<2x1xf32>
    %874 = arith.addf %865, %869 : vector<2x1xf32>
    %cst_153 = arith.constant 5.000000e-01 : f32
    %875 = vector.broadcast %cst_153 : f32 to vector<2x1xf32>
    %876 = arith.mulf %875, %874 : vector<2x1xf32>
    %877 = math.tanh %876 : vector<2x1xf32>
    %cst_154 = arith.constant 1.000000e+00 : f32
    %878 = vector.broadcast %cst_154 : f32 to vector<2x1xf32>
    %879 = arith.addf %877, %878 : vector<2x1xf32>
    %cst_155 = arith.constant 5.000000e-01 : f32
    %880 = vector.broadcast %cst_155 : f32 to vector<2x1xf32>
    %881 = arith.mulf %880, %879 : vector<2x1xf32>
    %882 = arith.addf %866, %871 : vector<2x1xf32>
    %cst_156 = arith.constant 5.000000e-01 : f32
    %883 = vector.broadcast %cst_156 : f32 to vector<2x1xf32>
    %884 = arith.mulf %883, %882 : vector<2x1xf32>
    %885 = math.tanh %884 : vector<2x1xf32>
    %cst_157 = arith.constant 1.000000e+00 : f32
    %886 = vector.broadcast %cst_157 : f32 to vector<2x1xf32>
    %887 = arith.addf %885, %886 : vector<2x1xf32>
    %cst_158 = arith.constant 5.000000e-01 : f32
    %888 = vector.broadcast %cst_158 : f32 to vector<2x1xf32>
    %889 = arith.mulf %888, %887 : vector<2x1xf32>
    %890 = arith.mulf %881, %873 : vector<2x1xf32>
    %891 = arith.addf %867, %890 : vector<2x1xf32>
    %892 = math.tanh %891 : vector<2x1xf32>
    %cst_159 = arith.constant 1.000000e+00 : f32
    %893 = vector.broadcast %cst_159 : f32 to vector<2x1xf32>
    %894 = arith.subf %893, %889 : vector<2x1xf32>
    %895 = arith.mulf %894, %892 : vector<2x1xf32>
    %896 = arith.mulf %889, %823 : vector<2x1xf32>
    %897 = arith.addf %895, %896 : vector<2x1xf32>
    %898 = arith.mulf %823, %41 : vector<2x1xf32>
    %899 = arith.addf %898, %50 : vector<2x1xf32>
    %900 = arith.mulf %823, %44 : vector<2x1xf32>
    %901 = arith.addf %900, %53 : vector<2x1xf32>
    %902 = arith.mulf %823, %47 : vector<2x1xf32>
    %903 = arith.addf %902, %56 : vector<2x1xf32>
    %904 = arith.mulf %859, %23 : vector<2x1xf32>
    %905 = arith.addf %904, %32 : vector<2x1xf32>
    %906 = arith.mulf %859, %26 : vector<2x1xf32>
    %907 = arith.addf %906, %35 : vector<2x1xf32>
    %908 = arith.mulf %859, %29 : vector<2x1xf32>
    %909 = arith.addf %908, %38 : vector<2x1xf32>
    %910 = arith.addf %899, %905 : vector<2x1xf32>
    %cst_160 = arith.constant 5.000000e-01 : f32
    %911 = vector.broadcast %cst_160 : f32 to vector<2x1xf32>
    %912 = arith.mulf %911, %910 : vector<2x1xf32>
    %913 = math.tanh %912 : vector<2x1xf32>
    %cst_161 = arith.constant 1.000000e+00 : f32
    %914 = vector.broadcast %cst_161 : f32 to vector<2x1xf32>
    %915 = arith.addf %913, %914 : vector<2x1xf32>
    %cst_162 = arith.constant 5.000000e-01 : f32
    %916 = vector.broadcast %cst_162 : f32 to vector<2x1xf32>
    %917 = arith.mulf %916, %915 : vector<2x1xf32>
    %918 = arith.addf %901, %907 : vector<2x1xf32>
    %cst_163 = arith.constant 5.000000e-01 : f32
    %919 = vector.broadcast %cst_163 : f32 to vector<2x1xf32>
    %920 = arith.mulf %919, %918 : vector<2x1xf32>
    %921 = math.tanh %920 : vector<2x1xf32>
    %cst_164 = arith.constant 1.000000e+00 : f32
    %922 = vector.broadcast %cst_164 : f32 to vector<2x1xf32>
    %923 = arith.addf %921, %922 : vector<2x1xf32>
    %cst_165 = arith.constant 5.000000e-01 : f32
    %924 = vector.broadcast %cst_165 : f32 to vector<2x1xf32>
    %925 = arith.mulf %924, %923 : vector<2x1xf32>
    %926 = arith.mulf %917, %909 : vector<2x1xf32>
    %927 = arith.addf %903, %926 : vector<2x1xf32>
    %928 = math.tanh %927 : vector<2x1xf32>
    %cst_166 = arith.constant 1.000000e+00 : f32
    %929 = vector.broadcast %cst_166 : f32 to vector<2x1xf32>
    %930 = arith.subf %929, %925 : vector<2x1xf32>
    %931 = arith.mulf %930, %928 : vector<2x1xf32>
    %932 = arith.mulf %925, %859 : vector<2x1xf32>
    %933 = arith.addf %931, %932 : vector<2x1xf32>
    %934 = vector.extract_strided_slice %1 {offsets = [10, 0], sizes = [1, 16], strides = [1, 1]} : vector<17x16xf32> to vector<1x16xf32>
    %935 = vector.broadcast %933 : vector<2x1xf32> to vector<2x16xf32>
    %936 = vector.broadcast %934 : vector<1x16xf32> to vector<2x16xf32>
    %937 = arith.mulf %935, %936 : vector<2x16xf32>
    %938 = arith.addf %864, %937 : vector<2x16xf32>
    %939 = vector.extract_strided_slice %84 {offsets = [24, 0], sizes = [2, 1], strides = [1, 1]} : vector<32x1xf32> to vector<2x1xf32>
    %940 = vector.extract_strided_slice %85 {offsets = [24, 0], sizes = [2, 1], strides = [1, 1]} : vector<32x1xf32> to vector<2x1xf32>
    %941 = vector.extract_strided_slice %86 {offsets = [24, 0], sizes = [2, 1], strides = [1, 1]} : vector<32x1xf32> to vector<2x1xf32>
    %942 = arith.mulf %897, %5 : vector<2x1xf32>
    %943 = arith.addf %942, %14 : vector<2x1xf32>
    %944 = arith.mulf %897, %8 : vector<2x1xf32>
    %945 = arith.addf %944, %17 : vector<2x1xf32>
    %946 = arith.mulf %897, %11 : vector<2x1xf32>
    %947 = arith.addf %946, %20 : vector<2x1xf32>
    %948 = arith.addf %939, %943 : vector<2x1xf32>
    %cst_167 = arith.constant 5.000000e-01 : f32
    %949 = vector.broadcast %cst_167 : f32 to vector<2x1xf32>
    %950 = arith.mulf %949, %948 : vector<2x1xf32>
    %951 = math.tanh %950 : vector<2x1xf32>
    %cst_168 = arith.constant 1.000000e+00 : f32
    %952 = vector.broadcast %cst_168 : f32 to vector<2x1xf32>
    %953 = arith.addf %951, %952 : vector<2x1xf32>
    %cst_169 = arith.constant 5.000000e-01 : f32
    %954 = vector.broadcast %cst_169 : f32 to vector<2x1xf32>
    %955 = arith.mulf %954, %953 : vector<2x1xf32>
    %956 = arith.addf %940, %945 : vector<2x1xf32>
    %cst_170 = arith.constant 5.000000e-01 : f32
    %957 = vector.broadcast %cst_170 : f32 to vector<2x1xf32>
    %958 = arith.mulf %957, %956 : vector<2x1xf32>
    %959 = math.tanh %958 : vector<2x1xf32>
    %cst_171 = arith.constant 1.000000e+00 : f32
    %960 = vector.broadcast %cst_171 : f32 to vector<2x1xf32>
    %961 = arith.addf %959, %960 : vector<2x1xf32>
    %cst_172 = arith.constant 5.000000e-01 : f32
    %962 = vector.broadcast %cst_172 : f32 to vector<2x1xf32>
    %963 = arith.mulf %962, %961 : vector<2x1xf32>
    %964 = arith.mulf %955, %947 : vector<2x1xf32>
    %965 = arith.addf %941, %964 : vector<2x1xf32>
    %966 = math.tanh %965 : vector<2x1xf32>
    %cst_173 = arith.constant 1.000000e+00 : f32
    %967 = vector.broadcast %cst_173 : f32 to vector<2x1xf32>
    %968 = arith.subf %967, %963 : vector<2x1xf32>
    %969 = arith.mulf %968, %966 : vector<2x1xf32>
    %970 = arith.mulf %963, %897 : vector<2x1xf32>
    %971 = arith.addf %969, %970 : vector<2x1xf32>
    %972 = arith.mulf %897, %41 : vector<2x1xf32>
    %973 = arith.addf %972, %50 : vector<2x1xf32>
    %974 = arith.mulf %897, %44 : vector<2x1xf32>
    %975 = arith.addf %974, %53 : vector<2x1xf32>
    %976 = arith.mulf %897, %47 : vector<2x1xf32>
    %977 = arith.addf %976, %56 : vector<2x1xf32>
    %978 = arith.mulf %933, %23 : vector<2x1xf32>
    %979 = arith.addf %978, %32 : vector<2x1xf32>
    %980 = arith.mulf %933, %26 : vector<2x1xf32>
    %981 = arith.addf %980, %35 : vector<2x1xf32>
    %982 = arith.mulf %933, %29 : vector<2x1xf32>
    %983 = arith.addf %982, %38 : vector<2x1xf32>
    %984 = arith.addf %973, %979 : vector<2x1xf32>
    %cst_174 = arith.constant 5.000000e-01 : f32
    %985 = vector.broadcast %cst_174 : f32 to vector<2x1xf32>
    %986 = arith.mulf %985, %984 : vector<2x1xf32>
    %987 = math.tanh %986 : vector<2x1xf32>
    %cst_175 = arith.constant 1.000000e+00 : f32
    %988 = vector.broadcast %cst_175 : f32 to vector<2x1xf32>
    %989 = arith.addf %987, %988 : vector<2x1xf32>
    %cst_176 = arith.constant 5.000000e-01 : f32
    %990 = vector.broadcast %cst_176 : f32 to vector<2x1xf32>
    %991 = arith.mulf %990, %989 : vector<2x1xf32>
    %992 = arith.addf %975, %981 : vector<2x1xf32>
    %cst_177 = arith.constant 5.000000e-01 : f32
    %993 = vector.broadcast %cst_177 : f32 to vector<2x1xf32>
    %994 = arith.mulf %993, %992 : vector<2x1xf32>
    %995 = math.tanh %994 : vector<2x1xf32>
    %cst_178 = arith.constant 1.000000e+00 : f32
    %996 = vector.broadcast %cst_178 : f32 to vector<2x1xf32>
    %997 = arith.addf %995, %996 : vector<2x1xf32>
    %cst_179 = arith.constant 5.000000e-01 : f32
    %998 = vector.broadcast %cst_179 : f32 to vector<2x1xf32>
    %999 = arith.mulf %998, %997 : vector<2x1xf32>
    %1000 = arith.mulf %991, %983 : vector<2x1xf32>
    %1001 = arith.addf %977, %1000 : vector<2x1xf32>
    %1002 = math.tanh %1001 : vector<2x1xf32>
    %cst_180 = arith.constant 1.000000e+00 : f32
    %1003 = vector.broadcast %cst_180 : f32 to vector<2x1xf32>
    %1004 = arith.subf %1003, %999 : vector<2x1xf32>
    %1005 = arith.mulf %1004, %1002 : vector<2x1xf32>
    %1006 = arith.mulf %999, %933 : vector<2x1xf32>
    %1007 = arith.addf %1005, %1006 : vector<2x1xf32>
    %1008 = vector.extract_strided_slice %1 {offsets = [11, 0], sizes = [1, 16], strides = [1, 1]} : vector<17x16xf32> to vector<1x16xf32>
    %1009 = vector.broadcast %1007 : vector<2x1xf32> to vector<2x16xf32>
    %1010 = vector.broadcast %1008 : vector<1x16xf32> to vector<2x16xf32>
    %1011 = arith.mulf %1009, %1010 : vector<2x16xf32>
    %1012 = arith.addf %938, %1011 : vector<2x16xf32>
    %1013 = vector.extract_strided_slice %84 {offsets = [26, 0], sizes = [2, 1], strides = [1, 1]} : vector<32x1xf32> to vector<2x1xf32>
    %1014 = vector.extract_strided_slice %85 {offsets = [26, 0], sizes = [2, 1], strides = [1, 1]} : vector<32x1xf32> to vector<2x1xf32>
    %1015 = vector.extract_strided_slice %86 {offsets = [26, 0], sizes = [2, 1], strides = [1, 1]} : vector<32x1xf32> to vector<2x1xf32>
    %1016 = arith.mulf %971, %5 : vector<2x1xf32>
    %1017 = arith.addf %1016, %14 : vector<2x1xf32>
    %1018 = arith.mulf %971, %8 : vector<2x1xf32>
    %1019 = arith.addf %1018, %17 : vector<2x1xf32>
    %1020 = arith.mulf %971, %11 : vector<2x1xf32>
    %1021 = arith.addf %1020, %20 : vector<2x1xf32>
    %1022 = arith.addf %1013, %1017 : vector<2x1xf32>
    %cst_181 = arith.constant 5.000000e-01 : f32
    %1023 = vector.broadcast %cst_181 : f32 to vector<2x1xf32>
    %1024 = arith.mulf %1023, %1022 : vector<2x1xf32>
    %1025 = math.tanh %1024 : vector<2x1xf32>
    %cst_182 = arith.constant 1.000000e+00 : f32
    %1026 = vector.broadcast %cst_182 : f32 to vector<2x1xf32>
    %1027 = arith.addf %1025, %1026 : vector<2x1xf32>
    %cst_183 = arith.constant 5.000000e-01 : f32
    %1028 = vector.broadcast %cst_183 : f32 to vector<2x1xf32>
    %1029 = arith.mulf %1028, %1027 : vector<2x1xf32>
    %1030 = arith.addf %1014, %1019 : vector<2x1xf32>
    %cst_184 = arith.constant 5.000000e-01 : f32
    %1031 = vector.broadcast %cst_184 : f32 to vector<2x1xf32>
    %1032 = arith.mulf %1031, %1030 : vector<2x1xf32>
    %1033 = math.tanh %1032 : vector<2x1xf32>
    %cst_185 = arith.constant 1.000000e+00 : f32
    %1034 = vector.broadcast %cst_185 : f32 to vector<2x1xf32>
    %1035 = arith.addf %1033, %1034 : vector<2x1xf32>
    %cst_186 = arith.constant 5.000000e-01 : f32
    %1036 = vector.broadcast %cst_186 : f32 to vector<2x1xf32>
    %1037 = arith.mulf %1036, %1035 : vector<2x1xf32>
    %1038 = arith.mulf %1029, %1021 : vector<2x1xf32>
    %1039 = arith.addf %1015, %1038 : vector<2x1xf32>
    %1040 = math.tanh %1039 : vector<2x1xf32>
    %cst_187 = arith.constant 1.000000e+00 : f32
    %1041 = vector.broadcast %cst_187 : f32 to vector<2x1xf32>
    %1042 = arith.subf %1041, %1037 : vector<2x1xf32>
    %1043 = arith.mulf %1042, %1040 : vector<2x1xf32>
    %1044 = arith.mulf %1037, %971 : vector<2x1xf32>
    %1045 = arith.addf %1043, %1044 : vector<2x1xf32>
    %1046 = arith.mulf %971, %41 : vector<2x1xf32>
    %1047 = arith.addf %1046, %50 : vector<2x1xf32>
    %1048 = arith.mulf %971, %44 : vector<2x1xf32>
    %1049 = arith.addf %1048, %53 : vector<2x1xf32>
    %1050 = arith.mulf %971, %47 : vector<2x1xf32>
    %1051 = arith.addf %1050, %56 : vector<2x1xf32>
    %1052 = arith.mulf %1007, %23 : vector<2x1xf32>
    %1053 = arith.addf %1052, %32 : vector<2x1xf32>
    %1054 = arith.mulf %1007, %26 : vector<2x1xf32>
    %1055 = arith.addf %1054, %35 : vector<2x1xf32>
    %1056 = arith.mulf %1007, %29 : vector<2x1xf32>
    %1057 = arith.addf %1056, %38 : vector<2x1xf32>
    %1058 = arith.addf %1047, %1053 : vector<2x1xf32>
    %cst_188 = arith.constant 5.000000e-01 : f32
    %1059 = vector.broadcast %cst_188 : f32 to vector<2x1xf32>
    %1060 = arith.mulf %1059, %1058 : vector<2x1xf32>
    %1061 = math.tanh %1060 : vector<2x1xf32>
    %cst_189 = arith.constant 1.000000e+00 : f32
    %1062 = vector.broadcast %cst_189 : f32 to vector<2x1xf32>
    %1063 = arith.addf %1061, %1062 : vector<2x1xf32>
    %cst_190 = arith.constant 5.000000e-01 : f32
    %1064 = vector.broadcast %cst_190 : f32 to vector<2x1xf32>
    %1065 = arith.mulf %1064, %1063 : vector<2x1xf32>
    %1066 = arith.addf %1049, %1055 : vector<2x1xf32>
    %cst_191 = arith.constant 5.000000e-01 : f32
    %1067 = vector.broadcast %cst_191 : f32 to vector<2x1xf32>
    %1068 = arith.mulf %1067, %1066 : vector<2x1xf32>
    %1069 = math.tanh %1068 : vector<2x1xf32>
    %cst_192 = arith.constant 1.000000e+00 : f32
    %1070 = vector.broadcast %cst_192 : f32 to vector<2x1xf32>
    %1071 = arith.addf %1069, %1070 : vector<2x1xf32>
    %cst_193 = arith.constant 5.000000e-01 : f32
    %1072 = vector.broadcast %cst_193 : f32 to vector<2x1xf32>
    %1073 = arith.mulf %1072, %1071 : vector<2x1xf32>
    %1074 = arith.mulf %1065, %1057 : vector<2x1xf32>
    %1075 = arith.addf %1051, %1074 : vector<2x1xf32>
    %1076 = math.tanh %1075 : vector<2x1xf32>
    %cst_194 = arith.constant 1.000000e+00 : f32
    %1077 = vector.broadcast %cst_194 : f32 to vector<2x1xf32>
    %1078 = arith.subf %1077, %1073 : vector<2x1xf32>
    %1079 = arith.mulf %1078, %1076 : vector<2x1xf32>
    %1080 = arith.mulf %1073, %1007 : vector<2x1xf32>
    %1081 = arith.addf %1079, %1080 : vector<2x1xf32>
    %1082 = vector.extract_strided_slice %1 {offsets = [12, 0], sizes = [1, 16], strides = [1, 1]} : vector<17x16xf32> to vector<1x16xf32>
    %1083 = vector.broadcast %1081 : vector<2x1xf32> to vector<2x16xf32>
    %1084 = vector.broadcast %1082 : vector<1x16xf32> to vector<2x16xf32>
    %1085 = arith.mulf %1083, %1084 : vector<2x16xf32>
    %1086 = arith.addf %1012, %1085 : vector<2x16xf32>
    %1087 = vector.extract_strided_slice %84 {offsets = [28, 0], sizes = [2, 1], strides = [1, 1]} : vector<32x1xf32> to vector<2x1xf32>
    %1088 = vector.extract_strided_slice %85 {offsets = [28, 0], sizes = [2, 1], strides = [1, 1]} : vector<32x1xf32> to vector<2x1xf32>
    %1089 = vector.extract_strided_slice %86 {offsets = [28, 0], sizes = [2, 1], strides = [1, 1]} : vector<32x1xf32> to vector<2x1xf32>
    %1090 = arith.mulf %1045, %5 : vector<2x1xf32>
    %1091 = arith.addf %1090, %14 : vector<2x1xf32>
    %1092 = arith.mulf %1045, %8 : vector<2x1xf32>
    %1093 = arith.addf %1092, %17 : vector<2x1xf32>
    %1094 = arith.mulf %1045, %11 : vector<2x1xf32>
    %1095 = arith.addf %1094, %20 : vector<2x1xf32>
    %1096 = arith.addf %1087, %1091 : vector<2x1xf32>
    %cst_195 = arith.constant 5.000000e-01 : f32
    %1097 = vector.broadcast %cst_195 : f32 to vector<2x1xf32>
    %1098 = arith.mulf %1097, %1096 : vector<2x1xf32>
    %1099 = math.tanh %1098 : vector<2x1xf32>
    %cst_196 = arith.constant 1.000000e+00 : f32
    %1100 = vector.broadcast %cst_196 : f32 to vector<2x1xf32>
    %1101 = arith.addf %1099, %1100 : vector<2x1xf32>
    %cst_197 = arith.constant 5.000000e-01 : f32
    %1102 = vector.broadcast %cst_197 : f32 to vector<2x1xf32>
    %1103 = arith.mulf %1102, %1101 : vector<2x1xf32>
    %1104 = arith.addf %1088, %1093 : vector<2x1xf32>
    %cst_198 = arith.constant 5.000000e-01 : f32
    %1105 = vector.broadcast %cst_198 : f32 to vector<2x1xf32>
    %1106 = arith.mulf %1105, %1104 : vector<2x1xf32>
    %1107 = math.tanh %1106 : vector<2x1xf32>
    %cst_199 = arith.constant 1.000000e+00 : f32
    %1108 = vector.broadcast %cst_199 : f32 to vector<2x1xf32>
    %1109 = arith.addf %1107, %1108 : vector<2x1xf32>
    %cst_200 = arith.constant 5.000000e-01 : f32
    %1110 = vector.broadcast %cst_200 : f32 to vector<2x1xf32>
    %1111 = arith.mulf %1110, %1109 : vector<2x1xf32>
    %1112 = arith.mulf %1103, %1095 : vector<2x1xf32>
    %1113 = arith.addf %1089, %1112 : vector<2x1xf32>
    %1114 = math.tanh %1113 : vector<2x1xf32>
    %cst_201 = arith.constant 1.000000e+00 : f32
    %1115 = vector.broadcast %cst_201 : f32 to vector<2x1xf32>
    %1116 = arith.subf %1115, %1111 : vector<2x1xf32>
    %1117 = arith.mulf %1116, %1114 : vector<2x1xf32>
    %1118 = arith.mulf %1111, %1045 : vector<2x1xf32>
    %1119 = arith.addf %1117, %1118 : vector<2x1xf32>
    %1120 = arith.mulf %1045, %41 : vector<2x1xf32>
    %1121 = arith.addf %1120, %50 : vector<2x1xf32>
    %1122 = arith.mulf %1045, %44 : vector<2x1xf32>
    %1123 = arith.addf %1122, %53 : vector<2x1xf32>
    %1124 = arith.mulf %1045, %47 : vector<2x1xf32>
    %1125 = arith.addf %1124, %56 : vector<2x1xf32>
    %1126 = arith.mulf %1081, %23 : vector<2x1xf32>
    %1127 = arith.addf %1126, %32 : vector<2x1xf32>
    %1128 = arith.mulf %1081, %26 : vector<2x1xf32>
    %1129 = arith.addf %1128, %35 : vector<2x1xf32>
    %1130 = arith.mulf %1081, %29 : vector<2x1xf32>
    %1131 = arith.addf %1130, %38 : vector<2x1xf32>
    %1132 = arith.addf %1121, %1127 : vector<2x1xf32>
    %cst_202 = arith.constant 5.000000e-01 : f32
    %1133 = vector.broadcast %cst_202 : f32 to vector<2x1xf32>
    %1134 = arith.mulf %1133, %1132 : vector<2x1xf32>
    %1135 = math.tanh %1134 : vector<2x1xf32>
    %cst_203 = arith.constant 1.000000e+00 : f32
    %1136 = vector.broadcast %cst_203 : f32 to vector<2x1xf32>
    %1137 = arith.addf %1135, %1136 : vector<2x1xf32>
    %cst_204 = arith.constant 5.000000e-01 : f32
    %1138 = vector.broadcast %cst_204 : f32 to vector<2x1xf32>
    %1139 = arith.mulf %1138, %1137 : vector<2x1xf32>
    %1140 = arith.addf %1123, %1129 : vector<2x1xf32>
    %cst_205 = arith.constant 5.000000e-01 : f32
    %1141 = vector.broadcast %cst_205 : f32 to vector<2x1xf32>
    %1142 = arith.mulf %1141, %1140 : vector<2x1xf32>
    %1143 = math.tanh %1142 : vector<2x1xf32>
    %cst_206 = arith.constant 1.000000e+00 : f32
    %1144 = vector.broadcast %cst_206 : f32 to vector<2x1xf32>
    %1145 = arith.addf %1143, %1144 : vector<2x1xf32>
    %cst_207 = arith.constant 5.000000e-01 : f32
    %1146 = vector.broadcast %cst_207 : f32 to vector<2x1xf32>
    %1147 = arith.mulf %1146, %1145 : vector<2x1xf32>
    %1148 = arith.mulf %1139, %1131 : vector<2x1xf32>
    %1149 = arith.addf %1125, %1148 : vector<2x1xf32>
    %1150 = math.tanh %1149 : vector<2x1xf32>
    %cst_208 = arith.constant 1.000000e+00 : f32
    %1151 = vector.broadcast %cst_208 : f32 to vector<2x1xf32>
    %1152 = arith.subf %1151, %1147 : vector<2x1xf32>
    %1153 = arith.mulf %1152, %1150 : vector<2x1xf32>
    %1154 = arith.mulf %1147, %1081 : vector<2x1xf32>
    %1155 = arith.addf %1153, %1154 : vector<2x1xf32>
    %1156 = vector.extract_strided_slice %1 {offsets = [13, 0], sizes = [1, 16], strides = [1, 1]} : vector<17x16xf32> to vector<1x16xf32>
    %1157 = vector.broadcast %1155 : vector<2x1xf32> to vector<2x16xf32>
    %1158 = vector.broadcast %1156 : vector<1x16xf32> to vector<2x16xf32>
    %1159 = arith.mulf %1157, %1158 : vector<2x16xf32>
    %1160 = arith.addf %1086, %1159 : vector<2x16xf32>
    %1161 = vector.extract_strided_slice %84 {offsets = [30, 0], sizes = [2, 1], strides = [1, 1]} : vector<32x1xf32> to vector<2x1xf32>
    %1162 = vector.extract_strided_slice %85 {offsets = [30, 0], sizes = [2, 1], strides = [1, 1]} : vector<32x1xf32> to vector<2x1xf32>
    %1163 = vector.extract_strided_slice %86 {offsets = [30, 0], sizes = [2, 1], strides = [1, 1]} : vector<32x1xf32> to vector<2x1xf32>
    %1164 = arith.mulf %1119, %5 : vector<2x1xf32>
    %1165 = arith.addf %1164, %14 : vector<2x1xf32>
    %1166 = arith.mulf %1119, %8 : vector<2x1xf32>
    %1167 = arith.addf %1166, %17 : vector<2x1xf32>
    %1168 = arith.mulf %1119, %11 : vector<2x1xf32>
    %1169 = arith.addf %1168, %20 : vector<2x1xf32>
    %1170 = arith.addf %1161, %1165 : vector<2x1xf32>
    %cst_209 = arith.constant 5.000000e-01 : f32
    %1171 = vector.broadcast %cst_209 : f32 to vector<2x1xf32>
    %1172 = arith.mulf %1171, %1170 : vector<2x1xf32>
    %1173 = math.tanh %1172 : vector<2x1xf32>
    %cst_210 = arith.constant 1.000000e+00 : f32
    %1174 = vector.broadcast %cst_210 : f32 to vector<2x1xf32>
    %1175 = arith.addf %1173, %1174 : vector<2x1xf32>
    %cst_211 = arith.constant 5.000000e-01 : f32
    %1176 = vector.broadcast %cst_211 : f32 to vector<2x1xf32>
    %1177 = arith.mulf %1176, %1175 : vector<2x1xf32>
    %1178 = arith.addf %1162, %1167 : vector<2x1xf32>
    %cst_212 = arith.constant 5.000000e-01 : f32
    %1179 = vector.broadcast %cst_212 : f32 to vector<2x1xf32>
    %1180 = arith.mulf %1179, %1178 : vector<2x1xf32>
    %1181 = math.tanh %1180 : vector<2x1xf32>
    %cst_213 = arith.constant 1.000000e+00 : f32
    %1182 = vector.broadcast %cst_213 : f32 to vector<2x1xf32>
    %1183 = arith.addf %1181, %1182 : vector<2x1xf32>
    %cst_214 = arith.constant 5.000000e-01 : f32
    %1184 = vector.broadcast %cst_214 : f32 to vector<2x1xf32>
    %1185 = arith.mulf %1184, %1183 : vector<2x1xf32>
    %1186 = arith.mulf %1177, %1169 : vector<2x1xf32>
    %1187 = arith.addf %1163, %1186 : vector<2x1xf32>
    %1188 = math.tanh %1187 : vector<2x1xf32>
    %cst_215 = arith.constant 1.000000e+00 : f32
    %1189 = vector.broadcast %cst_215 : f32 to vector<2x1xf32>
    %1190 = arith.subf %1189, %1185 : vector<2x1xf32>
    %1191 = arith.mulf %1190, %1188 : vector<2x1xf32>
    %1192 = arith.mulf %1185, %1119 : vector<2x1xf32>
    %1193 = arith.addf %1191, %1192 : vector<2x1xf32>
    %1194 = arith.mulf %1119, %41 : vector<2x1xf32>
    %1195 = arith.addf %1194, %50 : vector<2x1xf32>
    %1196 = arith.mulf %1119, %44 : vector<2x1xf32>
    %1197 = arith.addf %1196, %53 : vector<2x1xf32>
    %1198 = arith.mulf %1119, %47 : vector<2x1xf32>
    %1199 = arith.addf %1198, %56 : vector<2x1xf32>
    %1200 = arith.mulf %1155, %23 : vector<2x1xf32>
    %1201 = arith.addf %1200, %32 : vector<2x1xf32>
    %1202 = arith.mulf %1155, %26 : vector<2x1xf32>
    %1203 = arith.addf %1202, %35 : vector<2x1xf32>
    %1204 = arith.mulf %1155, %29 : vector<2x1xf32>
    %1205 = arith.addf %1204, %38 : vector<2x1xf32>
    %1206 = arith.addf %1195, %1201 : vector<2x1xf32>
    %cst_216 = arith.constant 5.000000e-01 : f32
    %1207 = vector.broadcast %cst_216 : f32 to vector<2x1xf32>
    %1208 = arith.mulf %1207, %1206 : vector<2x1xf32>
    %1209 = math.tanh %1208 : vector<2x1xf32>
    %cst_217 = arith.constant 1.000000e+00 : f32
    %1210 = vector.broadcast %cst_217 : f32 to vector<2x1xf32>
    %1211 = arith.addf %1209, %1210 : vector<2x1xf32>
    %cst_218 = arith.constant 5.000000e-01 : f32
    %1212 = vector.broadcast %cst_218 : f32 to vector<2x1xf32>
    %1213 = arith.mulf %1212, %1211 : vector<2x1xf32>
    %1214 = arith.addf %1197, %1203 : vector<2x1xf32>
    %cst_219 = arith.constant 5.000000e-01 : f32
    %1215 = vector.broadcast %cst_219 : f32 to vector<2x1xf32>
    %1216 = arith.mulf %1215, %1214 : vector<2x1xf32>
    %1217 = math.tanh %1216 : vector<2x1xf32>
    %cst_220 = arith.constant 1.000000e+00 : f32
    %1218 = vector.broadcast %cst_220 : f32 to vector<2x1xf32>
    %1219 = arith.addf %1217, %1218 : vector<2x1xf32>
    %cst_221 = arith.constant 5.000000e-01 : f32
    %1220 = vector.broadcast %cst_221 : f32 to vector<2x1xf32>
    %1221 = arith.mulf %1220, %1219 : vector<2x1xf32>
    %1222 = arith.mulf %1213, %1205 : vector<2x1xf32>
    %1223 = arith.addf %1199, %1222 : vector<2x1xf32>
    %1224 = math.tanh %1223 : vector<2x1xf32>
    %cst_222 = arith.constant 1.000000e+00 : f32
    %1225 = vector.broadcast %cst_222 : f32 to vector<2x1xf32>
    %1226 = arith.subf %1225, %1221 : vector<2x1xf32>
    %1227 = arith.mulf %1226, %1224 : vector<2x1xf32>
    %1228 = arith.mulf %1221, %1155 : vector<2x1xf32>
    %1229 = arith.addf %1227, %1228 : vector<2x1xf32>
    %1230 = vector.extract_strided_slice %1 {offsets = [14, 0], sizes = [1, 16], strides = [1, 1]} : vector<17x16xf32> to vector<1x16xf32>
    %1231 = vector.broadcast %1229 : vector<2x1xf32> to vector<2x16xf32>
    %1232 = vector.broadcast %1230 : vector<1x16xf32> to vector<2x16xf32>
    %1233 = arith.mulf %1231, %1232 : vector<2x16xf32>
    %1234 = arith.addf %1160, %1233 : vector<2x16xf32>
    %1235 = arith.mulf %1193, %41 : vector<2x1xf32>
    %1236 = arith.addf %1235, %50 : vector<2x1xf32>
    %1237 = arith.mulf %1193, %44 : vector<2x1xf32>
    %1238 = arith.addf %1237, %53 : vector<2x1xf32>
    %1239 = arith.mulf %1193, %47 : vector<2x1xf32>
    %1240 = arith.addf %1239, %56 : vector<2x1xf32>
    %1241 = arith.mulf %1229, %23 : vector<2x1xf32>
    %1242 = arith.addf %1241, %32 : vector<2x1xf32>
    %1243 = arith.mulf %1229, %26 : vector<2x1xf32>
    %1244 = arith.addf %1243, %35 : vector<2x1xf32>
    %1245 = arith.mulf %1229, %29 : vector<2x1xf32>
    %1246 = arith.addf %1245, %38 : vector<2x1xf32>
    %1247 = arith.addf %1236, %1242 : vector<2x1xf32>
    %cst_223 = arith.constant 5.000000e-01 : f32
    %1248 = vector.broadcast %cst_223 : f32 to vector<2x1xf32>
    %1249 = arith.mulf %1248, %1247 : vector<2x1xf32>
    %1250 = math.tanh %1249 : vector<2x1xf32>
    %cst_224 = arith.constant 1.000000e+00 : f32
    %1251 = vector.broadcast %cst_224 : f32 to vector<2x1xf32>
    %1252 = arith.addf %1250, %1251 : vector<2x1xf32>
    %cst_225 = arith.constant 5.000000e-01 : f32
    %1253 = vector.broadcast %cst_225 : f32 to vector<2x1xf32>
    %1254 = arith.mulf %1253, %1252 : vector<2x1xf32>
    %1255 = arith.addf %1238, %1244 : vector<2x1xf32>
    %cst_226 = arith.constant 5.000000e-01 : f32
    %1256 = vector.broadcast %cst_226 : f32 to vector<2x1xf32>
    %1257 = arith.mulf %1256, %1255 : vector<2x1xf32>
    %1258 = math.tanh %1257 : vector<2x1xf32>
    %cst_227 = arith.constant 1.000000e+00 : f32
    %1259 = vector.broadcast %cst_227 : f32 to vector<2x1xf32>
    %1260 = arith.addf %1258, %1259 : vector<2x1xf32>
    %cst_228 = arith.constant 5.000000e-01 : f32
    %1261 = vector.broadcast %cst_228 : f32 to vector<2x1xf32>
    %1262 = arith.mulf %1261, %1260 : vector<2x1xf32>
    %1263 = arith.mulf %1254, %1246 : vector<2x1xf32>
    %1264 = arith.addf %1240, %1263 : vector<2x1xf32>
    %1265 = math.tanh %1264 : vector<2x1xf32>
    %cst_229 = arith.constant 1.000000e+00 : f32
    %1266 = vector.broadcast %cst_229 : f32 to vector<2x1xf32>
    %1267 = arith.subf %1266, %1262 : vector<2x1xf32>
    %1268 = arith.mulf %1267, %1265 : vector<2x1xf32>
    %1269 = arith.mulf %1262, %1229 : vector<2x1xf32>
    %1270 = arith.addf %1268, %1269 : vector<2x1xf32>
    %1271 = vector.extract_strided_slice %1 {offsets = [15, 0], sizes = [1, 16], strides = [1, 1]} : vector<17x16xf32> to vector<1x16xf32>
    %1272 = vector.broadcast %1270 : vector<2x1xf32> to vector<2x16xf32>
    %1273 = vector.broadcast %1271 : vector<1x16xf32> to vector<2x16xf32>
    %1274 = arith.mulf %1272, %1273 : vector<2x16xf32>
    %1275 = arith.addf %1234, %1274 : vector<2x16xf32>
    %c0_230 = arith.constant 0 : index
    %c0_231 = arith.constant 0 : index
    %1276 = vector.load %arg3[%c0_230, %c0_231] : memref<2x16xf32, #tpu.memory_space<vmem>>, vector<2x16xf32>
    tpu.vector_store %arg3[%c0_230, %c0_231], %1275 {strides = array<i32>} : memref<2x16xf32, #tpu.memory_space<vmem>>, vector<2x16xf32>,
    return
  }
}

</mosaic_0001>

<bundles_post_ra>
// kernel: gru_reg_forward.1
= control target key start
LH: loop header
LB: loop body
LE: loop exit
PB: predicated region body
PF: predicated region fallthrough
CT: control target
= control target key end

     0   :  { %v2046_v1 = vmov 0   ;;  %v2047_v2 = vmov 2   ;;  %v24_v3 = vlaneseq  ;;  %s2899_s0 = inlined_call_operand.vmem [shape: f32[32,4], index: 0, kind: input, shape index: {}]   ;;  %s2900_s1 = inlined_call_operand.vmem [shape: f32[11,3], index: 1, kind: input, shape index: {}]   ;;  %s2901_s2 = inlined_call_operand.vmem [shape: f32[17,16], index: 2, kind: input, shape index: {}]   ;;  %s2902_s3 = inlined_call_operand.hbm [shape: f32[2,16], index: 3, kind: output, shape index: {}]  }
   0x1   :  { %v20_v0 = vld [vmem:[%s2899_s0] sm:$0xff]  ;;  %1815 = vset.pattern.permute.xlu0 %v2046_v1  ;;  %1817 = vset.pattern.permute.xlu1 %v2047_v2 }
   0x2   :  { %8 = vsyncpa [#allocation3], 0  ;;  %50 = vperm.xlu0 %1815, %v20_v0   ;;  %113 = vperm.xlu1 %1817, %v20_v0   ;;  %v2080_v4 = vshrl.u32 %v24_v3, 7  ;;  %v15_v5 = vld [vmem:[%s2900_s1] sm:$0xff]  ;;  %v2048_v8 = vmov 1   ;;  %v2049_v9 = vmov 3  }
   0x3   :  { %s2050_s16 = smov 126   ;;  %s2051_s17 = smov 2   ;;  %vm1789_vm0 = vcmask 123904  }
   0x4   :  { %v2086_v6 = vsub.s32 4, %v2080_v4  ;;  %v2089_v7 = vsub.s32 6, %v2080_v4  ;;  %v2104_v14 = vsub.s32 0, %v2080_v4  ;;  %v2107_v15 = vsub.s32 5, %v2080_v4  ;;  %s2052_s18 = smov 1   ;;  %s2053_s19 = smov 127  }
   0x5   :  { %v2113_v17 = vsub.s32 1, %v2080_v4  ;;  %v2116_v19 = vsub.s32 2, %v2080_v4  ;;  %v2119_v21 = vsub.s32 3, %v2080_v4 }
   0x6   :  { %1816 = vset.pattern.permute.xlu0 %v2048_v8  ;;  %1818 = vset.pattern.permute.xlu1 %v2049_v9  ;;  %v2094_v10 = vrot.slane %v15_v5, %v2086_v6  ;;  %v2097_v11 = vrot.slane %v15_v5, %v2089_v7  ;;  %v2110_v16 = vrot.slane %v15_v5, %v2104_v14 }
   0x7   :  { %85 = vperm.xlu0 %1816, %v20_v0   ;;  %141 = vperm.xlu1 %1818, %v20_v0   ;;  %v2123_v23 = vrot.slane %v15_v5, %v2107_v15  ;;  %v2126_v24 = vrot.slane %v15_v5, %v2113_v17  ;;  %v2129_v25 = vrot.slane %v15_v5, %v2116_v19 }
   0x8   :  { %v172_v12 = vmul.f32 0.0, %v2094_v10  ;;  %v2132_v26 = vrot.slane %v15_v5, %v2119_v21 }
   0xa   :  { %v173_v13 = vadd.f32 %v172_v12, %v2097_v11 }
   0xb   :  { %1820 = vset.pattern.permute.xlu1 %v2048_v8  ;;  %1819 = vset.pattern.permute.xlu0 %v2046_v1 }
   0xc   :  { %180 = vrot.lane.b32.xlu1 %v173_v13, %s2050_s16 }
  0x7d   :  { %v51_v18 = vpop.permute.xlu0 %50  ;;  %v114_v20 = vpop.permute.xlu1 %113 }
  0x7e   :  { %v72_v22 = vmul.f32 %v2110_v16, %v51_v18  ;;  %v132_v31 = vmul.f32 %v2129_v25, %v114_v20 }
  0x80   :  { %v80_v29 = vadd.f32 %v2123_v23, %v72_v22 }
  0x82   :  { %v86_v27 = vpop.permute.xlu0 %85  ;;  %v142_v28 = vpop.permute.xlu1 %141 }
  0x83   :  { %v104_v30 = vmul.f32 %v2126_v24, %v86_v27  ;;  %v160_v33 = vmul.f32 %v2132_v26, %v142_v28 }
  0x85   :  { %v108_v32 = vadd.f32 %v104_v30, %v80_v29 }
  0x86   :  { %v181_v40 = vpop.permute.xlu1 %180 }
  0x87   :  { %v136_v34 = vadd.f32 %v132_v31, %v108_v32 }
  0x89   :  { %v2138_v35 = vadd.f32 %v160_v33, %v136_v34 }
  0x8b   :  { %v174_v36 = vadd.f32 %v173_v13, %v2138_v35 }
  0x8d   :  { %v175_v37 = vmul.f32 0.5, %v174_v36 }
  0x8f   :  { %1833 = vtanh.f32 %v175_v37 }
  0x9c   :  { %v1834_v38 = vpop.eup %1833 }
  0x9d   :  { %v177_v39 = vadd.f32 1.0, %v1834_v38 }
  0x9f   :  { %v178_v41 = vmul.f32 0.5, %v177_v39 }
  0xa1   :  { %v183_v42 = vmul.f32 %v181_v40, %v178_v41  ;;  %v190_v47 = vsub.f32 1.0, %v178_v41  ;;  %v196_v49 = vmul.f32 0.0, %v178_v41 }
  0xa3   :  { %185 = vrot.lane.b32.xlu0 %v183_v42, %s2051_s17 }
  0xa7   :  { %199 = vrot.lane.b32.xlu0 %v2094_v10, %s2052_s18 }
  0xab   :  { %210 = vrot.lane.b32.xlu0 %v2094_v10, %s2053_s19 }
 0x115   :  { %v186_v43 = vpop.permute.xlu0 %185 }
 0x116   :  { %v188_v44 = vadd.f32 %v186_v43, %v2138_v35 }
 0x118   :  { %1835 = vtanh.f32 %v188_v44 }
 0x119   :  { %v2152_v46 = vpop.permute.xlu0 %199 }
 0x11d   :  { %v2158_v53 = vpop.permute.xlu0 %210 }
 0x125   :  { %v1836_v45 = vpop.eup %1835 }
 0x126   :  { %192 = vrot.lane.b32.xlu1 %v1836_v45, %s2053_s19 }
 0x12a   :  { %204 = vrot.lane.b32.xlu1 %v2097_v11, %s2052_s18 }
 0x12e   :  { %214 = vrot.lane.b32.xlu1 %v2097_v11, %s2053_s19 }
 0x198   :  { %v193_v48 = vpop.permute.xlu1 %192 }
 0x199   :  { %v195_v50 = vmul.f32 %v193_v48, %v190_v47 }
 0x19b   :  { %v2154_v51 = vadd.f32 %v196_v49, %v195_v50 }
 0x19c   :  { %v2156_v52 = vpop.permute.xlu1 %204 }
 0x19d   :  { %v202_v54 = vmul.f32 %v2152_v46, %v2154_v51  ;;  %v213_v56 = vmul.f32 %v2158_v53, %v2154_v51  ;;  %v208_v27 = vmul.f32 %v2154_v51, %v2094_v10  ;;  %v255_v37 = vrot.slane %v2154_v51, 6 }
 0x19f   :  { %v207_v55 = vadd.f32 %v2156_v52, %v202_v54  ;;  %v209_v28 = vadd.f32 %v208_v27, %v2097_v11 }
 0x1a0   :  { %v2165_v57 = vpop.permute.xlu1 %214 }
 0x1a1   :  { %v219_v58 = vrot.slane %v207_v55, 6  ;;  %v217_v59 = vadd.f32 %v2165_v57, %v213_v56  ;;  %v229_v29 = vrot.slane %v209_v28, 6 }
 0x1a3   :  { %220 = vrot.lane.b32.xlu0 %v219_v58, %s2053_s19  ;;  %v237_v60 = vrot.slane %v217_v59, 6  ;;  %v231_v30 = vadd.f32 %v229_v29, %v2138_v35 }
 0x1a5   :  { %238 = vrot.lane.b32.xlu1 %v237_v60, %s2053_s19  ;;  %v232_v31 = vmul.f32 0.5, %v231_v30 }
 0x215   :  { %v221_v61 = vpop.permute.xlu0 %220 }
 0x216   :  { %v223_v62 = vadd.f32 %v221_v61, %v2138_v35 }
 0x217   :  { %v239_v12 = vpop.permute.xlu1 %238 }
 0x218   :  { %v224_v63 = vmul.f32 0.5, %v223_v62 }
 0x21a   :  { %1837 = vtanh.f32 %v224_v63 }
 0x227   :  { %v1838_v0 = vpop.eup %1837 }
 0x228   :  { %v226_v3 = vadd.f32 1.0, %v1838_v0 }
 0x22a   :  { %v227_v5 = vmul.f32 0.5, %v226_v3 }
 0x22c   :  { %v241_v13 = vmul.f32 %v239_v12, %v227_v5 }
 0x22e   :  { %243 = vrot.lane.b32.xlu0 %v241_v13, %s2051_s17 }
 0x2a0   :  { %v244_v18 = vpop.permute.xlu0 %243 }
 0x2a1   :  { %v246_v20 = vadd.f32 %v244_v18, %v2138_v35 }
 0x2a3   :  { %1839 = vtanh.f32 %v246_v20 }
 0x2a4   :  { %1841 = vtanh.f32 %v232_v31 }
 0x2b0   :  { %v1840_v22 = vpop.eup %1839 }
 0x2b1   :  { %250 = vrot.lane.b32.xlu1 %v1840_v22, %s2053_s19  ;;  %v1842_v32 = vpop.eup %1841 }
 0x2b2   :  { %v234_v33 = vadd.f32 1.0, %v1842_v32 }
 0x2b4   :  { %v235_v34 = vmul.f32 0.5, %v234_v33 }
 0x2b6   :  { %v248_v36 = vsub.f32 1.0, %v235_v34  ;;  %v257_v39 = vmul.f32 %v255_v37, %v235_v34 }
 0x323   :  { %v251_v38 = vpop.permute.xlu1 %250 }
 0x324   :  { %v253_v40 = vmul.f32 %v251_v38, %v248_v36 }
 0x326   :  { %v2179_v41 = vadd.f32 %v257_v39, %v253_v40 }
 0x328   :  { %v320_v42 = vmul.f32 %v2179_v41, %v2158_v53  ;;  %v316_v43 = vmul.f32 %v2179_v41, %v2152_v46  ;;  %v318_v0 = vmul.f32 %v2179_v41, %v2094_v10  ;;  %v359_v28 = vrot.slane %v2179_v41, 6 }
 0x32a   :  { %v321_v44 = vadd.f32 %v320_v42, %v2165_v57  ;;  %v317_v45 = vadd.f32 %v316_v43, %v2156_v52  ;;  %v319_v3 = vadd.f32 %v318_v0, %v2097_v11 }
 0x32c   :  { %v341_v47 = vrot.slane %v321_v44, 6  ;;  %v323_v48 = vrot.slane %v317_v45, 6  ;;  %v333_v5 = vrot.slane %v319_v3, 6 }
 0x32e   :  { %342 = vrot.lane.b32.xlu1 %v341_v47, %s2053_s19  ;;  %324 = vrot.lane.b32.xlu0 %v323_v48, %s2053_s19  ;;  %v335_v12 = vadd.f32 %v333_v5, %v2138_v35 }
 0x330   :  { %v336_v13 = vmul.f32 0.5, %v335_v12 }
 0x3a0   :  { %v325_v49 = vpop.permute.xlu0 %324  ;;  %v343_v59 = vpop.permute.xlu1 %342 }
 0x3a1   :  { %v327_v50 = vadd.f32 %v325_v49, %v2138_v35 }
 0x3a3   :  { %v328_v54 = vmul.f32 0.5, %v327_v50  ;;  %v21_v50 = vld [vmem:[%s2899_s0 + $0x8] sm:$0xff] }
 0x3a5   :  { %1843 = vtanh.f32 %v328_v54 }
 0x3b2   :  { %v1844_v55 = vpop.eup %1843 }
 0x3b3   :  { %v330_v56 = vadd.f32 1.0, %v1844_v55 }
 0x3b5   :  { %v331_v58 = vmul.f32 0.5, %v330_v56 }
 0x3b7   :  { %v345_v60 = vmul.f32 %v343_v59, %v331_v58 }
 0x3b9   :  { %347 = vrot.lane.b32.xlu0 %v345_v60, %s2051_s17 }
 0x42b   :  { %v348_v61 = vpop.permute.xlu0 %347 }
 0x42c   :  { %v350_v62 = vadd.f32 %v348_v61, %v2138_v35 }
 0x42e   :  { %1845 = vtanh.f32 %v350_v62 }
 0x42f   :  { %1847 = vtanh.f32 %v336_v13 }
 0x43b   :  { %v1846_v63 = vpop.eup %1845 }
 0x43c   :  { %354 = vrot.lane.b32.xlu1 %v1846_v63, %s2053_s19  ;;  %v1848_v18 = vpop.eup %1847 }
 0x43d   :  { %v338_v20 = vadd.f32 1.0, %v1848_v18 }
 0x43f   :  { %v339_v22 = vmul.f32 0.5, %v338_v20 }
 0x441   :  { %v352_v27 = vsub.f32 1.0, %v339_v22  ;;  %v361_v30 = vmul.f32 %v359_v28, %v339_v22 }
 0x4ae   :  { %v355_v29 = vpop.permute.xlu1 %354 }
 0x4af   :  { %v357_v31 = vmul.f32 %v355_v29, %v352_v27 }
 0x4b1   :  { %v2198_v32 = vadd.f32 %v361_v30, %v357_v31 }
 0x4b3   :  { %v435_v33 = vmul.f32 %v2198_v32, %v2158_v53  ;;  %v431_v34 = vmul.f32 %v2198_v32, %v2152_v46  ;;  %v433_v58 = vmul.f32 %v2198_v32, %v2094_v10  ;;  %v474_v12 = vrot.slane %v2198_v32, 6 }
 0x4b5   :  { %v436_v36 = vadd.f32 %v435_v33, %v2165_v57  ;;  %v432_v37 = vadd.f32 %v431_v34, %v2156_v52  ;;  %v434_v59 = vadd.f32 %v433_v58, %v2097_v11 }
 0x4b7   :  { %v456_v38 = vrot.slane %v436_v36, 6  ;;  %v438_v39 = vrot.slane %v432_v37, 6  ;;  %v448_v60 = vrot.slane %v434_v59, 6 }
 0x4b9   :  { %457 = vrot.lane.b32.xlu1 %v456_v38, %s2053_s19  ;;  %439 = vrot.lane.b32.xlu0 %v438_v39, %s2053_s19  ;;  %v450_v61 = vadd.f32 %v448_v60, %v2138_v35 }
 0x4bb   :  { %v451_v62 = vmul.f32 0.5, %v450_v61 }
 0x52b   :  { %v440_v40 = vpop.permute.xlu0 %439  ;;  %v458_v48 = vpop.permute.xlu1 %457 }
 0x52c   :  { %v442_v42 = vadd.f32 %v440_v40, %v2138_v35 }
 0x52e   :  { %v443_v43 = vmul.f32 0.5, %v442_v42 }
 0x530   :  { %1849 = vtanh.f32 %v443_v43 }
 0x53d   :  { %v1850_v44 = vpop.eup %1849 }
 0x53e   :  { %v445_v45 = vadd.f32 1.0, %v1850_v44 }
 0x540   :  { %v446_v47 = vmul.f32 0.5, %v445_v45 }
 0x542   :  { %v460_v49 = vmul.f32 %v458_v48, %v446_v47 }
 0x544   :  { %462 = vrot.lane.b32.xlu0 %v460_v49, %s2051_s17 }
 0x548   :  { %55 = vperm.xlu0 %1819, %v21_v50  }
 0x54c   :  { %1822 = vset.pattern.permute.xlu0 %v2049_v9 }
 0x54d   :  { %145 = vperm.xlu0 %1822, %v21_v50  }
 0x551   :  { %1823 = vset.pattern.permute.xlu0 %v2046_v1 }
 0x5b6   :  { %v463_v54 = vpop.permute.xlu0 %462 }
 0x5b7   :  { %v465_v55 = vadd.f32 %v463_v54, %v2138_v35 }
 0x5b9   :  { %1851 = vtanh.f32 %v465_v55 }
 0x5ba   :  { %1853 = vtanh.f32 %v451_v62 }
 0x5c3   :  { %v56_v33 = vpop.permute.xlu0 %55 }
 0x5c4   :  { %v73_v36 = vmul.f32 %v2110_v16, %v56_v33 }
 0x5c6   :  { %v1852_v56 = vpop.eup %1851  ;;  %v81_v38 = vadd.f32 %v2123_v23, %v73_v36 }
 0x5c7   :  { %469 = vrot.lane.b32.xlu1 %v1852_v56, %s2053_s19  ;;  %v1854_v63 = vpop.eup %1853 }
 0x5c8   :  { %v453_v0 = vadd.f32 1.0, %v1854_v63  ;;  %v146_v43 = vpop.permute.xlu0 %145 }
 0x5c9   :  { %v161_v45 = vmul.f32 %v2132_v26, %v146_v43 }
 0x5ca   :  { %v454_v3 = vmul.f32 0.5, %v453_v0 }
 0x5cb   :  { %89 = vperm.xlu1 %1820, %v21_v50  }
 0x5cc   :  { %v467_v5 = vsub.f32 1.0, %v454_v3  ;;  %v476_v18 = vmul.f32 %v474_v12, %v454_v3 }
 0x5cf   :  { %1821 = vset.pattern.permute.xlu1 %v2047_v2 }
 0x5d0   :  { %117 = vperm.xlu1 %1821, %v21_v50  }
 0x5d4   :  { %1824 = vset.pattern.permute.xlu1 %v2048_v8 }
 0x639   :  { %v470_v13 = vpop.permute.xlu1 %469 }
 0x63a   :  { %v472_v20 = vmul.f32 %v470_v13, %v467_v5 }
 0x63c   :  { %v2224_v22 = vadd.f32 %v476_v18, %v472_v20 }
 0x63e   :  { %v532_v27 = vmul.f32 %v2224_v22, %v2152_v46  ;;  %v536_v28 = vmul.f32 %v2224_v22, %v2158_v53  ;;  %v534_v63 = vmul.f32 %v2224_v22, %v2094_v10 }
 0x640   :  { %v533_v35 = vadd.f32 %v532_v27, %v2156_v52  ;;  %v537_v30 = vadd.f32 %v536_v28, %v2165_v57  ;;  %v535_v0 = vadd.f32 %v534_v63, %v2097_v11  ;;  %v575_v28 = vrot.slane %v2224_v22, 6 }
 0x642   :  { %v539_v29 = vrot.slane %v533_v35, 6  ;;  %v557_v31 = vrot.slane %v537_v30, 6  ;;  %v549_v3 = vrot.slane %v535_v0, 6 }
 0x644   :  { %540 = vrot.lane.b32.xlu1 %v539_v29, %s2053_s19 }
 0x646   :  { %v90_v34 = vpop.permute.xlu1 %89 }
 0x647   :  { %v105_v37 = vmul.f32 %v2126_v24, %v90_v34 }
 0x648   :  { %558 = vrot.lane.b32.xlu1 %v557_v31, %s2053_s19 }
 0x649   :  { %v109_v40 = vadd.f32 %v105_v37, %v81_v38 }
 0x64b   :  { %v118_v39 = vpop.permute.xlu1 %117 }
 0x64c   :  { %v133_v42 = vmul.f32 %v2129_v25, %v118_v39 }
 0x64e   :  { %v137_v44 = vadd.f32 %v133_v42, %v109_v40 }
 0x650   :  { %v2239_v47 = vadd.f32 %v161_v45, %v137_v44 }
 0x652   :  { %v551_v5 = vadd.f32 %v549_v3, %v2239_v47 }
 0x654   :  { %v552_v12 = vmul.f32 0.5, %v551_v5 }
 0x6b6   :  { %v541_v48 = vpop.permute.xlu1 %540 }
 0x6b7   :  { %v543_v49 = vadd.f32 %v541_v48, %v2239_v47 }
 0x6b9   :  { %v544_v50 = vmul.f32 0.5, %v543_v49 }
 0x6ba   :  { %v559_v58 = vpop.permute.xlu1 %558 }
 0x6bb   :  { %1855 = vtanh.f32 %v544_v50 }
 0x6c8   :  { %v1856_v54 = vpop.eup %1855 }
 0x6c9   :  { %v546_v55 = vadd.f32 1.0, %v1856_v54 }
 0x6cb   :  { %v547_v56 = vmul.f32 0.5, %v546_v55 }
 0x6cd   :  { %v561_v59 = vmul.f32 %v559_v58, %v547_v56 }
 0x6cf   :  { %563 = vrot.lane.b32.xlu0 %v561_v59, %s2051_s17 }
 0x741   :  { %v564_v60 = vpop.permute.xlu0 %563 }
 0x742   :  { %v566_v61 = vadd.f32 %v564_v60, %v2239_v47 }
 0x744   :  { %1857 = vtanh.f32 %v566_v61 }
 0x745   :  { %1859 = vtanh.f32 %v552_v12 }
 0x751   :  { %v1858_v62 = vpop.eup %1857 }
 0x752   :  { %570 = vrot.lane.b32.xlu1 %v1858_v62, %s2053_s19  ;;  %v1860_v13 = vpop.eup %1859 }
 0x753   :  { %v554_v18 = vadd.f32 1.0, %v1860_v13 }
 0x755   :  { %v555_v20 = vmul.f32 0.5, %v554_v18 }
 0x757   :  { %v568_v27 = vsub.f32 1.0, %v555_v20  ;;  %v577_v29 = vmul.f32 %v575_v28, %v555_v20 }
 0x7c4   :  { %v571_v35 = vpop.permute.xlu1 %570 }
 0x7c5   :  { %v573_v30 = vmul.f32 %v571_v35, %v568_v27 }
 0x7c7   :  { %v2250_v31 = vadd.f32 %v577_v29, %v573_v30 }
 0x7c9   :  { %v637_v33 = vmul.f32 %v2250_v31, %v2158_v53  ;;  %v633_v34 = vmul.f32 %v2250_v31, %v2152_v46  ;;  %v635_v58 = vmul.f32 %v2250_v31, %v2094_v10  ;;  %v676_v12 = vrot.slane %v2250_v31, 6 }
 0x7cb   :  { %v638_v36 = vadd.f32 %v637_v33, %v2165_v57  ;;  %v634_v37 = vadd.f32 %v633_v34, %v2156_v52  ;;  %v636_v59 = vadd.f32 %v635_v58, %v2097_v11 }
 0x7cd   :  { %v658_v38 = vrot.slane %v638_v36, 6  ;;  %v640_v39 = vrot.slane %v634_v37, 6  ;;  %v650_v60 = vrot.slane %v636_v59, 6 }
 0x7cf   :  { %659 = vrot.lane.b32.xlu1 %v658_v38, %s2053_s19  ;;  %641 = vrot.lane.b32.xlu0 %v640_v39, %s2053_s19  ;;  %v652_v61 = vadd.f32 %v650_v60, %v2239_v47 }
 0x7d1   :  { %v653_v62 = vmul.f32 0.5, %v652_v61 }
 0x841   :  { %v642_v40 = vpop.permute.xlu0 %641  ;;  %v660_v49 = vpop.permute.xlu1 %659 }
 0x842   :  { %v644_v42 = vadd.f32 %v642_v40, %v2239_v47 }
 0x844   :  { %v645_v43 = vmul.f32 0.5, %v644_v42 }
 0x846   :  { %1861 = vtanh.f32 %v645_v43 }
 0x853   :  { %v1862_v44 = vpop.eup %1861 }
 0x854   :  { %v647_v45 = vadd.f32 1.0, %v1862_v44 }
 0x856   :  { %v648_v48 = vmul.f32 0.5, %v647_v45 }
 0x858   :  { %v662_v50 = vmul.f32 %v660_v49, %v648_v48 }
 0x85a   :  { %664 = vrot.lane.b32.xlu0 %v662_v50, %s2051_s17 }
 0x8cc   :  { %v665_v54 = vpop.permute.xlu0 %664 }
 0x8cd   :  { %v667_v55 = vadd.f32 %v665_v54, %v2239_v47 }
 0x8cf   :  { %1863 = vtanh.f32 %v667_v55 }
 0x8d0   :  { %1865 = vtanh.f32 %v653_v62 }
 0x8dc   :  { %v1864_v56 = vpop.eup %1863 }
 0x8dd   :  { %671 = vrot.lane.b32.xlu1 %v1864_v56, %s2053_s19  ;;  %v1866_v63 = vpop.eup %1865 }
 0x8de   :  { %v655_v0 = vadd.f32 1.0, %v1866_v63 }
 0x8e0   :  { %v656_v3 = vmul.f32 0.5, %v655_v0 }
 0x8e2   :  { %v669_v5 = vsub.f32 1.0, %v656_v3  ;;  %v678_v18 = vmul.f32 %v676_v12, %v656_v3 }
 0x94f   :  { %v672_v13 = vpop.permute.xlu1 %671 }
 0x950   :  { %v674_v20 = vmul.f32 %v672_v13, %v669_v5 }
 0x952   :  { %v2269_v27 = vadd.f32 %v678_v18, %v674_v20 }
 0x954   :  { %v735_v28 = vmul.f32 %v2269_v27, %v2158_v53  ;;  %v731_v35 = vmul.f32 %v2269_v27, %v2152_v46  ;;  %v733_v50 = vmul.f32 %v2269_v27, %v2094_v10  ;;  %v774_v63 = vrot.slane %v2269_v27, 6 }
 0x956   :  { %v736_v29 = vadd.f32 %v735_v28, %v2165_v57  ;;  %v732_v30 = vadd.f32 %v731_v35, %v2156_v52  ;;  %v734_v54 = vadd.f32 %v733_v50, %v2097_v11 }
 0x958   :  { %v756_v33 = vrot.slane %v736_v29, 6  ;;  %v738_v34 = vrot.slane %v732_v30, 6  ;;  %v748_v55 = vrot.slane %v734_v54, 6 }
 0x95a   :  { %757 = vrot.lane.b32.xlu1 %v756_v33, %s2053_s19  ;;  %739 = vrot.lane.b32.xlu0 %v738_v34, %s2053_s19  ;;  %v750_v56 = vadd.f32 %v748_v55, %v2239_v47 }
 0x95c   :  { %v751_v58 = vmul.f32 0.5, %v750_v56 }
 0x9cc   :  { %v740_v36 = vpop.permute.xlu0 %739  ;;  %v758_v43 = vpop.permute.xlu1 %757 }
 0x9cd   :  { %v742_v37 = vadd.f32 %v740_v36, %v2239_v47 }
 0x9cf   :  { %v743_v38 = vmul.f32 0.5, %v742_v37 }
 0x9d1   :  { %1867 = vtanh.f32 %v743_v38 }
 0x9de   :  { %v1868_v39 = vpop.eup %1867 }
 0x9df   :  { %v745_v40 = vadd.f32 1.0, %v1868_v39 }
 0x9e1   :  { %v746_v42 = vmul.f32 0.5, %v745_v40 }
 0x9e3   :  { %v760_v44 = vmul.f32 %v758_v43, %v746_v42  ;;  %v22_v42 = vld [vmem:[%s2899_s0 + $0x10] sm:$0xff] }
 0x9e5   :  { %762 = vrot.lane.b32.xlu0 %v760_v44, %s2051_s17 }
 0xa57   :  { %v763_v45 = vpop.permute.xlu0 %762 }
 0xa58   :  { %v765_v48 = vadd.f32 %v763_v45, %v2239_v47 }
 0xa5a   :  { %1869 = vtanh.f32 %v765_v48 }
 0xa5b   :  { %1871 = vtanh.f32 %v751_v58 }
 0xa67   :  { %v1870_v49 = vpop.eup %1869 }
 0xa68   :  { %769 = vrot.lane.b32.xlu1 %v1870_v49, %s2053_s19  ;;  %v1872_v59 = vpop.eup %1871 }
 0xa69   :  { %v753_v60 = vadd.f32 1.0, %v1872_v59 }
 0xa6b   :  { %v754_v61 = vmul.f32 0.5, %v753_v60 }
 0xa6d   :  { %v767_v62 = vsub.f32 1.0, %v754_v61  ;;  %v776_v3 = vmul.f32 %v774_v63, %v754_v61 }
 0xada   :  { %v770_v0 = vpop.permute.xlu1 %769 }
 0xadb   :  { %v772_v5 = vmul.f32 %v770_v0, %v767_v62 }
 0xadd   :  { %v2288_v12 = vadd.f32 %v776_v3, %v772_v5 }
 0xadf   :  { %v836_v13 = vmul.f32 %v2288_v12, %v2158_v53  ;;  %v832_v18 = vmul.f32 %v2288_v12, %v2152_v46  ;;  %v834_v48 = vmul.f32 %v2288_v12, %v2094_v10  ;;  %v875_v60 = vrot.slane %v2288_v12, 6 }
 0xae1   :  { %v837_v20 = vadd.f32 %v836_v13, %v2165_v57  ;;  %v833_v28 = vadd.f32 %v832_v18, %v2156_v52  ;;  %v835_v49 = vadd.f32 %v834_v48, %v2097_v11 }
 0xae3   :  { %v857_v35 = vrot.slane %v837_v20, 6  ;;  %v839_v29 = vrot.slane %v833_v28, 6  ;;  %v849_v50 = vrot.slane %v835_v49, 6 }
 0xae5   :  { %858 = vrot.lane.b32.xlu1 %v857_v35, %s2053_s19  ;;  %840 = vrot.lane.b32.xlu0 %v839_v29, %s2053_s19 }
 0xb57   :  { %v841_v30 = vpop.permute.xlu0 %840  ;;  %v859_v39 = vpop.permute.xlu1 %858 }
 0xb58   :  { %v843_v33 = vadd.f32 %v841_v30, %v2239_v47 }
 0xb5a   :  { %v844_v34 = vmul.f32 0.5, %v843_v33 }
 0xb5c   :  { %1873 = vtanh.f32 %v844_v34 }
 0xb69   :  { %v1874_v36 = vpop.eup %1873 }
 0xb6a   :  { %v846_v37 = vadd.f32 1.0, %v1874_v36 }
 0xb6c   :  { %v847_v38 = vmul.f32 0.5, %v846_v37 }
 0xb6e   :  { %v861_v40 = vmul.f32 %v859_v39, %v847_v38 }
 0xb70   :  { %863 = vrot.lane.b32.xlu0 %v861_v40, %s2051_s17 }
 0xb74   :  { %60 = vperm.xlu0 %1823, %v22_v42  }
 0xb78   :  { %1826 = vset.pattern.permute.xlu0 %v2049_v9 }
 0xb79   :  { %149 = vperm.xlu0 %1826, %v22_v42  }
 0xb7d   :  { %1827 = vset.pattern.permute.xlu0 %v2046_v1  ;;  %v851_v1 = vadd.f32 %v849_v50, %v2239_v47 }
 0xb7f   :  { %v852_v54 = vmul.f32 0.5, %v851_v1 }
 0xbe2   :  { %v864_v43 = vpop.permute.xlu0 %863 }
 0xbe3   :  { %v866_v44 = vadd.f32 %v864_v43, %v2239_v47 }
 0xbe5   :  { %1875 = vtanh.f32 %v866_v44 }
 0xbe6   :  { %1877 = vtanh.f32 %v852_v54 }
 0xbef   :  { %v61_v28 = vpop.permute.xlu0 %60 }
 0xbf0   :  { %v74_v29 = vmul.f32 %v2110_v16, %v61_v28 }
 0xbf2   :  { %v1876_v45 = vpop.eup %1875  ;;  %v82_v33 = vadd.f32 %v2123_v23, %v74_v29 }
 0xbf3   :  { %870 = vrot.lane.b32.xlu1 %v1876_v45, %s2053_s19  ;;  %v1878_v55 = vpop.eup %1877 }
 0xbf4   :  { %v854_v56 = vadd.f32 1.0, %v1878_v55  ;;  %v150_v38 = vpop.permute.xlu0 %149 }
 0xbf5   :  { %v162_v40 = vmul.f32 %v2132_v26, %v150_v38 }
 0xbf6   :  { %v855_v58 = vmul.f32 0.5, %v854_v56 }
 0xbf7   :  { %93 = vperm.xlu1 %1824, %v22_v42  }
 0xbf8   :  { %v868_v59 = vsub.f32 1.0, %v855_v58  ;;  %v877_v62 = vmul.f32 %v875_v60, %v855_v58 }
 0xbfb   :  { %1825 = vset.pattern.permute.xlu1 %v2047_v2 }
 0xbfc   :  { %121 = vperm.xlu1 %1825, %v22_v42  }
 0xc00   :  { %1828 = vset.pattern.permute.xlu1 %v2048_v8 }
 0xc65   :  { %v871_v61 = vpop.permute.xlu1 %870 }
 0xc66   :  { %v873_v63 = vmul.f32 %v871_v61, %v868_v59 }
 0xc68   :  { %v2314_v0 = vadd.f32 %v877_v62, %v873_v63 }
 0xc6a   :  { %v933_v3 = vmul.f32 %v2314_v0, %v2152_v46  ;;  %v937_v5 = vmul.f32 %v2314_v0, %v2158_v53  ;;  %v935_v59 = vmul.f32 %v2314_v0, %v2094_v10 }
 0xc6c   :  { %v934_v47 = vadd.f32 %v933_v3, %v2156_v52  ;;  %v938_v18 = vadd.f32 %v937_v5, %v2165_v57  ;;  %v936_v60 = vadd.f32 %v935_v59, %v2097_v11 }
 0xc6e   :  { %v940_v13 = vrot.slane %v934_v47, 6  ;;  %v958_v20 = vrot.slane %v938_v18, 6  ;;  %v950_v61 = vrot.slane %v936_v60, 6  ;;  %v976_v18 = vrot.slane %v2314_v0, 6 }
 0xc70   :  { %941 = vrot.lane.b32.xlu1 %v940_v13, %s2053_s19 }
 0xc72   :  { %v94_v35 = vpop.permute.xlu1 %93 }
 0xc73   :  { %v106_v30 = vmul.f32 %v2126_v24, %v94_v35 }
 0xc74   :  { %959 = vrot.lane.b32.xlu1 %v958_v20, %s2053_s19 }
 0xc75   :  { %v110_v36 = vadd.f32 %v106_v30, %v82_v33 }
 0xc77   :  { %v122_v34 = vpop.permute.xlu1 %121 }
 0xc78   :  { %v134_v37 = vmul.f32 %v2129_v25, %v122_v34 }
 0xc7a   :  { %v138_v39 = vadd.f32 %v134_v37, %v110_v36 }
 0xc7c   :  { %v2329_v42 = vadd.f32 %v162_v40, %v138_v39 }
 0xc7e   :  { %v952_v62 = vadd.f32 %v950_v61, %v2329_v42 }
 0xc80   :  { %v953_v63 = vmul.f32 0.5, %v952_v62 }
 0xce2   :  { %v942_v43 = vpop.permute.xlu1 %941 }
 0xce3   :  { %v944_v44 = vadd.f32 %v942_v43, %v2329_v42 }
 0xce5   :  { %v945_v45 = vmul.f32 0.5, %v944_v44 }
 0xce6   :  { %v960_v1 = vpop.permute.xlu1 %959 }
 0xce7   :  { %1879 = vtanh.f32 %v945_v45 }
 0xcf4   :  { %v1880_v48 = vpop.eup %1879 }
 0xcf5   :  { %v947_v49 = vadd.f32 1.0, %v1880_v48 }
 0xcf7   :  { %v948_v50 = vmul.f32 0.5, %v947_v49 }
 0xcf9   :  { %v962_v54 = vmul.f32 %v960_v1, %v948_v50 }
 0xcfb   :  { %964 = vrot.lane.b32.xlu0 %v962_v54, %s2051_s17 }
 0xd6d   :  { %v965_v55 = vpop.permute.xlu0 %964 }
 0xd6e   :  { %v967_v56 = vadd.f32 %v965_v55, %v2329_v42 }
 0xd70   :  { %1881 = vtanh.f32 %v967_v56 }
 0xd71   :  { %1883 = vtanh.f32 %v953_v63 }
 0xd7d   :  { %v1882_v58 = vpop.eup %1881 }
 0xd7e   :  { %971 = vrot.lane.b32.xlu1 %v1882_v58, %s2053_s19  ;;  %v1884_v3 = vpop.eup %1883 }
 0xd7f   :  { %v955_v5 = vadd.f32 1.0, %v1884_v3 }
 0xd81   :  { %v956_v47 = vmul.f32 0.5, %v955_v5 }
 0xd83   :  { %v969_v13 = vsub.f32 1.0, %v956_v47  ;;  %v978_v28 = vmul.f32 %v976_v18, %v956_v47 }
 0xdf0   :  { %v972_v20 = vpop.permute.xlu1 %971 }
 0xdf1   :  { %v974_v35 = vmul.f32 %v972_v20, %v969_v13 }
 0xdf3   :  { %v2340_v29 = vadd.f32 %v978_v28, %v974_v35 }
 0xdf5   :  { %v1038_v30 = vmul.f32 %v2340_v29, %v2158_v53  ;;  %v1034_v33 = vmul.f32 %v2340_v29, %v2152_v46  ;;  %v1036_v56 = vmul.f32 %v2340_v29, %v2094_v10  ;;  %v1077_v47 = vrot.slane %v2340_v29, 6 }
 0xdf7   :  { %v1039_v34 = vadd.f32 %v1038_v30, %v2165_v57  ;;  %v1035_v36 = vadd.f32 %v1034_v33, %v2156_v52  ;;  %v1037_v58 = vadd.f32 %v1036_v56, %v2097_v11 }
 0xdf9   :  { %v1059_v37 = vrot.slane %v1039_v34, 6  ;;  %v1041_v38 = vrot.slane %v1035_v36, 6  ;;  %v1051_v59 = vrot.slane %v1037_v58, 6 }
 0xdfb   :  { %1060 = vrot.lane.b32.xlu1 %v1059_v37, %s2053_s19  ;;  %1042 = vrot.lane.b32.xlu0 %v1041_v38, %s2053_s19  ;;  %v1053_v60 = vadd.f32 %v1051_v59, %v2329_v42 }
 0xdfd   :  { %v1054_v61 = vmul.f32 0.5, %v1053_v60 }
 0xe6d   :  { %v1043_v39 = vpop.permute.xlu0 %1042  ;;  %v1061_v49 = vpop.permute.xlu1 %1060 }
 0xe6e   :  { %v1045_v40 = vadd.f32 %v1043_v39, %v2329_v42 }
 0xe70   :  { %v1046_v43 = vmul.f32 0.5, %v1045_v40 }
 0xe72   :  { %1885 = vtanh.f32 %v1046_v43 }
 0xe7f   :  { %v1886_v44 = vpop.eup %1885 }
 0xe80   :  { %v1048_v45 = vadd.f32 1.0, %v1886_v44 }
 0xe82   :  { %v1049_v48 = vmul.f32 0.5, %v1048_v45 }
 0xe84   :  { %v1063_v50 = vmul.f32 %v1061_v49, %v1049_v48 }
 0xe86   :  { %1065 = vrot.lane.b32.xlu0 %v1063_v50, %s2051_s17 }
 0xef8   :  { %v1066_v1 = vpop.permute.xlu0 %1065 }
 0xef9   :  { %v1068_v54 = vadd.f32 %v1066_v1, %v2329_v42 }
 0xefb   :  { %1887 = vtanh.f32 %v1068_v54 }
 0xefc   :  { %1889 = vtanh.f32 %v1054_v61 }
 0xf08   :  { %v1888_v55 = vpop.eup %1887 }
 0xf09   :  { %1072 = vrot.lane.b32.xlu1 %v1888_v55, %s2053_s19  ;;  %v1890_v62 = vpop.eup %1889 }
 0xf0a   :  { %v1056_v63 = vadd.f32 1.0, %v1890_v62 }
 0xf0c   :  { %v1057_v3 = vmul.f32 0.5, %v1056_v63 }
 0xf0e   :  { %v1070_v5 = vsub.f32 1.0, %v1057_v3  ;;  %v1079_v18 = vmul.f32 %v1077_v47, %v1057_v3 }
 0xf7b   :  { %v1073_v13 = vpop.permute.xlu1 %1072 }
 0xf7c   :  { %v1075_v20 = vmul.f32 %v1073_v13, %v1070_v5 }
 0xf7e   :  { %v2359_v28 = vadd.f32 %v1079_v18, %v1075_v20 }
 0xf80   :  { %v1136_v35 = vmul.f32 %v2359_v28, %v2158_v53  ;;  %v1132_v30 = vmul.f32 %v2359_v28, %v2152_v46  ;;  %v1134_v55 = vmul.f32 %v2359_v28, %v2094_v10  ;;  %v1175_v5 = vrot.slane %v2359_v28, 6 }
 0xf82   :  { %v1137_v33 = vadd.f32 %v1136_v35, %v2165_v57  ;;  %v1133_v34 = vadd.f32 %v1132_v30, %v2156_v52  ;;  %v1135_v56 = vadd.f32 %v1134_v55, %v2097_v11 }
 0xf84   :  { %v1157_v36 = vrot.slane %v1137_v33, 6  ;;  %v1139_v37 = vrot.slane %v1133_v34, 6  ;;  %v1149_v58 = vrot.slane %v1135_v56, 6  ;;  %v16_v56 = vld [vmem:[%s2900_s1 + $0x8] sm:$0x7] }
 0xf86   :  { %1158 = vrot.lane.b32.xlu1 %v1157_v36, %s2053_s19  ;;  %1140 = vrot.lane.b32.xlu0 %v1139_v37, %s2053_s19  ;;  %v1151_v59 = vadd.f32 %v1149_v58, %v2329_v42  ;;  %v2418_v58 = vrot.slane %v16_v56, %v2116_v19 }
 0xf88   :  { %v1152_v60 = vmul.f32 0.5, %v1151_v59 }
 0xff8   :  { %v1141_v38 = vpop.permute.xlu0 %1140  ;;  %v1159_v48 = vpop.permute.xlu1 %1158 }
 0xff9   :  { %v1143_v39 = vadd.f32 %v1141_v38, %v2329_v42 }
 0xffb   :  { %v1144_v40 = vmul.f32 0.5, %v1143_v39 }
 0xffd   :  { %1891 = vtanh.f32 %v1144_v40 }
0x100a   :  { %v1892_v43 = vpop.eup %1891 }
0x100b   :  { %v1146_v44 = vadd.f32 1.0, %v1892_v43 }
0x100d   :  { %v1147_v45 = vmul.f32 0.5, %v1146_v44 }
0x100f   :  { %v1161_v49 = vmul.f32 %v1159_v48, %v1147_v45 }
0x1011   :  { %1163 = vrot.lane.b32.xlu0 %v1161_v49, %s2051_s17 }
0x1083   :  { %v1164_v50 = vpop.permute.xlu0 %1163 }
0x1084   :  { %v1166_v1 = vadd.f32 %v1164_v50, %v2329_v42  ;;  %v23_v50 = vld [vmem:[%s2899_s0 + $0x18] sm:$0xff] }
0x1086   :  { %1893 = vtanh.f32 %v1166_v1  ;;  %v2394_v1 = vsub.s32 7, %v2080_v4  ;;  %v2410_v4 = vrot.slane %v16_v56, %v2104_v14 }
0x1087   :  { %1895 = vtanh.f32 %v1152_v60 }
0x1088   :  { %v279_v59 = vmul.f32 0.0, %v2410_v4 }
0x108a   :  { %v2424_v60 = vadd.f32 %v279_v59, %v2418_v58 }
0x1093   :  { %v1894_v54 = vpop.eup %1893 }
0x1094   :  { %1170 = vrot.lane.b32.xlu1 %v1894_v54, %s2053_s19  ;;  %v1896_v61 = vpop.eup %1895  ;;  %v2023_v54 = vld [vmem:[%s2900_s1] sm:$0xff] }
0x1095   :  { %v1154_v62 = vadd.f32 1.0, %v1896_v61  ;;  %v2401_v55 = vrot.slane %v2023_v54, %v2394_v1 }
0x1097   :  { %v1155_v63 = vmul.f32 0.5, %v1154_v62 }
0x1099   :  { %v1168_v3 = vsub.f32 1.0, %v1155_v63  ;;  %v1177_v13 = vmul.f32 %v1175_v5, %v1155_v63 }
0x1106   :  { %v1171_v47 = vpop.permute.xlu1 %1170 }
0x1107   :  { %v1173_v18 = vmul.f32 %v1171_v47, %v1168_v3 }
0x1109   :  { %v2378_v20 = vadd.f32 %v1177_v13, %v1173_v18 }
0x110b   :  { %v1237_v35 = vmul.f32 %v2378_v20, %v2158_v53  ;;  %v1233_v30 = vmul.f32 %v2378_v20, %v2152_v46  ;;  %v1235_v3 = vmul.f32 %v2378_v20, %v2094_v10 }
0x110d   :  { %v1238_v33 = vadd.f32 %v1237_v35, %v2165_v57  ;;  %v1234_v34 = vadd.f32 %v1233_v30, %v2156_v52  ;;  %v1236_v5 = vadd.f32 %v1235_v3, %v2097_v11 }
0x110f   :  { %v1258_v36 = vrot.slane %v1238_v33, 6  ;;  %v1240_v37 = vrot.slane %v1234_v34, 6  ;;  %v1250_v47 = vrot.slane %v1236_v5, 6 }
0x1111   :  { %1259 = vrot.lane.b32.xlu1 %v1258_v36, %s2053_s19  ;;  %1241 = vrot.lane.b32.xlu0 %v1240_v37, %s2053_s19  ;;  %v1252_v13 = vadd.f32 %v1250_v47, %v2329_v42  ;;  %v1276_v36 = vrot.slane %v2378_v20, 6 }
0x1113   :  { %v1253_v18 = vmul.f32 0.5, %v1252_v13 }
0x1183   :  { %v1242_v38 = vpop.permute.xlu0 %1241  ;;  %v1260_v48 = vpop.permute.xlu1 %1259 }
0x1184   :  { %v1244_v39 = vadd.f32 %v1242_v38, %v2329_v42 }
0x1186   :  { %v1245_v40 = vmul.f32 0.5, %v1244_v39 }
0x1188   :  { %1897 = vtanh.f32 %v1245_v40 }
0x1195   :  { %v1898_v43 = vpop.eup %1897 }
0x1196   :  { %v1247_v44 = vadd.f32 1.0, %v1898_v43 }
0x1198   :  { %v1248_v45 = vmul.f32 0.5, %v1247_v44 }
0x119a   :  { %v1262_v49 = vmul.f32 %v1260_v48, %v1248_v45 }
0x119c   :  { %1264 = vrot.lane.b32.xlu0 %v1262_v49, %s2051_s17 }
0x11a0   :  { %65 = vperm.xlu0 %1827, %v23_v50  }
0x11a4   :  { %1830 = vset.pattern.permute.xlu0 %v2049_v9  ;;  %v2413_v9 = vrot.slane %v16_v56, %v2113_v17 }
0x11a5   :  { %153 = vperm.xlu0 %1830, %v23_v50  }
0x11a9   :  { %260 = vrot.lane.b32.xlu0 %v2401_v55, %s2052_s18 }
0x11aa   :  { %1831 = vset.pattern.permute.xlu0 %v2048_v8 }
0x11ad   :  { %265 = vrot.lane.b32.xlu0 %v2413_v9, %s2052_s18 }
0x11b1   :  { %271 = vrot.lane.b32.xlu0 %v2401_v55, %s2053_s19 }
0x11b5   :  { %295 = vrot.lane.b32.xlu0 %v2424_v60, %s2053_s19 }
0x11b9   :  { %375 = vrot.lane.b32.xlu0 %v2418_v58, %s2052_s18 }
0x11bd   :  { %385 = vrot.lane.b32.xlu0 %v2418_v58, %s2053_s19 }
0x120e   :  { %v1265_v61 = vpop.permute.xlu0 %1264 }
0x120f   :  { %v1267_v62 = vadd.f32 %v1265_v61, %v2329_v42 }
0x1211   :  { %1899 = vtanh.f32 %v1267_v62 }
0x1212   :  { %1901 = vtanh.f32 %v1253_v18 }
0x121b   :  { %v66_v48 = vpop.permute.xlu0 %65 }
0x121e   :  { %v1900_v63 = vpop.eup %1899 }
0x121f   :  { %1271 = vrot.lane.b32.xlu1 %v1900_v63, %s2053_s19  ;;  %v1902_v35 = vpop.eup %1901 }
0x1220   :  { %v1255_v30 = vadd.f32 1.0, %v1902_v35  ;;  %v154_v63 = vpop.permute.xlu0 %153 }
0x1221   :  { %v163_v3 = vmul.f32 %v2132_v26, %v154_v63 }
0x1222   :  { %v1256_v33 = vmul.f32 0.5, %v1255_v30 }
0x1223   :  { %97 = vperm.xlu1 %1828, %v23_v50  }
0x1224   :  { %v1269_v34 = vsub.f32 1.0, %v1256_v33  ;;  %v1278_v37 = vmul.f32 %v1276_v36, %v1256_v33  ;;  %v2470_v36 = vpop.permute.xlu0 %260 }
0x1227   :  { %1829 = vset.pattern.permute.xlu1 %v2047_v2 }
0x1228   :  { %125 = vperm.xlu1 %1829, %v23_v50   ;;  %v75_v50 = vmul.f32 %v2110_v16, %v66_v48 }
0x122a   :  { %v83_v54 = vadd.f32 %v2123_v23, %v75_v50 }
0x122c   :  { %1832 = vset.pattern.permute.xlu1 %v2048_v8 }
0x1291   :  { %v1272_v2 = vpop.permute.xlu1 %1271 }
0x1292   :  { %v1274_v38 = vmul.f32 %v1272_v2, %v1269_v34  ;;  %v2472_v2 = vpop.permute.xlu0 %265 }
0x1294   :  { %v2441_v8 = vadd.f32 %v1278_v37, %v1274_v38  ;;  %v263_v37 = vmul.f32 %v2470_v36, %v2154_v51 }
0x1296   :  { %v1334_v39 = vmul.f32 %v2441_v8, %v2152_v46  ;;  %v1338_v40 = vmul.f32 %v2441_v8, %v2158_v53  ;;  %v2481_v50 = vpop.permute.xlu0 %271 }
0x1298   :  { %v1335_v42 = vadd.f32 %v1334_v39, %v2156_v52  ;;  %v1339_v44 = vadd.f32 %v1338_v40, %v2165_v57  ;;  %v268_v39 = vadd.f32 %v2472_v2, %v263_v37 }
0x129a   :  { %v1341_v43 = vrot.slane %v1335_v42, 6  ;;  %v1359_v45 = vrot.slane %v1339_v44, 6 }
0x129c   :  { %1342 = vrot.lane.b32.xlu1 %v1341_v43, %s2053_s19  ;;  %v269_v43 = vmul.f32 %v2154_v51, %v2401_v55 }
0x129e   :  { %v98_v49 = vpop.permute.xlu1 %97  ;;  %v270_v44 = vadd.f32 %v269_v43, %v2413_v9 }
0x129f   :  { %v107_v56 = vmul.f32 %v2126_v24, %v98_v49 }
0x12a0   :  { %1360 = vrot.lane.b32.xlu1 %v1359_v45, %s2053_s19  ;;  %v290_v48 = vadd.f32 %v2424_v60, %v270_v44  ;;  %v363_v44 = vmul.f32 %v2470_v36, %v2179_v41 }
0x12a1   :  { %v111_v61 = vadd.f32 %v107_v56, %v83_v54 }
0x12a2   :  { %v291_v54 = vmul.f32 0.5, %v290_v48  ;;  %v364_v48 = vadd.f32 %v363_v44, %v2472_v2 }
0x12a3   :  { %v126_v59 = vpop.permute.xlu1 %125 }
0x12a4   :  { %v135_v62 = vmul.f32 %v2129_v25, %v126_v59  ;;  %v296_v59 = vpop.permute.xlu0 %295 }
0x12a6   :  { %v139_v5 = vadd.f32 %v135_v62, %v111_v61  ;;  %v274_v62 = vmul.f32 %v2481_v50, %v2154_v51 }
0x12a8   :  { %v2456_v47 = vadd.f32 %v163_v3, %v139_v5 }
0x130e   :  { %v1343_v13 = vpop.permute.xlu1 %1342 }
0x130f   :  { %v1345_v18 = vadd.f32 %v1343_v13, %v2456_v47  ;;  %v1336_v13 = vmul.f32 %v2441_v8, %v2094_v10 }
0x1311   :  { %v1346_v35 = vmul.f32 0.5, %v1345_v18 }
0x1312   :  { %v1361_v33 = vpop.permute.xlu1 %1360 }
0x1313   :  { %1903 = vtanh.f32 %v1346_v35 }
0x1320   :  { %v1904_v16 = vpop.eup %1903 }
0x1321   :  { %v1348_v30 = vadd.f32 1.0, %v1904_v16 }
0x1323   :  { %v1349_v23 = vmul.f32 0.5, %v1348_v30 }
0x1325   :  { %v1363_v24 = vmul.f32 %v1361_v33, %v1349_v23 }
0x1327   :  { %1365 = vrot.lane.b32.xlu1 %v1363_v24, %s2051_s17 }
0x132b   :  { %282 = vrot.lane.b32.xlu1 %v2424_v60, %s2052_s18  ;;  %v1337_v60 = vadd.f32 %v1336_v13, %v2097_v11 }
0x132d   :  { %v1351_v16 = vrot.slane %v1337_v60, 6 }
0x132f   :  { %275 = vrot.lane.b32.xlu1 %v2413_v9, %s2053_s19  ;;  %v1353_v30 = vadd.f32 %v1351_v16, %v2456_v47 }
0x1331   :  { %v1354_v33 = vmul.f32 0.5, %v1353_v30 }
0x1333   :  { %370 = vrot.lane.b32.xlu1 %v2410_v4, %s2052_s18 }
0x1337   :  { %381 = vrot.lane.b32.xlu1 %v2410_v4, %s2053_s19 }
0x1399   :  { %v1366_v25 = vpop.permute.xlu1 %1365 }
0x139a   :  { %v1368_v26 = vadd.f32 %v1366_v25, %v2456_v47 }
0x139c   :  { %1905 = vtanh.f32 %v1368_v26 }
0x139d   :  { %v283_v38 = vpop.permute.xlu1 %282 }
0x139e   :  { %v285_v40 = vadd.f32 %v283_v38, %v268_v39  ;;  %v2498_v39 = vpop.permute.xlu0 %375 }
0x13a0   :  { %v286_v42 = vmul.f32 0.5, %v285_v40 }
0x13a1   :  { %v2483_v61 = vpop.permute.xlu1 %275 }
0x13a2   :  { %1907 = vtanh.f32 %v286_v42  ;;  %v278_v3 = vadd.f32 %v2483_v61, %v274_v62  ;;  %v1377_v62 = vrot.slane %v2441_v8, 6  ;;  %v2525_v44 = vpop.permute.xlu0 %385 }
0x13a3   :  { %1909 = vtanh.f32 %v291_v54 }
0x13a5   :  { %v2494_v37 = vpop.permute.xlu1 %370 }
0x13a9   :  { %v1906_v34 = vpop.eup %1905 }
0x13aa   :  { %1372 = vrot.lane.b32.xlu1 %v1906_v34, %s2053_s19 }
0x13af   :  { %v1908_v45 = vpop.eup %1907 }
0x13b0   :  { %v288_v49 = vadd.f32 1.0, %v1908_v45  ;;  %v1910_v18 = vpop.eup %1909 }
0x13b1   :  { %v293_v35 = vadd.f32 1.0, %v1910_v18 }
0x13b2   :  { %v289_v56 = vmul.f32 0.5, %v288_v49 }
0x13b3   :  { %v294_v23 = vmul.f32 0.5, %v293_v35 }
0x13b4   :  { %v298_v63 = vmul.f32 %v296_v59, %v289_v56  ;;  %v2504_v56 = vpop.permute.xlu1 %381 }
0x13b5   :  { %v301_v25 = vsub.f32 1.0, %v294_v23  ;;  %v303_v26 = vmul.f32 0.0, %v294_v23 }
0x13b6   :  { %v299_v5 = vadd.f32 %v298_v63, %v278_v3 }
0x13b8   :  { %1911 = vtanh.f32 %v299_v5 }
0x13b9   :  { %1913 = vtanh.f32 %v1354_v33 }
0x13c5   :  { %v1912_v24 = vpop.eup %1911 }
0x13c6   :  { %v302_v51 = vmul.f32 %v1912_v24, %v301_v25  ;;  %v1914_v42 = vpop.eup %1913 }
0x13c7   :  { %v1356_v43 = vadd.f32 1.0, %v1914_v42 }
0x13c8   :  { %v2492_v34 = vadd.f32 %v303_v26, %v302_v51  ;;  %v365_v51 = vmul.f32 %v2179_v41, %v2401_v55 }
0x13c9   :  { %v1357_v49 = vmul.f32 0.5, %v1356_v43 }
0x13ca   :  { %v373_v38 = vmul.f32 %v2494_v37, %v2492_v34  ;;  %v379_v35 = vmul.f32 %v2492_v34, %v2410_v4  ;;  %v384_v42 = vmul.f32 %v2504_v56, %v2492_v34 }
0x13cb   :  { %v1370_v59 = vsub.f32 1.0, %v1357_v49  ;;  %v1379_v5 = vmul.f32 %v1377_v62, %v1357_v49  ;;  %v367_v62 = vmul.f32 %v2481_v50, %v2179_v41 }
0x13cc   :  { %v378_v40 = vadd.f32 %v2498_v39, %v373_v38  ;;  %v380_v24 = vadd.f32 %v379_v35, %v2418_v58  ;;  %v366_v38 = vadd.f32 %v365_v51, %v2413_v9 }
0x13ce   :  { %v390_v45 = vrot.slane %v378_v40, 6  ;;  %v398_v26 = vrot.slane %v380_v24, 6 }
0x13d0   :  { %v392_v54 = vadd.f32 %v390_v45, %v364_v48  ;;  %v400_v43 = vadd.f32 %v398_v26, %v366_v38  ;;  %v388_v48 = vadd.f32 %v2525_v44, %v384_v42  ;;  %v478_v26 = vmul.f32 %v2198_v32, %v2470_v36 }
0x13d2   :  { %v393_v63 = vmul.f32 0.5, %v392_v54  ;;  %v401_v49 = vmul.f32 0.5, %v400_v43 }
0x13d4   :  { %1915 = vtanh.f32 %v393_v63 }
0x13d5   :  { %1917 = vtanh.f32 %v401_v49  ;;  %v480_v49 = vmul.f32 %v2198_v32, %v2401_v55 }
0x13e1   :  { %v1916_v40 = vpop.eup %1915 }
0x13e2   :  { %v395_v45 = vadd.f32 1.0, %v1916_v40  ;;  %v479_v40 = vadd.f32 %v478_v26, %v2472_v2 }
0x13e4   :  { %v396_v54 = vmul.f32 0.5, %v395_v45 }
0x141c   :  { %v1373_v3 = vpop.permute.xlu1 %1372 }
0x141d   :  { %v1375_v13 = vmul.f32 %v1373_v3, %v1370_v59  ;;  %v406_v59 = vrot.slane %v388_v48, 6  ;;  %v368_v3 = vadd.f32 %v367_v62, %v2483_v61 }
0x141f   :  { %v2507_v60 = vadd.f32 %v1379_v5, %v1375_v13  ;;  %v408_v63 = vmul.f32 %v406_v59, %v396_v54  ;;  %v1918_v13 = vpop.eup %1917  ;;  %v481_v59 = vadd.f32 %v480_v49, %v2413_v9 }
0x1421   :  { %v1439_v18 = vmul.f32 %v2507_v60, %v2158_v53  ;;  %v1435_v16 = vmul.f32 %v2507_v60, %v2152_v46  ;;  %v409_v5 = vadd.f32 %v408_v63, %v368_v3 }
0x1423   :  { %v1440_v30 = vadd.f32 %v1439_v18, %v2165_v57  ;;  %v1436_v23 = vadd.f32 %v1435_v16, %v2156_v52  ;;  %1919 = vtanh.f32 %v409_v5  ;;  %v403_v18 = vadd.f32 1.0, %v1918_v13 }
0x1425   :  { %v1460_v33 = vrot.slane %v1440_v30, 6  ;;  %v1442_v25 = vrot.slane %v1436_v23, 6  ;;  %v404_v35 = vmul.f32 0.5, %v403_v18 }
0x1427   :  { %1461 = vrot.lane.b32.xlu1 %v1460_v33, %s2053_s19  ;;  %1443 = vrot.lane.b32.xlu0 %v1442_v25, %s2053_s19  ;;  %v411_v30 = vsub.f32 1.0, %v404_v35  ;;  %v413_v33 = vrot.slane %v2492_v34, 6 }
0x1429   :  { %v415_v24 = vmul.f32 %v413_v33, %v404_v35 }
0x1430   :  { %v1920_v16 = vpop.eup %1919 }
0x1431   :  { %v412_v23 = vmul.f32 %v1920_v16, %v411_v30 }
0x1433   :  { %v2532_v25 = vadd.f32 %v415_v24, %v412_v23  ;;  %v482_v23 = vmul.f32 %v2198_v32, %v2481_v50 }
0x1435   :  { %v484_v51 = vmul.f32 %v2532_v25, %v2494_v37  ;;  %v486_v45 = vmul.f32 %v2532_v25, %v2410_v4  ;;  %v488_v63 = vmul.f32 %v2532_v25, %v2504_v56  ;;  %v483_v33 = vadd.f32 %v482_v23, %v2483_v61 }
0x1437   :  { %v485_v41 = vadd.f32 %v484_v51, %v2498_v39  ;;  %v487_v48 = vadd.f32 %v486_v45, %v2418_v58  ;;  %v489_v13 = vadd.f32 %v488_v63, %v2525_v44  ;;  %v579_v63 = vmul.f32 %v2224_v22, %v2470_v36 }
0x1439   :  { %v491_v38 = vrot.slane %v485_v41, 6  ;;  %v499_v54 = vrot.slane %v487_v48, 6  ;;  %v507_v16 = vrot.slane %v489_v13, 6  ;;  %v514_v48 = vrot.slane %v2532_v25, 6 }
0x143b   :  { %v493_v42 = vadd.f32 %v491_v38, %v479_v40  ;;  %v501_v3 = vadd.f32 %v499_v54, %v481_v59 }
0x143d   :  { %v494_v43 = vmul.f32 0.5, %v493_v42  ;;  %v502_v18 = vmul.f32 0.5, %v501_v3 }
0x143f   :  { %1921 = vtanh.f32 %v494_v43 }
0x1440   :  { %1923 = vtanh.f32 %v502_v18  ;;  %v580_v18 = vadd.f32 %v579_v63, %v2472_v2 }
0x144c   :  { %v1922_v62 = vpop.eup %1921 }
0x144d   :  { %v496_v5 = vadd.f32 1.0, %v1922_v62  ;;  %v1924_v51 = vpop.eup %1923 }
0x144e   :  { %v504_v41 = vadd.f32 1.0, %v1924_v51 }
0x144f   :  { %v497_v35 = vmul.f32 0.5, %v496_v5 }
0x1450   :  { %v505_v26 = vmul.f32 0.5, %v504_v41  ;;  %v581_v41 = vmul.f32 %v2224_v22, %v2401_v55 }
0x1451   :  { %v509_v30 = vmul.f32 %v507_v16, %v497_v35 }
0x1452   :  { %v512_v40 = vsub.f32 1.0, %v505_v26  ;;  %v516_v54 = vmul.f32 %v514_v48, %v505_v26 }
0x1453   :  { %v510_v24 = vadd.f32 %v509_v30, %v483_v33 }
0x1455   :  { %1925 = vtanh.f32 %v510_v24 }
0x1462   :  { %v1926_v38 = vpop.eup %1925 }
0x1463   :  { %v513_v45 = vmul.f32 %v1926_v38, %v512_v40  ;;  %v582_v38 = vadd.f32 %v581_v41, %v2413_v9 }
0x1465   :  { %v2554_v59 = vadd.f32 %v516_v54, %v513_v45 }
0x1467   :  { %v585_v32 = vmul.f32 %v2554_v59, %v2494_v37  ;;  %v587_v24 = vmul.f32 %v2554_v59, %v2410_v4 }
0x1469   :  { %v586_v62 = vadd.f32 %v585_v32, %v2498_v39  ;;  %v588_v51 = vadd.f32 %v587_v24, %v2418_v58 }
0x146b   :  { %v592_v3 = vrot.slane %v586_v62, 6  ;;  %v600_v26 = vrot.slane %v588_v51, 6  ;;  %v583_v62 = vmul.f32 %v2224_v22, %v2481_v50 }
0x146d   :  { %v594_v16 = vadd.f32 %v592_v3, %v580_v18  ;;  %v584_v3 = vadd.f32 %v583_v62, %v2483_v61 }
0x146f   :  { %v595_v33 = vmul.f32 0.5, %v594_v16 }
0x1499   :  { %v1444_v42 = vpop.permute.xlu0 %1443  ;;  %v1462_v30 = vpop.permute.xlu1 %1461 }
0x149a   :  { %v1446_v43 = vadd.f32 %v1444_v42, %v2456_v47  ;;  %v589_v42 = vmul.f32 %v2554_v59, %v2504_v56 }
0x149c   :  { %v1447_v49 = vmul.f32 0.5, %v1446_v43  ;;  %v602_v43 = vadd.f32 %v600_v26, %v582_v38  ;;  %v590_v48 = vadd.f32 %v589_v42, %v2525_v44  ;;  %v680_v26 = vmul.f32 %v2250_v31, %v2470_v36 }
0x149e   :  { %1927 = vtanh.f32 %v1447_v49  ;;  %v603_v49 = vmul.f32 0.5, %v602_v43  ;;  %v608_v32 = vrot.slane %v590_v48, 6 }
0x149f   :  { %1929 = vtanh.f32 %v595_v33  ;;  %v615_v33 = vrot.slane %v2554_v59, 6 }
0x14a0   :  { %1931 = vtanh.f32 %v603_v49  ;;  %v682_v49 = vmul.f32 %v2250_v31, %v2401_v55 }
0x14ab   :  { %v1928_v5 = vpop.eup %1927 }
0x14ac   :  { %v1449_v13 = vadd.f32 1.0, %v1928_v5  ;;  %v1930_v40 = vpop.eup %1929 }
0x14ad   :  { %v597_v45 = vadd.f32 1.0, %v1930_v40  ;;  %v681_v40 = vadd.f32 %v680_v26, %v2472_v2 }
0x14ae   :  { %v1450_v35 = vmul.f32 0.5, %v1449_v13  ;;  %v1932_v13 = vpop.eup %1931 }
0x14af   :  { %v598_v54 = vmul.f32 0.5, %v597_v45  ;;  %v605_v18 = vadd.f32 1.0, %v1932_v13 }
0x14b0   :  { %v1464_v23 = vmul.f32 %v1462_v30, %v1450_v35 }
0x14b1   :  { %v610_v63 = vmul.f32 %v608_v32, %v598_v54  ;;  %v606_v35 = vmul.f32 0.5, %v605_v18  ;;  %v683_v32 = vadd.f32 %v682_v49, %v2413_v9 }
0x14b2   :  { %1466 = vrot.lane.b32.xlu0 %v1464_v23, %s2051_s17 }
0x14b3   :  { %v611_v5 = vadd.f32 %v610_v63, %v584_v3  ;;  %v613_v30 = vsub.f32 1.0, %v606_v35  ;;  %v617_v24 = vmul.f32 %v615_v33, %v606_v35 }
0x14b5   :  { %1933 = vtanh.f32 %v611_v5 }
0x14c2   :  { %v1934_v16 = vpop.eup %1933 }
0x14c3   :  { %v614_v23 = vmul.f32 %v1934_v16, %v613_v30  ;;  %v684_v30 = vmul.f32 %v2250_v31, %v2481_v50 }
0x14c5   :  { %v2576_v51 = vadd.f32 %v617_v24, %v614_v23  ;;  %v685_v33 = vadd.f32 %v684_v30, %v2483_v61  ;;  %v780_v30 = vmul.f32 %v2269_v27, %v2401_v55 }
0x14c7   :  { %v686_v41 = vmul.f32 %v2576_v51, %v2494_v37  ;;  %v688_v45 = vmul.f32 %v2576_v51, %v2410_v4  ;;  %v690_v63 = vmul.f32 %v2576_v51, %v2504_v56 }
0x14c9   :  { %v687_v22 = vadd.f32 %v686_v41, %v2498_v39  ;;  %v689_v48 = vadd.f32 %v688_v45, %v2418_v58  ;;  %v691_v13 = vadd.f32 %v690_v63, %v2525_v44  ;;  %v716_v45 = vrot.slane %v2576_v51, 6 }
0x14ca   :  { %v778_v63 = vmul.f32 %v2269_v27, %v2470_v36 }
0x14cb   :  { %v693_v38 = vrot.slane %v687_v22, 6  ;;  %v701_v54 = vrot.slane %v689_v48, 6  ;;  %v709_v16 = vrot.slane %v691_v13, 6 }
0x14cd   :  { %v695_v42 = vadd.f32 %v693_v38, %v681_v40  ;;  %v703_v3 = vadd.f32 %v701_v54, %v683_v32 }
0x14cf   :  { %v696_v43 = vmul.f32 0.5, %v695_v42  ;;  %v704_v18 = vmul.f32 0.5, %v703_v3 }
0x14d1   :  { %1935 = vtanh.f32 %v696_v43 }
0x14d2   :  { %1937 = vtanh.f32 %v704_v18 }
0x14de   :  { %v1936_v62 = vpop.eup %1935 }
0x14df   :  { %v698_v5 = vadd.f32 1.0, %v1936_v62  ;;  %v1938_v22 = vpop.eup %1937 }
0x14e0   :  { %v706_v38 = vadd.f32 1.0, %v1938_v22 }
0x14e1   :  { %v699_v35 = vmul.f32 0.5, %v698_v5  ;;  %v779_v5 = vadd.f32 %v778_v63, %v2472_v2 }
0x14e2   :  { %v707_v40 = vmul.f32 0.5, %v706_v38 }
0x14e3   :  { %v711_v23 = vmul.f32 %v709_v16, %v699_v35 }
0x14e4   :  { %v714_v43 = vsub.f32 1.0, %v707_v40  ;;  %v718_v54 = vmul.f32 %v716_v45, %v707_v40  ;;  %v782_v45 = vmul.f32 %v2269_v27, %v2481_v50 }
0x14e5   :  { %v712_v24 = vadd.f32 %v711_v23, %v685_v33  ;;  %v781_v33 = vadd.f32 %v780_v30, %v2413_v9 }
0x14e7   :  { %1939 = vtanh.f32 %v712_v24 }
0x14f4   :  { %v1940_v42 = vpop.eup %1939 }
0x14f5   :  { %v715_v48 = vmul.f32 %v1940_v42, %v714_v43 }
0x14f7   :  { %v2599_v31 = vadd.f32 %v718_v54, %v715_v48 }
0x14f9   :  { %v784_v32 = vmul.f32 %v2599_v31, %v2494_v37  ;;  %v786_v35 = vmul.f32 %v2599_v31, %v2410_v4 }
0x14fb   :  { %v785_v62 = vadd.f32 %v784_v32, %v2498_v39  ;;  %v787_v16 = vadd.f32 %v786_v35, %v2418_v58 }
0x14fd   :  { %v791_v3 = vrot.slane %v785_v62, 6  ;;  %v799_v23 = vrot.slane %v787_v16, 6  ;;  %v814_v16 = vrot.slane %v2599_v31, 6 }
0x14ff   :  { %v793_v13 = vadd.f32 %v791_v3, %v779_v5  ;;  %v801_v22 = vadd.f32 %v799_v23, %v781_v33  ;;  %v1437_v3 = vmul.f32 %v2507_v60, %v2094_v10 }
0x1501   :  { %v794_v18 = vmul.f32 0.5, %v793_v13  ;;  %v802_v40 = vmul.f32 0.5, %v801_v22 }
0x1524   :  { %v1467_v41 = vpop.permute.xlu0 %1466 }
0x1525   :  { %v1469_v26 = vadd.f32 %v1467_v41, %v2456_v47  ;;  %v788_v41 = vmul.f32 %v2599_v31, %v2504_v56 }
0x1527   :  { %1941 = vtanh.f32 %v1469_v26  ;;  %v789_v38 = vadd.f32 %v788_v41, %v2525_v44 }
0x1528   :  { %1943 = vtanh.f32 %v794_v18  ;;  %v1438_v18 = vadd.f32 %v1437_v3, %v2097_v11 }
0x1529   :  { %1945 = vtanh.f32 %v802_v40  ;;  %v807_v43 = vrot.slane %v789_v38, 6 }
0x152a   :  { %v1452_v27 = vrot.slane %v1438_v18, 6 }
0x152c   :  { %v1454_v33 = vadd.f32 %v1452_v27, %v2456_v47 }
0x152e   :  { %v1455_v41 = vmul.f32 0.5, %v1454_v33 }
0x1534   :  { %v1942_v49 = vpop.eup %1941 }
0x1535   :  { %1473 = vrot.lane.b32.xlu1 %v1942_v49, %s2053_s19  ;;  %v1944_v24 = vpop.eup %1943  ;;  %v783_v49 = vadd.f32 %v782_v45, %v2483_v61 }
0x1536   :  { %v796_v26 = vadd.f32 1.0, %v1944_v24  ;;  %v1946_v32 = vpop.eup %1945 }
0x1537   :  { %v804_v62 = vadd.f32 1.0, %v1946_v32  ;;  %v881_v32 = vmul.f32 %v2288_v12, %v2401_v55 }
0x1538   :  { %v797_v42 = vmul.f32 0.5, %v796_v26  ;;  %v879_v26 = vmul.f32 %v2288_v12, %v2470_v36 }
0x1539   :  { %v805_v63 = vmul.f32 0.5, %v804_v62  ;;  %v882_v3 = vadd.f32 %v881_v32, %v2413_v9  ;;  %v883_v32 = vmul.f32 %v2288_v12, %v2481_v50 }
0x153a   :  { %v809_v48 = vmul.f32 %v807_v43, %v797_v42  ;;  %v880_v40 = vadd.f32 %v879_v26, %v2472_v2 }
0x153b   :  { %v812_v13 = vsub.f32 1.0, %v805_v63  ;;  %v816_v30 = vmul.f32 %v814_v16, %v805_v63 }
0x153c   :  { %v810_v54 = vadd.f32 %v809_v48, %v783_v49 }
0x153e   :  { %1947 = vtanh.f32 %v810_v54 }
0x153f   :  { %1949 = vtanh.f32 %v1455_v41 }
0x154b   :  { %v1948_v5 = vpop.eup %1947 }
0x154c   :  { %v813_v35 = vmul.f32 %v1948_v5, %v812_v13  ;;  %v1950_v45 = vpop.eup %1949  ;;  %v1478_v13 = vrot.slane %v2507_v60, 6 }
0x154d   :  { %v1457_v49 = vadd.f32 1.0, %v1950_v45 }
0x154e   :  { %v2623_v23 = vadd.f32 %v816_v30, %v813_v35 }
0x154f   :  { %v1458_v62 = vmul.f32 0.5, %v1457_v49 }
0x1550   :  { %v885_v24 = vmul.f32 %v2623_v23, %v2494_v37  ;;  %v887_v48 = vmul.f32 %v2623_v23, %v2410_v4  ;;  %v889_v27 = vmul.f32 %v2623_v23, %v2504_v56 }
0x1551   :  { %v1471_v5 = vsub.f32 1.0, %v1458_v62  ;;  %v1480_v16 = vmul.f32 %v1478_v13, %v1458_v62 }
0x1552   :  { %v886_v22 = vadd.f32 %v885_v24, %v2498_v39  ;;  %v888_v54 = vadd.f32 %v887_v48, %v2418_v58 }
0x1554   :  { %v892_v38 = vrot.slane %v886_v22, 6  ;;  %v900_v63 = vrot.slane %v888_v54, 6 }
0x1556   :  { %v894_v42 = vadd.f32 %v892_v38, %v880_v40  ;;  %v902_v33 = vadd.f32 %v900_v63, %v882_v3  ;;  %v890_v38 = vadd.f32 %v889_v27, %v2525_v44  ;;  %v884_v63 = vadd.f32 %v883_v32, %v2483_v61 }
0x1558   :  { %v895_v43 = vmul.f32 0.5, %v894_v42  ;;  %v903_v40 = vmul.f32 0.5, %v902_v33  ;;  %v908_v54 = vrot.slane %v890_v38, 6 }
0x155a   :  { %1951 = vtanh.f32 %v895_v43 }
0x155b   :  { %1953 = vtanh.f32 %v903_v40 }
0x1567   :  { %v1952_v18 = vpop.eup %1951 }
0x1568   :  { %v897_v41 = vadd.f32 1.0, %v1952_v18 }
0x156a   :  { %v898_v45 = vmul.f32 0.5, %v897_v41 }
0x156c   :  { %v910_v62 = vmul.f32 %v908_v54, %v898_v45 }
0x156e   :  { %v911_v3 = vadd.f32 %v910_v62, %v884_v63 }
0x1570   :  { %1955 = vtanh.f32 %v911_v3 }
0x15a7   :  { %v1474_v35 = vpop.permute.xlu1 %1473 }
0x15a8   :  { %v1476_v30 = vmul.f32 %v1474_v35, %v1471_v5  ;;  %v1954_v5 = vpop.eup %1953 }
0x15a9   :  { %v905_v13 = vadd.f32 1.0, %v1954_v5  ;;  %v1956_v35 = vpop.eup %1955 }
0x15aa   :  { %v2641_v24 = vadd.f32 %v1480_v16, %v1476_v30  ;;  %v915_v30 = vrot.slane %v2623_v23, 6 }
0x15ab   :  { %v906_v18 = vmul.f32 0.5, %v905_v13 }
0x15ac   :  { %v1537_v22 = vmul.f32 %v2641_v24, %v2158_v53  ;;  %v1533_v26 = vmul.f32 %v2641_v24, %v2152_v46 }
0x15ad   :  { %v913_v16 = vsub.f32 1.0, %v906_v18  ;;  %v917_v33 = vmul.f32 %v915_v30, %v906_v18  ;;  %v984_v30 = vmul.f32 %v2314_v0, %v2481_v50 }
0x15ae   :  { %v1538_v42 = vadd.f32 %v1537_v22, %v2165_v57  ;;  %v1534_v43 = vadd.f32 %v1533_v26, %v2156_v52  ;;  %v980_v26 = vmul.f32 %v2314_v0, %v2470_v36 }
0x15af   :  { %v914_v27 = vmul.f32 %v1956_v35, %v913_v16 }
0x15b0   :  { %v1558_v48 = vrot.slane %v1538_v42, 6  ;;  %v1540_v49 = vrot.slane %v1534_v43, 6  ;;  %v981_v40 = vadd.f32 %v980_v26, %v2472_v2 }
0x15b1   :  { %v2656_v41 = vadd.f32 %v917_v33, %v914_v27  ;;  %v985_v33 = vadd.f32 %v984_v30, %v2483_v61 }
0x15b2   :  { %1559 = vrot.lane.b32.xlu1 %v1558_v48, %s2053_s19  ;;  %1541 = vrot.lane.b32.xlu0 %v1540_v49, %s2053_s19  ;;  %v982_v49 = vmul.f32 %v2314_v0, %v2401_v55 }
0x15b3   :  { %v986_v22 = vmul.f32 %v2656_v41, %v2494_v37  ;;  %v988_v45 = vmul.f32 %v2656_v41, %v2410_v4  ;;  %v990_v63 = vmul.f32 %v2656_v41, %v2504_v56 }
0x15b4   :  { %v983_v32 = vadd.f32 %v982_v49, %v2413_v9 }
0x15b5   :  { %v987_v12 = vadd.f32 %v986_v22, %v2498_v39  ;;  %v989_v48 = vadd.f32 %v988_v45, %v2418_v58  ;;  %v991_v13 = vadd.f32 %v990_v63, %v2525_v44  ;;  %v1016_v45 = vrot.slane %v2656_v41, 6 }
0x15b6   :  { %v1081_v63 = vmul.f32 %v2340_v29, %v2470_v36 }
0x15b7   :  { %v993_v38 = vrot.slane %v987_v12, 6  ;;  %v1001_v54 = vrot.slane %v989_v48, 6  ;;  %v1009_v16 = vrot.slane %v991_v13, 6 }
0x15b8   :  { %v1082_v13 = vadd.f32 %v1081_v63, %v2472_v2 }
0x15b9   :  { %v995_v42 = vadd.f32 %v993_v38, %v981_v40  ;;  %v1003_v3 = vadd.f32 %v1001_v54, %v983_v32 }
0x15bb   :  { %v996_v43 = vmul.f32 0.5, %v995_v42  ;;  %v1004_v18 = vmul.f32 0.5, %v1003_v3 }
0x15bd   :  { %1957 = vtanh.f32 %v996_v43 }
0x15be   :  { %1959 = vtanh.f32 %v1004_v18 }
0x15ca   :  { %v1958_v62 = vpop.eup %1957 }
0x15cb   :  { %v998_v5 = vadd.f32 1.0, %v1958_v62  ;;  %v1960_v12 = vpop.eup %1959 }
0x15cc   :  { %v1006_v26 = vadd.f32 1.0, %v1960_v12  ;;  %v1083_v12 = vmul.f32 %v2340_v29, %v2401_v55 }
0x15cd   :  { %v999_v35 = vmul.f32 0.5, %v998_v5 }
0x15ce   :  { %v1007_v38 = vmul.f32 0.5, %v1006_v26 }
0x15cf   :  { %v1011_v27 = vmul.f32 %v1009_v16, %v999_v35 }
0x15d0   :  { %v1014_v42 = vsub.f32 1.0, %v1007_v38  ;;  %v1018_v48 = vmul.f32 %v1016_v45, %v1007_v38 }
0x15d1   :  { %v1012_v22 = vadd.f32 %v1011_v27, %v985_v33 }
0x15d3   :  { %1961 = vtanh.f32 %v1012_v22 }
0x15e0   :  { %v1962_v40 = vpop.eup %1961 }
0x15e1   :  { %v1015_v43 = vmul.f32 %v1962_v40, %v1014_v42  ;;  %v1084_v42 = vadd.f32 %v1083_v12, %v2413_v9 }
0x15e3   :  { %v2677_v49 = vadd.f32 %v1018_v48, %v1015_v43 }
0x15e5   :  { %v1087_v54 = vmul.f32 %v2677_v49, %v2494_v37  ;;  %v1089_v16 = vmul.f32 %v2677_v49, %v2410_v4  ;;  %v1091_v45 = vmul.f32 %v2677_v49, %v2504_v56 }
0x15e7   :  { %v1088_v0 = vadd.f32 %v1087_v54, %v2498_v39  ;;  %v1090_v33 = vadd.f32 %v1089_v16, %v2418_v58 }
0x15e9   :  { %v1094_v3 = vrot.slane %v1088_v0, 6  ;;  %v1102_v40 = vrot.slane %v1090_v33, 6  ;;  %v1092_v0 = vadd.f32 %v1091_v45, %v2525_v44 }
0x15eb   :  { %v1096_v18 = vadd.f32 %v1094_v3, %v1082_v13  ;;  %v1104_v48 = vadd.f32 %v1102_v40, %v1084_v42  ;;  %v1110_v63 = vrot.slane %v1092_v0, 6  ;;  %v1085_v3 = vmul.f32 %v2340_v29, %v2481_v50 }
0x15ec   :  { %v1179_v42 = vmul.f32 %v2359_v28, %v2470_v36 }
0x15ed   :  { %v1097_v35 = vmul.f32 0.5, %v1096_v18  ;;  %v1086_v13 = vadd.f32 %v1085_v3, %v2483_v61 }
0x15ee   :  { %v1180_v45 = vadd.f32 %v1179_v42, %v2472_v2 }
0x1624   :  { %v1542_v32 = vpop.permute.xlu0 %1541  ;;  %v1560_v26 = vpop.permute.xlu1 %1559 }
0x1625   :  { %v1544_v62 = vadd.f32 %v1542_v32, %v2456_v47  ;;  %v1105_v32 = vmul.f32 0.5, %v1104_v48 }
0x1627   :  { %v1545_v5 = vmul.f32 0.5, %v1544_v62 }
0x1629   :  { %1963 = vtanh.f32 %v1545_v5 }
0x162a   :  { %1965 = vtanh.f32 %v1097_v35 }
0x162b   :  { %1967 = vtanh.f32 %v1105_v32 }
0x1636   :  { %v1964_v30 = vpop.eup %1963 }
0x1637   :  { %v1547_v27 = vadd.f32 1.0, %v1964_v30  ;;  %v1966_v43 = vpop.eup %1965 }
0x1638   :  { %v1099_v54 = vadd.f32 1.0, %v1966_v43  ;;  %v1968_v35 = vpop.eup %1967 }
0x1639   :  { %v1548_v22 = vmul.f32 0.5, %v1547_v27  ;;  %v1107_v16 = vadd.f32 1.0, %v1968_v35 }
0x163a   :  { %v1100_v62 = vmul.f32 0.5, %v1099_v54 }
0x163b   :  { %v1562_v38 = vmul.f32 %v1560_v26, %v1548_v22  ;;  %v1108_v30 = vmul.f32 0.5, %v1107_v16  ;;  %v1117_v22 = vrot.slane %v2677_v49, 6 }
0x163c   :  { %v1112_v5 = vmul.f32 %v1110_v63, %v1100_v62  ;;  %v1181_v62 = vmul.f32 %v2359_v28, %v2401_v55 }
0x163d   :  { %1564 = vrot.lane.b32.xlu0 %v1562_v38, %s2051_s17  ;;  %v1115_v33 = vsub.f32 1.0, %v1108_v30  ;;  %v1119_v26 = vmul.f32 %v1117_v22, %v1108_v30  ;;  %v1183_v22 = vmul.f32 %v2359_v28, %v2481_v50 }
0x163e   :  { %v1113_v18 = vadd.f32 %v1112_v5, %v1086_v13  ;;  %v1182_v3 = vadd.f32 %v1181_v62, %v2413_v9 }
0x1640   :  { %1969 = vtanh.f32 %v1113_v18 }
0x164d   :  { %v1970_v27 = vpop.eup %1969 }
0x164e   :  { %v1116_v12 = vmul.f32 %v1970_v27, %v1115_v33 }
0x1650   :  { %v2700_v38 = vadd.f32 %v1119_v26, %v1116_v12  ;;  %v1184_v26 = vadd.f32 %v1183_v22, %v2483_v61 }
0x1652   :  { %v1185_v40 = vmul.f32 %v2700_v38, %v2494_v37  ;;  %v1187_v0 = vmul.f32 %v2700_v38, %v2410_v4  ;;  %v1189_v13 = vmul.f32 %v2700_v38, %v2504_v56 }
0x1654   :  { %v1186_v29 = vadd.f32 %v1185_v40, %v2498_v39  ;;  %v1188_v32 = vadd.f32 %v1187_v0, %v2418_v58  ;;  %v1190_v16 = vadd.f32 %v1189_v13, %v2525_v44  ;;  %v1215_v0 = vrot.slane %v2700_v38, 6 }
0x1655   :  { %v1280_v13 = vmul.f32 %v2378_v20, %v2470_v36 }
0x1656   :  { %v1192_v43 = vrot.slane %v1186_v29, 6  ;;  %v1200_v63 = vrot.slane %v1188_v32, 6  ;;  %v1208_v33 = vrot.slane %v1190_v16, 6 }
0x1657   :  { %v1281_v16 = vadd.f32 %v1280_v13, %v2472_v2 }
0x1658   :  { %v1194_v48 = vadd.f32 %v1192_v43, %v1180_v45  ;;  %v1202_v18 = vadd.f32 %v1200_v63, %v1182_v3 }
0x165a   :  { %v1195_v54 = vmul.f32 0.5, %v1194_v48  ;;  %v1203_v30 = vmul.f32 0.5, %v1202_v18 }
0x165c   :  { %1971 = vtanh.f32 %v1195_v54 }
0x165d   :  { %1973 = vtanh.f32 %v1203_v30 }
0x1669   :  { %v1972_v5 = vpop.eup %1971 }
0x166a   :  { %v1197_v35 = vadd.f32 1.0, %v1972_v5  ;;  %v1974_v29 = vpop.eup %1973 }
0x166b   :  { %v1205_v42 = vadd.f32 1.0, %v1974_v29 }
0x166c   :  { %v1198_v27 = vmul.f32 0.5, %v1197_v35 }
0x166d   :  { %v1206_v43 = vmul.f32 0.5, %v1205_v42 }
0x166e   :  { %v1210_v12 = vmul.f32 %v1208_v33, %v1198_v27 }
0x166f   :  { %v1213_v48 = vsub.f32 1.0, %v1206_v43  ;;  %v1217_v63 = vmul.f32 %v1215_v0, %v1206_v43 }
0x1670   :  { %v1211_v40 = vadd.f32 %v1210_v12, %v1184_v26  ;;  %v1282_v12 = vmul.f32 %v2378_v20, %v2401_v55 }
0x1672   :  { %1975 = vtanh.f32 %v1211_v40  ;;  %v1283_v40 = vadd.f32 %v1282_v12, %v2413_v9 }
0x167f   :  { %v1976_v45 = vpop.eup %1975 }
0x1680   :  { %v1214_v54 = vmul.f32 %v1976_v45, %v1213_v48 }
0x1682   :  { %v2722_v3 = vadd.f32 %v1217_v63, %v1214_v54 }
0x1684   :  { %v1286_v28 = vmul.f32 %v2722_v3, %v2494_v37  ;;  %v1288_v33 = vmul.f32 %v2722_v3, %v2410_v4  ;;  %v1290_v42 = vmul.f32 %v2722_v3, %v2504_v56 }
0x1686   :  { %v1287_v5 = vadd.f32 %v1286_v28, %v2498_v39  ;;  %v1289_v22 = vadd.f32 %v1288_v33, %v2418_v58  ;;  %v1291_v48 = vadd.f32 %v1290_v42, %v2525_v44 }
0x1688   :  { %v1293_v18 = vrot.slane %v1287_v5, 6  ;;  %v1301_v26 = vrot.slane %v1289_v22, 6 }
0x168a   :  { %v1295_v30 = vadd.f32 %v1293_v18, %v1281_v16  ;;  %v1303_v43 = vadd.f32 %v1301_v26, %v1283_v40 }
0x168c   :  { %v1296_v27 = vmul.f32 0.5, %v1295_v30  ;;  %v1304_v54 = vmul.f32 0.5, %v1303_v43 }
0x16af   :  { %v1565_v32 = vpop.permute.xlu0 %1564 }
0x16b0   :  { %v1567_v62 = vadd.f32 %v1565_v32, %v2456_v47  ;;  %v1309_v32 = vrot.slane %v1291_v48, 6 }
0x16b2   :  { %1977 = vtanh.f32 %v1567_v62  ;;  %v1284_v62 = vmul.f32 %v2378_v20, %v2481_v50  ;;  %v1535_v20 = vmul.f32 %v2641_v24, %v2094_v10 }
0x16b3   :  { %1979 = vtanh.f32 %v1296_v27  ;;  %v1316_v27 = vrot.slane %v2722_v3, 6 }
0x16b4   :  { %1981 = vtanh.f32 %v1304_v54  ;;  %v1285_v28 = vadd.f32 %v1284_v62, %v2483_v61  ;;  %v1536_v42 = vadd.f32 %v1535_v20, %v2097_v11 }
0x16b6   :  { %v1550_v48 = vrot.slane %v1536_v42, 6 }
0x16bf   :  { %v1978_v35 = vpop.eup %1977 }
0x16c0   :  { %1571 = vrot.lane.b32.xlu1 %v1978_v35, %s2053_s19  ;;  %v1980_v29 = vpop.eup %1979 }
0x16c1   :  { %v1298_v45 = vadd.f32 1.0, %v1980_v29  ;;  %v1982_v13 = vpop.eup %1981  ;;  %v1381_v29 = vmul.f32 %v2441_v8, %v2470_v36 }
0x16c2   :  { %v1306_v18 = vadd.f32 1.0, %v1982_v13 }
0x16c3   :  { %v1299_v0 = vmul.f32 0.5, %v1298_v45  ;;  %v1382_v45 = vadd.f32 %v1381_v29, %v2472_v2 }
0x16c4   :  { %v1307_v35 = vmul.f32 0.5, %v1306_v18 }
0x16c5   :  { %v1311_v63 = vmul.f32 %v1309_v32, %v1299_v0  ;;  %v1552_v0 = vadd.f32 %v1550_v48, %v2456_v47 }
0x16c6   :  { %v1314_v30 = vsub.f32 1.0, %v1307_v35  ;;  %v1318_v22 = vmul.f32 %v1316_v27, %v1307_v35 }
0x16c7   :  { %v1312_v5 = vadd.f32 %v1311_v63, %v1285_v28  ;;  %v1553_v62 = vmul.f32 0.5, %v1552_v0  ;;  %v1576_v0 = vrot.slane %v2641_v24, 6 }
0x16c9   :  { %1983 = vtanh.f32 %v1312_v5  ;;  %v1383_v5 = vmul.f32 %v2441_v8, %v2401_v55 }
0x16cb   :  { %v1384_v18 = vadd.f32 %v1383_v5, %v2413_v9 }
0x16d6   :  { %v1984_v16 = vpop.eup %1983 }
0x16d7   :  { %v1315_v33 = vmul.f32 %v1984_v16, %v1314_v30 }
0x16d9   :  { %v2744_v12 = vadd.f32 %v1318_v22, %v1315_v33 }
0x16db   :  { %v1387_v26 = vmul.f32 %v2744_v12, %v2494_v37  ;;  %v1389_v63 = vmul.f32 %v2744_v12, %v2410_v4  ;;  %v1391_v16 = vmul.f32 %v2744_v12, %v2504_v56 }
0x16dd   :  { %v1388_v40 = vadd.f32 %v1387_v26, %v2498_v39  ;;  %v1390_v28 = vadd.f32 %v1389_v63, %v2418_v58  ;;  %v1392_v22 = vadd.f32 %v1391_v16, %v2525_v44 }
0x16df   :  { %v1394_v43 = vrot.slane %v1388_v40, 6  ;;  %v1402_v13 = vrot.slane %v1390_v28, 6  ;;  %v1410_v29 = vrot.slane %v1392_v22, 6 }
0x16e1   :  { %v1396_v54 = vadd.f32 %v1394_v43, %v1382_v45  ;;  %v1404_v30 = vadd.f32 %v1402_v13, %v1384_v18  ;;  %v1385_v43 = vmul.f32 %v2441_v8, %v2481_v50 }
0x16e3   :  { %v1397_v32 = vmul.f32 0.5, %v1396_v54  ;;  %v1405_v26 = vmul.f32 0.5, %v1404_v30  ;;  %v1386_v48 = vadd.f32 %v1385_v43, %v2483_v61 }
0x16e5   :  { %1985 = vtanh.f32 %v1397_v32 }
0x16e6   :  { %1987 = vtanh.f32 %v1553_v62 }
0x16e7   :  { %1989 = vtanh.f32 %v1405_v26 }
0x16f2   :  { %v1986_v35 = vpop.eup %1985 }
0x16f3   :  { %v1988_v27 = vpop.eup %1987  ;;  %v1399_v33 = vadd.f32 1.0, %v1986_v35 }
0x16f4   :  { %v1555_v20 = vadd.f32 1.0, %v1988_v27  ;;  %v1990_v8 = vpop.eup %1989 }
0x16f5   :  { %v1400_v40 = vmul.f32 0.5, %v1399_v33  ;;  %v1407_v33 = vadd.f32 1.0, %v1990_v8 }
0x16f6   :  { %v1556_v42 = vmul.f32 0.5, %v1555_v20 }
0x16f7   :  { %v1412_v45 = vmul.f32 %v1410_v29, %v1400_v40  ;;  %v1408_v22 = vmul.f32 0.5, %v1407_v33  ;;  %v1486_v33 = vmul.f32 %v2507_v60, %v2481_v50 }
0x16f8   :  { %v1569_v54 = vsub.f32 1.0, %v1556_v42  ;;  %v1578_v63 = vmul.f32 %v1576_v0, %v1556_v42  ;;  %v1482_v42 = vmul.f32 %v2507_v60, %v2470_v36 }
0x16f9   :  { %v1413_v62 = vadd.f32 %v1412_v45, %v1386_v48  ;;  %v1415_v20 = vsub.f32 1.0, %v1408_v22 }
0x16fa   :  { %v1483_v45 = vadd.f32 %v1482_v42, %v2472_v2 }
0x16fb   :  { %1991 = vtanh.f32 %v1413_v62  ;;  %v1484_v62 = vmul.f32 %v2507_v60, %v2401_v55 }
0x1708   :  { %v1992_v26 = vpop.eup %1991 }
0x1709   :  { %v1416_v40 = vmul.f32 %v1992_v26, %v1415_v20  ;;  %v1487_v20 = vadd.f32 %v1486_v33, %v2483_v61 }
0x1732   :  { %v1572_v32 = vpop.permute.xlu1 %1571 }
0x1733   :  { %v1574_v28 = vmul.f32 %v1572_v32, %v1569_v54 }
0x1735   :  { %v2769_v5 = vadd.f32 %v1578_v63, %v1574_v28  ;;  %v1485_v28 = vadd.f32 %v1484_v62, %v2413_v9 }
0x1737   :  { %v1638_v13 = vmul.f32 %v2769_v5, %v2158_v53  ;;  %v1634_v18 = vmul.f32 %v2769_v5, %v2152_v46  ;;  %v1417_v53 = vrot.slane %v2744_v12, 6 }
0x1739   :  { %v1639_v35 = vadd.f32 %v1638_v13, %v2165_v57  ;;  %v1635_v16 = vadd.f32 %v1634_v18, %v2156_v52  ;;  %v1419_v29 = vmul.f32 %v1417_v53, %v1408_v22 }
0x173b   :  { %v1659_v30 = vrot.slane %v1639_v35, 6  ;;  %v1641_v27 = vrot.slane %v1635_v16, 6  ;;  %v2780_v46 = vadd.f32 %v1419_v29, %v1416_v40 }
0x173d   :  { %1660 = vrot.lane.b32.xlu1 %v1659_v30, %s2053_s19  ;;  %1642 = vrot.lane.b32.xlu0 %v1641_v27, %s2053_s19  ;;  %v1488_v57 = vmul.f32 %v2780_v46, %v2494_v37  ;;  %v1490_v0 = vmul.f32 %v2780_v46, %v2410_v4  ;;  %v1492_v18 = vmul.f32 %v2780_v46, %v2504_v56 }
0x173f   :  { %v1489_v52 = vadd.f32 %v1488_v57, %v2498_v39  ;;  %v1491_v32 = vadd.f32 %v1490_v0, %v2418_v58  ;;  %v1493_v16 = vadd.f32 %v1492_v18, %v2525_v44 }
0x1741   :  { %v1495_v43 = vrot.slane %v1489_v52, 6  ;;  %v1503_v63 = vrot.slane %v1491_v32, 6  ;;  %v1511_v22 = vrot.slane %v1493_v16, 6  ;;  %v1580_v32 = vmul.f32 %v2641_v24, %v2470_v36 }
0x1743   :  { %v1497_v48 = vadd.f32 %v1495_v43, %v1483_v45  ;;  %v1505_v8 = vadd.f32 %v1503_v63, %v1485_v28  ;;  %v1518_v43 = vrot.slane %v2780_v46, 6  ;;  %v1581_v63 = vadd.f32 %v1580_v32, %v2472_v2 }
0x1745   :  { %v1498_v54 = vmul.f32 0.5, %v1497_v48  ;;  %v1506_v30 = vmul.f32 0.5, %v1505_v8 }
0x1747   :  { %1993 = vtanh.f32 %v1498_v54 }
0x1748   :  { %1995 = vtanh.f32 %v1506_v30 }
0x1754   :  { %v1994_v13 = vpop.eup %1993 }
0x1755   :  { %v1500_v35 = vadd.f32 1.0, %v1994_v13  ;;  %v1996_v53 = vpop.eup %1995 }
0x1756   :  { %v1508_v29 = vadd.f32 1.0, %v1996_v53 }
0x1757   :  { %v1501_v27 = vmul.f32 0.5, %v1500_v35 }
0x1758   :  { %v1509_v57 = vmul.f32 0.5, %v1508_v29 }
0x1759   :  { %v1513_v26 = vmul.f32 %v1511_v22, %v1501_v27  ;;  %v1582_v27 = vmul.f32 %v2641_v24, %v2401_v55 }
0x175a   :  { %v1516_v42 = vsub.f32 1.0, %v1509_v57  ;;  %v1520_v48 = vmul.f32 %v1518_v43, %v1509_v57 }
0x175b   :  { %v1514_v40 = vadd.f32 %v1513_v26, %v1487_v20  ;;  %v1583_v22 = vadd.f32 %v1582_v27, %v2413_v9 }
0x175d   :  { %1997 = vtanh.f32 %v1514_v40 }
0x176a   :  { %v1998_v52 = vpop.eup %1997 }
0x176b   :  { %v1517_v45 = vmul.f32 %v1998_v52, %v1516_v42 }
0x176d   :  { %v2801_v54 = vadd.f32 %v1520_v48, %v1517_v45  ;;  %v1584_v45 = vmul.f32 %v2641_v24, %v2481_v50 }
0x176f   :  { %v1586_v60 = vmul.f32 %v2801_v54, %v2494_v37  ;;  %v1588_v35 = vmul.f32 %v2801_v54, %v2410_v4  ;;  %v1590_v20 = vmul.f32 %v2801_v54, %v2504_v56 }
0x1771   :  { %v1587_v0 = vadd.f32 %v1586_v60, %v2498_v39  ;;  %v1589_v30 = vadd.f32 %v1588_v35, %v2418_v58  ;;  %v1591_v29 = vadd.f32 %v1590_v20, %v2525_v44 }
0x1773   :  { %v1593_v62 = vrot.slane %v1587_v0, 6  ;;  %v1601_v33 = vrot.slane %v1589_v30, 6  ;;  %v1609_v60 = vrot.slane %v1591_v29, 6  ;;  %v1616_v30 = vrot.slane %v2801_v54, 6 }
0x1775   :  { %v1595_v28 = vadd.f32 %v1593_v62, %v1581_v63  ;;  %v1603_v40 = vadd.f32 %v1601_v33, %v1583_v22  ;;  %v1585_v63 = vadd.f32 %v1584_v45, %v2483_v61 }
0x1777   :  { %v1596_v13 = vmul.f32 0.5, %v1595_v28  ;;  %v1604_v57 = vmul.f32 0.5, %v1603_v40 }
0x1779   :  { %1999 = vtanh.f32 %v1596_v13 }
0x1786   :  { %v2000_v26 = vpop.eup %1999 }
0x1787   :  { %v1598_v53 = vadd.f32 1.0, %v2000_v26 }
0x1789   :  { %v1599_v43 = vmul.f32 0.5, %v1598_v53  ;;  %v1683_v53 = vmul.f32 %v2769_v5, %v2401_v55 }
0x178b   :  { %v1611_v62 = vmul.f32 %v1609_v60, %v1599_v43 }
0x178d   :  { %v1612_v28 = vadd.f32 %v1611_v62, %v1585_v63  ;;  %v1685_v63 = vmul.f32 %v2769_v5, %v2481_v50 }
0x17af   :  { %v1643_v18 = vpop.permute.xlu0 %1642  ;;  %v1661_v0 = vpop.permute.xlu1 %1660 }
0x17b0   :  { %v1645_v8 = vadd.f32 %v1643_v18, %v2456_v47 }
0x17b2   :  { %v1646_v16 = vmul.f32 0.5, %v1645_v8 }
0x17b4   :  { %2001 = vtanh.f32 %v1646_v16 }
0x17b5   :  { %2003 = vtanh.f32 %v1604_v57  ;;  %v1684_v57 = vadd.f32 %v1683_v53, %v2413_v9 }
0x17b6   :  { %2005 = vtanh.f32 %v1612_v28 }
0x17c1   :  { %v2002_v52 = vpop.eup %2001 }
0x17c2   :  { %v1648_v42 = vadd.f32 1.0, %v2002_v52  ;;  %v2004_v13 = vpop.eup %2003 }
0x17c3   :  { %v1606_v24 = vadd.f32 1.0, %v2004_v13  ;;  %v2006_v8 = vpop.eup %2005 }
0x17c4   :  { %v1649_v48 = vmul.f32 0.5, %v1648_v42 }
0x17c5   :  { %v1607_v18 = vmul.f32 0.5, %v1606_v24  ;;  %v1686_v24 = vadd.f32 %v1685_v63, %v2483_v61 }
0x17c6   :  { %v1663_v32 = vmul.f32 %v1661_v0, %v1649_v48 }
0x17c7   :  { %v1614_v35 = vsub.f32 1.0, %v1607_v18 }
0x17c8   :  { %1665 = vrot.lane.b32.xlu0 %v1663_v32, %s2051_s17 }
0x17c9   :  { %v1615_v16 = vmul.f32 %v2006_v8, %v1614_v35 }
0x17cc   :  { %307 = vperm.xlu0 %1831, %v2492_v34   ;;  %v1618_v34 = vmul.f32 %v1616_v30, %v1607_v18 }
0x17ce   :  { %v1619_v27 = vadd.f32 %v1618_v34, %v1615_v16 }
0x17d0   :  { %621 = vperm.xlu0 %1831, %v2576_v51   ;;  %v1687_v51 = vmul.f32 %v1619_v27, %v2494_v37  ;;  %v1689_v20 = vmul.f32 %v1619_v27, %v2410_v4  ;;  %v1691_v43 = vmul.f32 %v1619_v27, %v2504_v56 }
0x17d2   :  { %v1690_v29 = vadd.f32 %v1689_v20, %v2418_v58  ;;  %v1692_v60 = vadd.f32 %v1691_v43, %v2525_v44 }
0x17d4   :  { %820 = vperm.xlu0 %1831, %v2623_v23   ;;  %v1681_v23 = vmul.f32 %v2769_v5, %v2470_v36  ;;  %v1702_v52 = vrot.slane %v1690_v29, 6  ;;  %v1710_v28 = vrot.slane %v1692_v60, 6 }
0x17d6   :  { %v1682_v33 = vadd.f32 %v1681_v23, %v2472_v2  ;;  %v1704_v45 = vadd.f32 %v1702_v52, %v1684_v57  ;;  %v1717_v23 = vrot.slane %v1619_v27, 6 }
0x17d8   :  { %1022 = vperm.xlu0 %1831, %v2677_v49   ;;  %v1688_v49 = vadd.f32 %v1687_v51, %v2498_v39  ;;  %v1705_v0 = vmul.f32 0.5, %v1704_v45 }
0x17da   :  { %v1694_v22 = vrot.slane %v1688_v49, 6 }
0x17dc   :  { %1221 = vperm.xlu0 %1831, %v2722_v3   ;;  %v1696_v3 = vadd.f32 %v1694_v22, %v1682_v33 }
0x17de   :  { %v1697_v26 = vmul.f32 0.5, %v1696_v3 }
0x17e0   :  { %1423 = vperm.xlu0 %1831, %v2780_v46   ;;  %2007 = vtanh.f32 %v1697_v26 }
0x17e4   :  { %1622 = vperm.xlu0 %1831, %v1619_v27   ;;  %v1677_v27 = vrot.slane %v2769_v5, 6 }
0x17ed   :  { %v2008_v42 = vpop.eup %2007 }
0x17ee   :  { %v1699_v48 = vadd.f32 1.0, %v2008_v42 }
0x17f0   :  { %v1700_v32 = vmul.f32 0.5, %v1699_v48 }
0x17f2   :  { %v1712_v13 = vmul.f32 %v1710_v28, %v1700_v32 }
0x17f4   :  { %v1713_v18 = vadd.f32 %v1712_v13, %v1686_v24 }
0x183a   :  { %v1666_v40 = vpop.permute.xlu0 %1665 }
0x183b   :  { %v1668_v46 = vadd.f32 %v1666_v40, %v2456_v47 }
0x183d   :  { %2009 = vtanh.f32 %v1668_v46 }
0x183e   :  { %2011 = vtanh.f32 %v1705_v0 }
0x183f   :  { %2013 = vtanh.f32 %v1713_v18 }
0x184a   :  { %v2010_v62 = vpop.eup %2009 }
0x184b   :  { %1672 = vrot.lane.b32.xlu1 %v2010_v62, %s2053_s19  ;;  %v2012_v8 = vpop.eup %2011 }
0x184c   :  { %v1707_v35 = vadd.f32 1.0, %v2012_v8  ;;  %v2014_v30 = vpop.eup %2013 }
0x184e   :  { %v1708_v16 = vmul.f32 0.5, %v1707_v35 }
0x184f   :  { %419 = vperm.xlu1 %1832, %v2532_v25  }
0x1850   :  { %v1715_v34 = vsub.f32 1.0, %v1708_v16  ;;  %v1719_v25 = vmul.f32 %v1717_v23, %v1708_v16 }
0x1852   :  { %v1716_v51 = vmul.f32 %v2014_v30, %v1715_v34 }
0x1853   :  { %520 = vperm.xlu1 %1832, %v2554_v59  }
0x1854   :  { %v1720_v59 = vadd.f32 %v1719_v25, %v1716_v51  ;;  %v308_v51 = vpop.permute.xlu0 %307 }
0x1856   :  { %v1745_v60 = vmul.f32 %v1720_v59, %v2504_v56  ;;  %v1771_v18 = vrot.slane %v1720_v59, 6 }
0x1857   :  { %722 = vperm.xlu1 %1832, %v2599_v31   ;;  %v1636_v31 = vmul.f32 %v2769_v5, %v2094_v10 }
0x185b   :  { %921 = vperm.xlu1 %1832, %v2656_v41   ;;  %v1637_v41 = vadd.f32 %v1636_v31, %v2097_v11  ;;  %v1743_v11 = vmul.f32 %v1720_v59, %v2410_v4  ;;  %v1746_v4 = vadd.f32 %v1745_v60, %v2525_v44  ;;  %v18_v60 = vld [vmem:[%s2901_s2 + $0x8] sm:$0xff] }
0x185d   :  { %v1651_v49 = vrot.slane %v1637_v41, 6  ;;  %v1744_v42 = vadd.f32 %v1743_v11, %v2418_v58  ;;  %v1805_v41 = vld [vmem:[%s2901_s2 + $0x10] ss:$0 sm:$0xff] }
0x185f   :  { %1123 = vperm.xlu1 %1832, %v2700_v38   ;;  %v1653_v38 = vadd.f32 %v1651_v49, %v2456_v47  ;;  %v1756_v45 = vrot.slane %v1744_v42, 6 }
0x1861   :  { %v1654_v33 = vmul.f32 0.5, %v1653_v38 }
0x1863   :  { %1322 = vperm.xlu1 %1832, %v2744_v12   ;;  %2015 = vtanh.f32 %v1654_v33  ;;  %v622_v33 = vpop.permute.xlu0 %621 }
0x1867   :  { %1524 = vperm.xlu1 %1832, %v2801_v54   ;;  %v1741_v54 = vmul.f32 %v1720_v59, %v2494_v37 }
0x1869   :  { %v1742_v10 = vadd.f32 %v1741_v54, %v2498_v39 }
0x186b   :  { %1723 = vperm.xlu1 %1832, %v1720_v59   ;;  %v1748_v29 = vrot.slane %v1742_v10, 6  ;;  %v821_v10 = vpop.permute.xlu0 %820 }
0x1870   :  { %v2016_v22 = vpop.eup %2015 }
0x1871   :  { %v1656_v12 = vadd.f32 1.0, %v2016_v22 }
0x1873   :  { %v1657_v3 = vmul.f32 0.5, %v1656_v12 }
0x1875   :  { %v1670_v26 = vsub.f32 1.0, %v1657_v3  ;;  %v1679_v40 = vmul.f32 %v1677_v27, %v1657_v3 }
0x18bd   :  { %v1673_v20 = vpop.permute.xlu1 %1672 }
0x18be   :  { %v1675_v46 = vmul.f32 %v1673_v20, %v1670_v26 }
0x18c0   :  { %v1680_v53 = vadd.f32 %v1679_v40, %v1675_v46 }
0x18c2   :  { %v1735_v47 = vmul.f32 %v1680_v53, %v2470_v36  ;;  %v1737_v52 = vmul.f32 %v1680_v53, %v2401_v55  ;;  %v1764_v55 = vrot.slane %v1746_v4, 6 }
0x18c4   :  { %v1736_v57 = vadd.f32 %v1735_v47, %v2472_v2  ;;  %v1738_v37 = vadd.f32 %v1737_v52, %v2413_v9  ;;  %v1739_v2 = vmul.f32 %v1680_v53, %v2481_v50  ;;  %v17_v50 = vld [vmem:[%s2901_s2] sm:$0xff]  ;;  %s2054_s2 = smov [#allocation2]  }
0x18c5   :  { %v313_v30 = vrot.slane %v17_v50, %v2104_v14  ;;  %v526_v34 = vrot.slane %v17_v50, %v2116_v19  ;;  %v627_v49 = vrot.slane %v17_v50, %v2119_v21  ;;  %v826_v40 = vrot.slane %v17_v50, %v2107_v15  ;;  %s1797_s7 = sshll.u32 %s2054_s2, 4  ;;  %s1798_s7 = int_to_ptr.vmem [resolvable:$true] %s1797_s7 }
0x18c6   :  { %v1750_v5 = vadd.f32 %v1748_v29, %v1736_v57  ;;  %v1758_v48 = vadd.f32 %v1756_v45, %v1738_v37  ;;  %v1740_v58 = vadd.f32 %v1739_v2, %v2483_v61  ;;  %v425_v61 = vrot.slane %v17_v50, %v2113_v17  ;;  %s2024_s8 = scalar_lea.vmem %s1798_s7, 32  ;;  %p2029_p1 = scmp.lt.s32.totalorder %s1798_s7, %s1798_s7 }
0x18c7   :  { %v314_v59 = vmul.f32 %v313_v30, %v308_v51  ;;  %v628_v3 = vmul.f32 %v627_v49, %v622_v33  ;;  %v728_v46 = vrot.slane %v17_v50, %v2086_v6  ;;  %v927_v11 = vrot.slane %v17_v50, %v2089_v7  ;;  %p2025_p0 = scmp.ne.s32.totalorder %s1798_s7, %s2024_s8  ;;  %p2030_p2 = scmp.lt.s32.totalorder %s2024_s8, %s2024_s8 }
0x18c8   :  { %v1751_v43 = vmul.f32 0.5, %v1750_v5  ;;  %v1759_v39 = vmul.f32 0.5, %v1758_v48  ;;  %v827_v29 = vmul.f32 %v826_v40, %v821_v10  ;;  %v1028_v37 = vrot.slane %v17_v50, %v2394_v1 }
0x18c9   :  { %v315_v22 = vadd.f32 %v1805_v41, %v314_v59  ;;  %v630_v20 = vrot.slane %v628_v3, 6  ;;  %v1530_v30 = vrot.slane %v18_v60, %v2086_v6  ;;  %v1729_v51 = vrot.slane %v18_v60, %v2089_v7  ;;  %p2031_p3 = por %p2030_p2, %p2029_p1 }
0x18ca   :  { %2017 = vtanh.f32 %v1751_v43  ;;  %v420_v16 = vpop.permute.xlu1 %419  ;;  %v829_v5 = vrot.slane %v827_v29, 2  ;;  %v1023_v43 = vpop.permute.xlu0 %1022  ;;  %v1783_v49 = vrot.slane %v18_v60, %v2394_v1 }
0x18cb   :  { %2019 = vtanh.f32 %v1759_v39  ;;  %v426_v25 = vmul.f32 %v425_v61, %v420_v16  ;;  %v1029_v39 = vmul.f32 %v1028_v37, %v1023_v43  ;;  %p2032_p4 = pnand %p2031_p3, %p2025_p0 }
0x18cd   :  { %v428_v38 = vrot.slane %v426_v25, 2  ;;  %v1031_v2 = vrot.slane %v1029_v39, 6 }
0x18ce   :  { %v521_v23 = vpop.permute.xlu1 %520 }
0x18cf   :  { %v527_v31 = vmul.f32 %v526_v34, %v521_v23  ;;  %v430_v26 = vadd.f32 %v428_v38, %v315_v22 }
0x18d1   :  { %v529_v12 = vrot.slane %v527_v31, 4 }
0x18d2   :  { %v723_v27 = vpop.permute.xlu1 %722 }
0x18d3   :  { %v531_v54 = vadd.f32 %v529_v12, %v430_v26  ;;  %v729_v57 = vmul.f32 %v728_v46, %v723_v27 }
0x18d5   :  { %v632_v53 = vadd.f32 %v630_v20, %v531_v54 }
0x18d6   :  { %v922_v47 = vpop.permute.xlu1 %921 }
0x18d7   :  { %v2018_v36 = vpop.eup %2017  ;;  %v730_v52 = vadd.f32 %v729_v57, %v632_v53  ;;  %v928_v42 = vmul.f32 %v927_v11, %v922_v47 }
0x18d8   :  { %v1753_v0 = vadd.f32 1.0, %v2018_v36  ;;  %v2020_v63 = vpop.eup %2019 }
0x18d9   :  { %v1761_v28 = vadd.f32 1.0, %v2020_v63  ;;  %v831_v45 = vadd.f32 %v829_v5, %v730_v52  ;;  %v930_v48 = vrot.slane %v928_v42, 4 }
0x18da   :  { %v1754_v32 = vmul.f32 0.5, %v1753_v0  ;;  %v1124_v4 = vpop.permute.xlu1 %1123  ;;  %v1227_v0 = vrot.slane %v18_v60, %v2113_v17 }
0x18db   :  { %v1762_v13 = vmul.f32 0.5, %v1761_v28  ;;  %v932_v36 = vadd.f32 %v930_v48, %v831_v45 }
0x18dc   :  { %v1766_v62 = vmul.f32 %v1764_v55, %v1754_v32  ;;  %v1129_v55 = vrot.slane %v18_v60, %v2104_v14  ;;  %v1222_v32 = vpop.permute.xlu0 %1221  ;;  %v1628_v14 = vrot.slane %v18_v60, %v2107_v15 }
0x18dd   :  { %v1769_v24 = vsub.f32 1.0, %v1762_v13  ;;  %v1773_v35 = vmul.f32 %v1771_v18, %v1762_v13  ;;  %v1228_v63 = vmul.f32 %v1227_v0, %v1222_v32 }
0x18de   :  { %v1767_v9 = vadd.f32 %v1766_v62, %v1740_v58  ;;  %v1033_v58 = vadd.f32 %v1031_v2, %v932_v36  ;;  %v1328_v62 = vrot.slane %v18_v60, %v2116_v19  ;;  %v1130_v28 = vmul.f32 %v1129_v55, %v1124_v4 }
0x18df   :  { %v1230_v18 = vrot.slane %v1228_v63, 2 }
0x18e0   :  { %2021 = vtanh.f32 %v1767_v9  ;;  %v1323_v9 = vpop.permute.xlu1 %1322  ;;  %v1131_v13 = vadd.f32 %v1130_v28, %v1033_v58 }
0x18e4   :  { %v1525_v50 = vpop.permute.xlu1 %1524 }
0x18e5   :  { %v1531_v59 = vmul.f32 %v1530_v30, %v1525_v50 }
0x18e8   :  { %v1724_v23 = vpop.permute.xlu1 %1723 }
0x18ed   :  { %v2022_v56 = vpop.eup %2021 }
0x18ee   :  { %v1770_v8 = vmul.f32 %v2022_v56, %v1769_v24  ;;  %v1329_v24 = vmul.f32 %v1328_v62, %v1323_v9  ;;  %v1429_v56 = vrot.slane %v18_v60, %v2119_v21  ;;  %v1730_v21 = vmul.f32 %v1729_v51, %v1724_v23 }
0x18f0   :  { %v1774_v44 = vadd.f32 %v1773_v35, %v1770_v8  ;;  %v1424_v8 = vpop.permute.xlu0 %1423  ;;  %v1232_v35 = vadd.f32 %v1230_v18, %v1131_v13  ;;  %v1732_v33 = vrot.slane %v1730_v21, 4 }
0x18f1   :  { %v1430_v16 = vmul.f32 %v1429_v56, %v1424_v8 }
0x18f2   :  { %1777 = vperm.xlu0 %1831, %v1774_v44   ;;  %v1331_v44 = vrot.slane %v1329_v24, 4 }
0x18f3   :  { %v1432_v61 = vrot.slane %v1430_v16, 6 }
0x18f4   :  { %v1333_v17 = vadd.f32 %v1331_v44, %v1232_v35  ;;  %v1623_v19 = vpop.permute.xlu0 %1622 }
0x18f5   :  { %v1629_v25 = vmul.f32 %v1628_v14, %v1623_v19 }
0x18f6   :  { %v1434_v34 = vadd.f32 %v1432_v61, %v1333_v17 }
0x18f7   :  { %v1631_v41 = vrot.slane %v1629_v25, 2 }
0x18f8   :  { %v1532_v31 = vadd.f32 %v1531_v59, %v1434_v34 }
0x18fa   :  { %v1633_v38 = vadd.f32 %v1631_v41, %v1532_v31 }
0x18fc   :  { %v1734_v15 = vadd.f32 %v1732_v33, %v1633_v38 }
0x196d   :  { %v1778_v22 = vpop.permute.xlu0 %1777 }
0x196e   :  { %v1784_v12 = vmul.f32 %v1783_v49, %v1778_v22 }
0x1970   :  { %v1786_v6 = vrot.slane %v1784_v12, 6 }
0x1972   :  { %v1788_v3 = vadd.f32 %v1786_v6, %v1734_v15 }
0x1974   :  { %1790 = vst.msk [vmem:[#allocation2] sm:$0x3] %vm1789_vm0, %v1788_v3 }
0x1975   :  { %2035 = shalt.err (!%p2032_p4)
}
0x1976   :  { %1800 = dma.vmem_to_hbm [thread:$0]  %s1798_s7, 32, %s2902_s3, [#allocation3]  }
0x1977   :  { %2044 = dma.done.wait [#allocation3], 32  }
0x1978   :  { %2045 = vsyncadd [#allocation3], 4294967264 }
0x1979   :  { %1804 = vsyncpa [#allocation3], 1 }

</bundles_post_ra>
